<compile_context>
chip_gen: v5e
topology: v5e:2x2
jax: 0.10.0
libtpu: 0.0.40
codegen_flags: <defaults>
</compile_context>

<pallas_src>
import math

import jax
import jax.numpy as jnp
from jax.experimental import pallas as pl
from jax.experimental.pallas import tpu as pltpu


def _fourier_mfn_kernel(x_ref, wt_ref, b_ref, o_ref):
    # x_ref : (TILE_N, in_f)    row tile of flattened coordinates
    # wt_ref: (in_f, TILE_F)    pre-transposed weight, column tile
    # b_ref : (1, TILE_F)       bias row, column tile
    # o_ref : (TILE_N, TILE_F)  output tile
    x = x_ref[...].astype(jnp.float32)
    wt = wt_ref[...].astype(jnp.float32)
    # MXU contraction: K = in_f (coordinate dim, ~2-4) is padded inside the
    # MXU; push count scales with TILE_N/8 regardless of K, so this costs no
    # extra cycles and frees the VALU/XLU for the bias + sin epilogue.
    acc = jnp.dot(x, wt, preferred_element_type=jnp.float32)
    acc = acc + b_ref[...].astype(jnp.float32)      # f32 epilogue
    o_ref[...] = jnp.sin(acc).astype(o_ref.dtype)   # single cast at the store


def _default_vmem_limit_bytes():
    # ~75% of physical VMEM, capped at 96 MiB.
    #   v5e/v6e (128 MiB) -> 96 MiB; v7x (64 MiB) -> 48 MiB.
    try:
        cap = int(pltpu.get_tpu_info().vmem_capacity_bytes)
    except Exception:
        cap = 64 * 1024 * 1024          # conservative fallback (v7x-sized)
    return int(min(cap * 3 // 4, 96 * 1024 * 1024))


def _pick_tile_f(out_f):
    """Column-tile width.  Lane-dense (multiple of 128) if out_f allows it,
    otherwise the full extent (masked stores, but no extra wrapper pass)."""
    if out_f % 128 != 0:
        return out_f
    tile_f = min(out_f, 2048)
    while out_f % tile_f != 0:          # terminates at 128 (128 | out_f)
        tile_f -= 128
    return tile_f


def _pick_tile_n(m, tile_f, n_col, vmem_limit_bytes, requested):
    """Row-tile height: as large as the VMEM budget allows, multiple of 8,
    but small enough that the grid still has >= ~8 steps (v7x 2-TC)."""
    if requested is not None:
        tile = requested
    else:
        # Double-buffered VMEM per row:
        #   out tile: tile_f * 4 B;  x block: lane-padded to 128 lanes -> 512 B
        per_row = 2 * (tile_f * 4 + 512)
        budget = int(vmem_limit_bytes * 0.75)       # headroom for W^T/bias/spills
        tile = budget // per_row
        tile = max(512, min(tile, 8192))
    tile = max(1, min(tile, m))
    if m >= 8:
        tile = max(8, tile - tile % 8)
    # Prefer >= 8 total grid steps when there's enough work (>= 4 per TC on v7x).
    if m >= 64:
        row_steps = -(-m // tile)
        while row_steps * n_col < 8 and tile > 8:
            tile = max(8, ((tile // 2 + 7) // 8) * 8)
            row_steps = -(-m // tile)
    return tile


def fourier_layer_mfn(x, weight, bias, *, tile_n=None, out_dtype=None,
                      vmem_limit_bytes=None):
    """sin(x @ weight.T + bias).

    x:      (..., in_features)
    weight: (out_features, in_features)
    bias:   (out_features,)
    returns (..., out_features), dtype = out_dtype or x.dtype.
    """
    *lead, in_f = x.shape
    out_f, in_f_w = weight.shape
    assert in_f == in_f_w, (in_f, in_f_w)
    out_dtype = out_dtype if out_dtype is not None else x.dtype

    m = math.prod(lead) if lead else 1
    x2d = x.reshape(m, in_f)

    wt = jnp.transpose(weight)            # (in_f, out_f): no in-kernel .T
    b2 = bias.reshape(1, out_f)

    if vmem_limit_bytes is None:
        vmem_limit_bytes = _default_vmem_limit_bytes()

    tile_f = _pick_tile_f(out_f)
    n_col = out_f // tile_f if out_f % 128 == 0 else 1
    tile = _pick_tile_n(m, tile_f, n_col, vmem_limit_bytes, tile_n)
    grid = (pl.cdiv(m, tile), n_col)

    itemsize = jnp.dtype(x.dtype).itemsize
    cost = pl.CostEstimate(
        flops=2 * m * in_f * out_f,
        transcendentals=m * out_f,
        bytes_accessed=(m * in_f * itemsize
                        + out_f * in_f * jnp.dtype(weight.dtype).itemsize
                        + out_f * jnp.dtype(bias.dtype).itemsize
                        + m * out_f * jnp.dtype(out_dtype).itemsize),
    )

    out2d = pl.pallas_call(
        _fourier_mfn_kernel,
        out_shape=jax.ShapeDtypeStruct((m, out_f), out_dtype),
        grid_spec=pltpu.PrefetchScalarGridSpec(
            num_scalar_prefetch=0,
            grid=grid,
            in_specs=[
                pl.BlockSpec((tile, in_f), lambda i, j: (i, 0)),     # x row tile
                pl.BlockSpec((in_f, tile_f), lambda i, j: (0, j)),   # W^T column tile
                pl.BlockSpec((1, tile_f), lambda i, j: (0, j)),      # bias column tile
            ],
            out_specs=pl.BlockSpec((tile, tile_f), lambda i, j: (i, j)),
        ),
        compiler_params=pltpu.CompilerParams(
            dimension_semantics=("parallel", "parallel"),
            vmem_limit_bytes=vmem_limit_bytes,
        ),
        cost_estimate=cost,
    )(x2d, wt, b2)

    return out2d.reshape(*lead, out_f)


def fourier_layer_mfn_ref(x, weight, bias):
    # Pure elementwise reference (avoids TPU default-precision matmul drift).
    pre = jnp.sum(x[..., None, :].astype(jnp.float32)
                  * weight.astype(jnp.float32), axis=-1) + bias
    return jnp.sin(pre).astype(x.dtype)


if __name__ == "__main__":
    key = jax.random.PRNGKey(0)

    # --- main demo: coordinates -> Fourier features -------------------------
    batch, n_points, in_features, out_features = 2, 512, 4, 128
    kx, kw, kb, kx2, kw2, kb2 = jax.random.split(key, 6)

    # Mirror FourierLayerMFN.__init__: per-input-column uniform(-scale_i, scale_i)
    # frequencies (frozen) and bias ~ U(-pi, pi).
    weight_scale = jnp.array([8.0, 8.0, 4.0, 4.0], jnp.float32)
    weight = (jax.random.uniform(kw, (out_features, in_features), jnp.float32,
                                 -1.0, 1.0) * weight_scale[None, :])
    bias = jax.random.uniform(kb, (out_features,), jnp.float32,
                              -math.pi, math.pi)
    x = jax.random.uniform(kx, (batch, n_points, in_features), jnp.float32,
                           -1.0, 1.0)

    out = jax.block_until_ready(fourier_layer_mfn(x, weight, bias))
    ref = fourier_layer_mfn_ref(x, weight, bias)
    assert out.shape == (batch, n_points, out_features)
    assert jnp.allclose(out, ref, atol=1e-4, rtol=1e-4), "mismatch vs reference"

    # --- odd shapes: non-128-multiple out_f, non-divisible row count --------
    in2, out2 = 3, 96
    w2 = jax.random.uniform(kw2, (out2, in2), jnp.float32, -4.0, 4.0)
    b2v = jax.random.uniform(kb2, (out2,), jnp.float32, -math.pi, math.pi)
    x2 = jax.random.uniform(kx2, (3, 37, in2), jnp.float32, -1.0, 1.0)

    out_b = jax.block_until_ready(fourier_layer_mfn(x2, w2, b2v))
    ref_b = fourier_layer_mfn_ref(x2, w2, b2v)
    assert out_b.shape == (3, 37, out2)
    assert jnp.allclose(out_b, ref_b, atol=1e-4, rtol=1e-4), "mismatch (odd shapes)"

    print("KERNEL_OK")
</pallas_src>

<mosaic_0001>
module attributes {stable_mosaic.version = 11 : i64} {
  func.func @_fourier_mfn_kernel(%arg0: i32, %arg1: i32, %arg2: memref<128x4xf32, #tpu.memory_space<vmem>>, %arg3: memref<4x128xf32, #tpu.memory_space<vmem>>, %arg4: memref<1x128xf32, #tpu.memory_space<vmem>>, %arg5: memref<128x128xf32, #tpu.memory_space<vmem>>) attributes {dimension_semantics = [#tpu.dimension_semantics<parallel>, #tpu.dimension_semantics<parallel>], iteration_bounds = array<i64: 8, 1>, scalar_prefetch = 0 : i64, scratch_operands = 0 : i64, tpu.core_type = #tpu.core_type<tc>, window_params = [{transform_indices = @transform_0, window_bounds = array<i64: 128, 4>}, {transform_indices = @transform_1, window_bounds = array<i64: 4, 128>}, {transform_indices = @transform_2, window_bounds = array<i64: 1, 128>}, {transform_indices = @transform_3, window_bounds = array<i64: 128, 128>}]} {
    %c0 = arith.constant 0 : index
    %c0_0 = arith.constant 0 : index
    %0 = vector.load %arg2[%c0, %c0_0] : memref<128x4xf32, #tpu.memory_space<vmem>>, vector<128x4xf32>
    %c0_1 = arith.constant 0 : index
    %c0_2 = arith.constant 0 : index
    %1 = vector.load %arg3[%c0_1, %c0_2] : memref<4x128xf32, #tpu.memory_space<vmem>>, vector<4x128xf32>
    %cst = arith.constant dense<0.000000e+00> : vector<128x128xf32>
    %2 = tpu.matmul %0, %1, %cst {dimension_numbers = #tpu.dot_dimension_numbers<[1], [0], [0], [1], [0, 0, 1, 1], [], []>} : vector<128x4xf32>, vector<4x128xf32>, vector<128x128xf32> -> vector<128x128xf32>
    %c0_3 = arith.constant 0 : index
    %c0_4 = arith.constant 0 : index
    %3 = vector.load %arg4[%c0_3, %c0_4] : memref<1x128xf32, #tpu.memory_space<vmem>>, vector<1x128xf32>
    %4 = vector.broadcast %3 : vector<1x128xf32> to vector<128x128xf32>
    %5 = arith.addf %2, %4 : vector<128x128xf32>
    %6 = math.sin %5 : vector<128x128xf32>
    %c0_5 = arith.constant 0 : index
    %c0_6 = arith.constant 0 : index
    %7 = vector.load %arg5[%c0_5, %c0_6] : memref<128x128xf32, #tpu.memory_space<vmem>>, vector<128x128xf32>
    tpu.vector_store %arg5[%c0_5, %c0_6], %6 {strides = array<i32>} : memref<128x128xf32, #tpu.memory_space<vmem>>, vector<128x128xf32>,
    return
  }
  func.func @transform_0(%arg0: i32, %arg1: i32) -> (i32, i32) {
    %c0_i32 = arith.constant 0 : i32
    %c0_i32_0 = arith.constant 0 : i32
    return %arg0, %c0_i32 : i32, i32
  }
  func.func @transform_1(%arg0: i32, %arg1: i32) -> (i32, i32) {
    %c0_i32 = arith.constant 0 : i32
    %c0_i32_0 = arith.constant 0 : i32
    return %c0_i32, %arg1 : i32, i32
  }
  func.func @transform_2(%arg0: i32, %arg1: i32) -> (i32, i32) {
    %c0_i32 = arith.constant 0 : i32
    %c0_i32_0 = arith.constant 0 : i32
    return %c0_i32, %arg1 : i32, i32
  }
  func.func @transform_3(%arg0: i32, %arg1: i32) -> (i32, i32) {
    %c0_i32 = arith.constant 0 : i32
    return %arg0, %arg1 : i32, i32
  }
}

</mosaic_0001>

<bundles_post_ra>
// kernel: tpu_custom_call.1
= control target key start
LH: loop header
LB: loop body
LE: loop exit
PB: predicated region body
PF: predicated region fallthrough
CT: control target
= control target key end

     0   :  { %8 = vsyncpa [#allocation3], 0  ;;  %s5172_s0 = inlined_call_operand.vmem [shape: f32[1024,4], index: 0, kind: input, shape index: {}]   ;;  %s5173_s1 = inlined_call_operand.vmem [shape: f32[4,128], index: 1, kind: input, shape index: {}]   ;;  %s5174_s2 = inlined_call_operand.vmem [shape: f32[1,128], index: 2, kind: input, shape index: {}]   ;;  %s5175_s3 = inlined_call_operand.hbm [shape: f32[1024,128], index: 3, kind: output, shape index: {}]  }
   0x1   :  { %10 = vsyncpa [#allocation3 + $0x1], 0  ;;  %s3229_s12 = smov 0   ;;  %s3231_s13 = smov 0  }
   0x2   :  { %s3233_s14 = smov 0   ;;  %s3235_s15 = smov 0  }
   0x3   :  { %s3237_s16 = smov 0   ;;  %s3239_s17 = smov 0  }
   0x4 LB: > { %s2968_s18 = sadd.s32 4294967295, %s3198_s17   ;;  %s2969_s19 = sadd.s32 4294967294, %s3198_s17   ;;  %s3198_s17 = sphi %s3239_s17, %s16_s17   ;;  %s3194_s16 = sphi %s3237_s16, %s5212_s16   ;;  %s3190_s15 = sphi %s3235_s15, %s5211_s15   ;;  %s3186_s14 = sphi %s3233_s14, %s5210_s14   ;;  %s3182_s13 = sphi %s3231_s13, %s5209_s13   ;;  %s3178_s12 = sphi %s3229_s12, %s5208_s12  }
   0x5   : > { %s28_s20 = sadd.s32 1, %s3194_s16  ;;  %s115_s21 = sadd.s32 1, %s3186_s14 }
   0x6   : > { %p30_p0 = scmp.ge.s32.totalorder %s28_s20, 8  ;;  %p125_p1 = scmp.ne.s32.totalorder %s3186_s14, %s3182_s13 }
   0x7   : > { %p126_p2 = scmp.eq.s32.totalorder %s2968_s18, 7  ;;  %p131_p3 = scmp.ne.s32.totalorder %s3182_s13, %s3178_s12 }
   0x8   : > { %s5214_s20 = smov (%p30_p0, %s28_s20), 0  ;;  %p132_p5 = scmp.eq.s32.totalorder %s2969_s19, 7 }
   0x9   : > { %p3269_p4 = por %p126_p2, %p125_p1  ;;  %s110_s23 = ssub.s32 %s3194_s16, %s5214_s20 }
   0xa   : > { %p2974_p6 = scmp.ge.s32.totalorder %s3198_s17, 1  ;;  %p113_p7 = scmp.eq.s32.totalorder %s110_s23, 0 }
   0xb   : > { %p3276_p8 = por %p132_p5, %p131_p3  ;;  %p172_p9 = scmp.lt.s32.totalorder %s3198_s17, 9 }
   0xc   : > { %s3282_s25 = scalar_select %p113_p7, %s3186_s14, %s115_s21  }
   0xd   : > { %p173_p10 = pnand %p2974_p6, %p172_p9 }
   0xe   : > { %s2976_s26 = sshll.u32 (!%p173_p10), %s3190_s15, 4  ;;  %s200_s8 = sand.u32 (!%p173_p10), 1, %s3182_s13  }
   0xf   : > { %176 = sbr.rel (%p173_p10) target bundleno = 797 (0x31d), region = 32  ;;  %p204_p11 = scmp.lt.s32.totalorder (!%p173_p10), %s2976_s26, 127 }
  0x10   : > { %s2975_s9 = sshll.u32 (!%p173_p10), %s200_s8, 7  ;;  %s3048_s27 = sshll.u32 (!%p173_p10), %s3190_s15, 7 }
  0x11   : > { %s3565_s10 = scalar_lea.vmem (!%p173_p10), [#allocation2], %s2975_s9  ;;  %s2865_s30 = scalar_lea.hbm (!%p173_p10), %s5175_s3, %s3048_s27 }
  0x12   : > { %s2866_s4 = sshll.u32 (!%p173_p10), %s3565_s10, 4  ;;  %s2853_s15 = scalar_lea.sflag (!%p173_p10), [#allocation3], %s200_s8  ;;  %s2867_s4 = int_to_ptr.vmem [resolvable:$true] %s2866_s4 }
  0x13   : > { %s3140_s18 = scalar_lea.hbm (!%p173_p10), %s5175_s3, 1024 }
  0x14   : > { %v233_v0 = vld [vmem:[%s5173_s1] sm:$0xf]  ;;  %vm287_vm0 = vcmask 1043456   ;;  %s5216_s26 = smov (!%p204_p11, %s2976_s26), 127  ;;  %vm238_vm1 = vcmask 31744  }
  0x15   : > { %2978 = vmatpush.msk.msra.mxu0 %vm287_vm0, %v233_v0  ;;  %3049 = vmatpush.msk.msra.mxu1 %vm287_vm0, %v233_v0  ;;  %s2977_s29 = sshll.u32 %s5216_s26, 3  ;;  %v3310_v17 = vld [vmem:[%s5174_s2] ss:$0 sm:$0xff]  ;;  %v3200_v34 = vmov 683565275  }
  0x16   : > { %3050 = vmatpush.msk.msra.mxu2 %vm287_vm0, %v233_v0  ;;  %3051 = vmatpush.msk.msra.mxu3 %vm287_vm0, %v233_v0  ;;  %s207_s5 = scalar_lea.vmem %s5172_s0, %s2977_s29  ;;  %v3201_v36 = vmov 2475754826   ;;  %v3202_v38 = vmov 2131351028   ;;  %v3203_v40 = vmov 2102212464  }
  0x17   : > { %v217_v1 = vld [vmem:[%s207_s5] sm:$0xff]  ;;  %v218_v5 = vld [vmem:[%s207_s5 + $0x8] sm:$0xff]  ;;  %v219_v9 = vld [vmem:[%s207_s5 + $0x10] sm:$0xff]  ;;  %v3204_v43 = vmov 920167782  }
  0x18   : > { %v221_v2 = vld [vmem:[%s207_s5 + $0x20] sm:$0xff]  ;;  %2979 = vmatmul.msk.f32.vlgmr.msra.gmra.mxu0 %vm238_vm1, %v217_v1  ;;  %v222_v6 = vld [vmem:[%s207_s5 + $0x28] sm:$0xff]  ;;  %v223_v10 = vld [vmem:[%s207_s5 + $0x30] sm:$0xff]  ;;  %v3205_v52 = vmov 1326507024  }
  0x19   : > { %v225_v3 = vld [vmem:[%s207_s5 + $0x40] sm:$0xff]  ;;  %2983 = vmatmul.msk.f32.vlgmr.msra.gmra.mxu1 %vm238_vm1, %v221_v2  ;;  %v226_v7 = vld [vmem:[%s207_s5 + $0x48] sm:$0xff]  ;;  %v227_v11 = vld [vmem:[%s207_s5 + $0x50] sm:$0xff] }
  0x1a   : > { %2987 = vmatmul.msk.f32.vlgmr.msra.gmra.mxu2 %vm238_vm1, %v225_v3  ;;  %v229_v4 = vld [vmem:[%s207_s5 + $0x60] sm:$0xff]  ;;  %v230_v8 = vld [vmem:[%s207_s5 + $0x68] sm:$0xff]  ;;  %v231_v12 = vld [vmem:[%s207_s5 + $0x70] sm:$0xff] }
  0x1b   : > { %2991 = vmatmul.msk.f32.vlgmr.msra.gmra.mxu3 %vm238_vm1, %v229_v4  ;;  %v220_v13 = vld [vmem:[%s207_s5 + $0x18] sm:$0xff] }
  0x1c   : > { %v224_v14 = vld [vmem:[%s207_s5 + $0x38] sm:$0xff] }
  0x1d   : > { %v228_v15 = vld [vmem:[%s207_s5 + $0x58] sm:$0xff] }
  0x1e   : > { %v232_v16 = vld [vmem:[%s207_s5 + $0x78] sm:$0xff]  ;;  %s2868_s5 = sshll.u32 %s2865_s30, 4  ;;  %s2869_s5 = int_to_ptr.hbm [resolvable:$true] %s2868_s5 }
  0x1f   : > { %s3134_s6 = sshra.s32 %s2869_s5, 4  ;;  %s3135_s6 = int_to_ptr.hbm [resolvable:$true] %s3134_s6 }
  0x20   : > { %2980 = vmatmul.msk.f32.gmra.mxu0 %vm238_vm1, %v218_v5  ;;  %s3136_s7 = scalar_lea.hbm %s3135_s6, 128  ;;  %p3141_p1 = scmp.lt.s32.totalorder %s3135_s6, %s5175_s3 }
  0x21   : > { %2984 = vmatmul.msk.f32.gmra.mxu1 %vm238_vm1, %v222_v6  ;;  %p3137_p12 = scmp.ne.s32.totalorder %s3135_s6, %s3136_s7  ;;  %p3142_p2 = scmp.lt.s32.totalorder %s3140_s18, %s3136_s7 }
  0x22   : > { %2988 = vmatmul.msk.f32.gmra.mxu2 %vm238_vm1, %v226_v7 }
  0x23   : > { %2992 = vmatmul.msk.f32.gmra.mxu3 %vm238_vm1, %v230_v8  ;;  %p3138_p13 = pnand %p3137_p12, %p3269_p4  ;;  %p3143_p3 = por %p3142_p2, %p3141_p1 }
  0x25   : > { %p3139_p0 = pneg %p3138_p13 }
  0x27   : > { %p3144_p5 = pnand %p3143_p3, %p3139_p0 }
  0x28   : > { %2981 = vmatmul.msk.f32.gmra.mxu0 %vm238_vm1, %v219_v9 }
  0x29   : > { %2985 = vmatmul.msk.f32.gmra.mxu1 %vm238_vm1, %v223_v10 }
  0x2a   : > { %2989 = vmatmul.msk.f32.gmra.mxu2 %vm238_vm1, %v227_v11 }
  0x2b   : > { %2993 = vmatmul.msk.f32.gmra.mxu3 %vm238_vm1, %v231_v12 }
  0x30   : > { %2982 = vmatmul.msk.f32.gmra.mxu0 %vm238_vm1, %v220_v13 }
  0x31   : > { %2986 = vmatmul.msk.f32.gmra.mxu1 %vm238_vm1, %v224_v14 }
  0x32   : > { %2990 = vmatmul.msk.f32.gmra.mxu2 %vm238_vm1, %v228_v15 }
  0x33   : > { %2994 = vmatmul.msk.f32.gmra.mxu3 %vm238_vm1, %v232_v16 }
  0x95   : > { %v308_v18 = vpop.f32.mrf.mxu0 }
  0x96   : > { %v3313_v19 = vadd.f32 %v3310_v17, %v308_v18 }
  0x98   : > { %v359_v20 = vand.u32 2139095040, %v3313_v19  ;;  %v356_v21 = vand.u32 2147483647, %v3313_v19  ;;  %vm358_vm1 = vcmp.lt.s32.totalorder %v3313_v19, 0 }
  0x9a   : > { %v360_v22 = vshrl.u32 %v359_v20, 23  ;;  %v363_v25 = vand.u32 8388607, %v356_v21 }
  0x9c   : > { %v2995_v23 = vadd.s32 4294967169, %v360_v22  ;;  %v364_v29 = vor.u32 8388608, %v363_v25 }
  0x9d   : > { %v311_v24 = vpop.f32.mrf.mxu0 }
  0x9e   : > { %v366_v26 = vadd.s32 1, %v2995_v23  ;;  %v3320_v27 = vadd.f32 %v3310_v17, %v311_v24  ;;  %v3329_v45 = vshll.u32 %v364_v29, 8 }
  0xa0   : > { %vm367_vm2 = vcmp.gt.s32.totalorder %v366_v26, 0  ;;  %v514_v31 = vand.u32 2139095040, %v3320_v27  ;;  %v511_v46 = vand.u32 2147483647, %v3320_v27  ;;  %v405_v5 = vand.u32 65535, %v3329_v45 }
  0xa1   : > { %v368_v28 = vsel %vm367_vm2, %v366_v26, 0  ;;  %v406_v6 = vshrl.u32 %v3329_v45, 16 }
  0xa2   : > { %v370_v30 = vand.u32 31, %v368_v28  ;;  %v369_v32 = vshrl.u32 %v368_v28, 5  ;;  %v515_v50 = vshrl.u32 %v514_v31, 23  ;;  %v518_v59 = vand.u32 8388607, %v511_v46 }
  0xa4   : > { %v371_v33 = vsub.s32 32, %v370_v30  ;;  %v373_v35 = vshll.u32 %v3200_v34, %v370_v30  ;;  %v376_v37 = vshll.u32 %v3201_v36, %v370_v30  ;;  %v379_v39 = vshll.u32 %v3202_v38, %v370_v30 }
  0xa5   : > { %v382_v41 = vshll.u32 %v3203_v40, %v370_v30  ;;  %v385_v44 = vshll.u32 %v3204_v43, %v370_v30  ;;  %vm388_vm3 = vcmp.lt.s32.totalorder %v369_v32, 1  ;;  %vm390_vm4 = vcmp.lt.s32.totalorder %v369_v32, 3 }
  0xa6   : > { %v374_v42 = vshrl.u32 %v3201_v36, %v371_v33  ;;  %v377_v47 = vshrl.u32 %v3202_v38, %v371_v33  ;;  %v380_v48 = vshrl.u32 %v3203_v40, %v371_v33  ;;  %v383_v49 = vshrl.u32 %v3204_v43, %v371_v33 }
  0xa7   : > { %v386_v53 = vshrl.u32 %v3205_v52, %v371_v33  ;;  %vm391_vm5 = vcmp.lt.s32.totalorder %v369_v32, 4  ;;  %v372_v57 = vshrl.u32 %v3200_v34, %v371_v33  ;;  %vm389_vm6 = vcmp.lt.s32.totalorder %v369_v32, 2 }
  0xa8   : > { %v375_v51 = vor.u32 %v374_v42, %v373_v35  ;;  %v378_v54 = vor.u32 %v377_v47, %v376_v37  ;;  %v381_v55 = vor.u32 %v380_v48, %v379_v39  ;;  %v384_v56 = vor.u32 %v383_v49, %v382_v41 }
  0xa9   : > { %v387_v58 = vor.u32 %v386_v53, %v385_v44  ;;  %v2998_v2 = vadd.s32 4294967169, %v515_v50  ;;  %v519_v10 = vor.u32 8388608, %v518_v59  ;;  %v3206_v39 = vmov 0  }
  0xaa   : > { %v396_v60 = vsel %vm388_vm3, %v375_v51, %v378_v54  ;;  %v397_v61 = vsel %vm391_vm5, %v384_v56, 920167782  ;;  %v400_v62 = vsel %vm388_vm3, %v378_v54, %v381_v55  ;;  %v393_v63 = vsel %vm391_vm5, %v381_v55, 2102212464 }
  0xab   : > { %v398_v0 = vsel %vm390_vm4, %v381_v55, %v397_v61  ;;  %v401_v1 = vsel %vm391_vm5, %v387_v58, 1326507024  ;;  %v392_v7 = vsel %vm388_vm3, %v372_v57, %v375_v51  ;;  %v394_v11 = vsel %vm390_vm4, %v378_v54, %v393_v63 }
  0xac   : > { %v399_v3 = vsel %vm389_vm6, %v396_v60, %v398_v0  ;;  %v402_v4 = vsel %vm390_vm4, %v384_v56, %v401_v1  ;;  %v521_v15 = vadd.s32 1, %v2998_v2  ;;  %v3350_v22 = vsel %vm389_vm6, %v392_v7, %v394_v11 }
  0xad   : > { %v403_v8 = vsel %vm389_vm6, %v400_v62, %v402_v4  ;;  %v429_v9 = vand.u32 65535, %v399_v3  ;;  %v430_v14 = vshrl.u32 %v399_v3, 16  ;;  %v3352_v28 = vshll.u32 %v519_v10, 8 }
  0xae   : > { %v407_v12 = vand.u32 65535, %v403_v8  ;;  %v408_v13 = vshrl.u32 %v403_v8, 16  ;;  %vm522_vm7 = vcmp.gt.s32.totalorder %v521_v15, 0  ;;  %vm3417_vm4 = vcmp.le.f32.partialorder %v356_v21, 0.7853982 }
  0xaf   : > { %v433_v20 = vmul.u32 %v429_v9, %v406_v6  ;;  %v432_v23 = vmul.u32 %v430_v14, %v405_v5  ;;  %v431_v26 = vmul.u32 %v429_v9, %v405_v5  ;;  %v434_v30 = vmul.u32 %v430_v14, %v406_v6 }
  0xb0   : > { %v410_v16 = vmul.u32 %v408_v13, %v405_v5  ;;  %v411_v18 = vmul.u32 %v407_v12, %v406_v6  ;;  %v409_v24 = vmul.u32 %v407_v12, %v405_v5  ;;  %v412_v29 = vmul.u32 %v408_v13, %v406_v6 }
  0xb1   : > { %v435_v31 = vshll.u32 %v432_v23, 16  ;;  %v437_v37 = vshll.u32 %v433_v20, 16  ;;  %v523_v42 = vsel %vm522_vm7, %v521_v15, 0  ;;  %v438_v47 = vshrl.u32 %v433_v20, 16 }
  0xb2   : > { %v413_v25 = vshll.u32 %v410_v16, 16  ;;  %v415_v33 = vshll.u32 %v411_v18, 16  ;;  %v414_v49 = vshrl.u32 %v410_v16, 16  ;;  %v3358_v55 = vshrl.u32 %v523_v42, 5 }
  0xb3   : > { %vm439_vm9 = vc.u32 %v431_v26, %v435_v31  ;;  %v441_v32 = vadd.s32 %v435_v31, %v431_v26  ;;  %v525_v56 = vand.u32 31, %v523_v42  ;;  %v416_v57 = vshrl.u32 %v411_v18, 16 }
  0xb4   : > { %vm417_vm8 = vc.u32 %v409_v24, %v413_v25  ;;  %v419_v35 = vadd.s32 %v413_v25, %v409_v24  ;;  %v440_v48 = vsel %vm439_vm9, 1, %v3206_v39  ;;  %v436_v58 = vshrl.u32 %v432_v23, 16 }
  0xb5   : > { %v418_v41 = vsel %vm417_vm8, 1, %v3206_v39  ;;  %v442_v51 = vadd.s32 %v440_v48, %v434_v30  ;;  %vm443_vm11 = vc.u32 %v441_v32, %v437_v37  ;;  %v3360_v59 = vadd.s32 %v441_v32, %v437_v37  ;;  %v314_v30 = vpop.f32.mrf.mxu0 }
  0xb6   : > { %v420_v44 = vadd.s32 %v418_v41, %v412_v29  ;;  %vm421_vm10 = vc.u32 %v419_v35, %v415_v33  ;;  %v444_v54 = vsel %vm443_vm11, 1, %v3206_v39  ;;  %v526_v62 = vsub.s32 32, %v525_v56 }
  0xb7   : > { %v422_v50 = vsel %vm421_vm10, 1, %v3206_v39  ;;  %v446_v60 = vadd.s32 %v444_v54, %v442_v51  ;;  %v528_v63 = vshll.u32 %v3200_v34, %v525_v56  ;;  %v531_v0 = vshll.u32 %v3201_v36, %v525_v56 }
  0xb8   : > { %v424_v53 = vadd.s32 %v422_v50, %v420_v44  ;;  %v534_v2 = vshll.u32 %v3202_v38, %v525_v56  ;;  %v537_v3 = vshll.u32 %v3203_v40, %v525_v56  ;;  %v540_v4 = vshll.u32 %v3204_v43, %v525_v56 }
  0xb9   : > { %v447_v1 = vadd.s32 %v446_v60, %v436_v58  ;;  %v529_v6 = vshrl.u32 %v3201_v36, %v526_v62  ;;  %v532_v7 = vshrl.u32 %v3202_v38, %v526_v62  ;;  %vm543_vm12 = vcmp.lt.s32.totalorder %v3358_v55, 1 }
  0xba   : > { %v425_v61 = vadd.s32 %v424_v53, %v414_v49  ;;  %v535_v9 = vshrl.u32 %v3203_v40, %v526_v62  ;;  %v538_v10 = vshrl.u32 %v3204_v43, %v526_v62  ;;  %v541_v11 = vshrl.u32 %v3205_v52, %v526_v62 }
  0xbb   : > { %v448_v8 = vadd.s32 %v447_v1, %v438_v47  ;;  %v3377_v12 = vor.u32 %v529_v6, %v528_v63  ;;  %v3379_v13 = vor.u32 %v532_v7, %v531_v0  ;;  %vm545_vm14 = vcmp.lt.s32.totalorder %v3358_v55, 3 }
  0xbc   : > { %v3367_v5 = vadd.s32 %v425_v61, %v416_v57  ;;  %v536_v15 = vor.u32 %v535_v9, %v534_v2  ;;  %v539_v16 = vor.u32 %v538_v10, %v537_v3  ;;  %v542_v18 = vor.u32 %v541_v11, %v540_v4 }
  0xbd   : > { %v452_v14 = vadd.s32 1, %v448_v8  ;;  %v449_v20 = vmul.u32 %v3329_v45, %v3350_v22  ;;  %vm546_vm15 = vcmp.lt.s32.totalorder %v3358_v55, 4  ;;  %v551_v23 = vsel %vm543_vm12, %v3377_v12, %v3379_v13  ;;  %v317_v11 = vpop.f32.mrf.mxu0 }
  0xbe   : > { %vm451_vm13 = vc.u32 %v3367_v5, %v3360_v59  ;;  %v552_v25 = vsel %vm546_vm15, %v539_v16, 920167782  ;;  %v555_v26 = vsel %vm543_vm12, %v3379_v13, %v536_v15  ;;  %vm544_vm0 = vcmp.lt.s32.totalorder %v3358_v55, 2 }
  0xbf   : > { %v453_v24 = vsel %vm451_vm13, %v452_v14, %v448_v8  ;;  %v553_v45 = vsel %vm545_vm14, %v536_v15, %v552_v25  ;;  %v556_v22 = vsel %vm546_vm15, %v542_v18, 1326507024  ;;  %v560_v35 = vand.u32 65535, %v3352_v28 }
  0xc0   : > { %v454_v29 = vadd.s32 %v453_v24, %v449_v20  ;;  %v554_v31 = vsel %vm544_vm0, %v551_v23, %v553_v45  ;;  %v557_v33 = vsel %vm545_vm14, %v539_v16, %v556_v22  ;;  %v561_v44 = vshrl.u32 %v3352_v28, 16 }
  0xc1   : > { %v558_v41 = vsel %vm544_vm0, %v555_v26, %v557_v33  ;;  %v584_v32 = vand.u32 65535, %v554_v31  ;;  %v585_v42 = vshrl.u32 %v554_v31, 16  ;;  %v3408_v54 = vadd.f32 %v3310_v17, %v314_v30 }
  0xc2   : > { %v455_v37 = vadd.s32 536870912, %v454_v29  ;;  %v562_v47 = vand.u32 65535, %v558_v41  ;;  %v563_v48 = vshrl.u32 %v558_v41, 16  ;;  %v527_v57 = vshrl.u32 %v3200_v34, %v526_v62 }
  0xc3   : > { %v587_v50 = vmul.u32 %v585_v42, %v560_v35  ;;  %v588_v58 = vmul.u32 %v584_v32, %v561_v44  ;;  %v548_v60 = vsel %vm546_vm15, %v536_v15, 2102212464  ;;  %v586_v4 = vmul.u32 %v584_v32, %v560_v35 }
  0xc4   : > { %v456_v49 = vshrl.u32 %v455_v37, 30  ;;  %v565_v51 = vmul.u32 %v563_v48, %v560_v35  ;;  %v566_v53 = vmul.u32 %v562_v47, %v561_v44  ;;  %v564_v61 = vmul.u32 %v562_v47, %v560_v35 }
  0xc5   : > { %v590_v0 = vshll.u32 %v587_v50, 16  ;;  %v567_v3 = vmul.u32 %v563_v48, %v561_v44  ;;  %v589_v8 = vmul.u32 %v585_v42, %v561_v44  ;;  %v592_v10 = vshll.u32 %v588_v58, 16 }
  0xc6   : > { %v457_v56 = vshll.u32 %v456_v49, 30  ;;  %v568_v63 = vshll.u32 %v565_v51, 16  ;;  %v480_v2 = vsub.s32 4, %v456_v49  ;;  %v570_v6 = vshll.u32 %v566_v53, 16 }
  0xc7   : > { %vm594_vm6 = vc.u32 %v586_v4, %v590_v0  ;;  %v596_v16 = vadd.s32 %v590_v0, %v586_v4  ;;  %v569_v20 = vshrl.u32 %v565_v51, 16  ;;  %v3424_v45 = vadd.f32 %v3310_v17, %v317_v11 }
  0xc8   : > { %v458_v1 = vsub.s32 %v454_v29, %v457_v56  ;;  %vm572_vm2 = vc.u32 %v564_v61, %v568_v63  ;;  %v574_v7 = vadd.s32 %v568_v63, %v564_v61  ;;  %v595_v24 = vsel %vm594_vm6, 1, %v3206_v39 }
  0xc9   : > { %v573_v62 = vsel %vm572_vm2, 1, %v3206_v39  ;;  %v597_v29 = vadd.s32 %v595_v24, %v589_v8  ;;  %vm598_vm7 = vc.u32 %v596_v16, %v592_v10  ;;  %v547_v21 = vsel %vm543_vm12, %v527_v57, %v3377_v12 }
  0xca   : > { %vm459_vm3 = vcmp.lt.s32.totalorder %v458_v1, 0  ;;  %v460_v9 = vsub.s32 0, %v458_v1  ;;  %v575_v15 = vadd.s32 %v573_v62, %v567_v3  ;;  %vm576_vm5 = vc.u32 %v574_v7, %v570_v6 }
  0xcb   : > { %v577_v23 = vsel %vm576_vm5, 1, %v3206_v39  ;;  %v571_v22 = vshrl.u32 %v566_v53, 16  ;;  %v599_v30 = vsel %vm598_vm7, 1, %v3206_v39  ;;  %v591_v35 = vshrl.u32 %v587_v50, 16 }
  0xcc   : > { %v461_v18 = vsel %vm459_vm3, %v460_v9, %v458_v1  ;;  %v579_v26 = vadd.s32 %v577_v23, %v575_v15  ;;  %v601_v37 = vadd.s32 %v599_v30, %v597_v29  ;;  %v481_v41 = vsel %vm358_vm1, %v480_v2, %v456_v49 }
  0xcd   : > { %v462_v25 = vclz %v461_v18  ;;  %v549_v32 = vsel %vm545_vm14, %v3379_v13, %v548_v60  ;;  %v666_v42 = vand.u32 2147483647, %v3408_v54  ;;  %v669_v44 = vand.u32 2139095040, %v3408_v54 }
  0xce   : > { %v580_v33 = vadd.s32 %v579_v26, %v569_v20  ;;  %v593_v47 = vshrl.u32 %v588_v58, 16  ;;  %v602_v48 = vadd.s32 %v601_v37, %v591_v35  ;;  %v450_v51 = vadd.s32 %v3360_v59, %v3367_v5 }
  0xcf   : > { %v2996_v31 = vadd.s32 4294967294, %v462_v25  ;;  %v600_v53 = vadd.s32 %v596_v16, %v592_v10  ;;  %v670_v56 = vshrl.u32 %v669_v44, 23  ;;  %v550_v61 = vsel %vm544_vm0, %v547_v21, %v549_v32 }
  0xd0   : > { %v581_v12 = vadd.s32 %v580_v33, %v571_v22  ;;  %v603_v13 = vadd.s32 %v602_v48, %v593_v47  ;;  %v483_v60 = vsel %vm3417_vm4, 0, %v481_v41  ;;  %v673_v58 = vand.u32 8388607, %v666_v42 }
  0xd1   : > { %vm2997_vm8 = vcmp.lt.s32.totalorder %v2996_v31, 0  ;;  %v3001_v63 = vadd.s32 4294967169, %v670_v56  ;;  %v604_v3 = vmul.u32 %v3352_v28, %v550_v61  ;;  %v500_v55 = vadd.s32 3, %v483_v60 }
  0xd2   : > { %v465_v50 = vsel %vm2997_vm8, 0, %v2996_v31  ;;  %vm606_vm9 = vc.u32 %v581_v12, %v600_v53  ;;  %v607_v5 = vadd.s32 1, %v603_v13  ;;  %v674_v62 = vor.u32 8388608, %v673_v58 }
  0xd3   : > { %v466_v57 = vsub.s32 32, %v465_v50  ;;  %v470_v49 = vsub.s32 4294967266, %v465_v50  ;;  %v467_v0 = vshll.u32 %v458_v1, %v465_v50  ;;  %v676_v4 = vadd.s32 1, %v3001_v63 }
  0xd4   : > { %v608_v8 = vsel %vm606_vm9, %v607_v5, %v603_v13  ;;  %v824_v15 = vand.u32 2139095040, %v3424_v45  ;;  %v3447_v23 = vand.u32 3, %v500_v55  ;;  %v821_v28 = vand.u32 2147483647, %v3424_v45 }
  0xd5   : > { %v468_v2 = vshrl.u32 %v450_v51, %v466_v57  ;;  %v471_v59 = vadd.s32 127, %v470_v49  ;;  %v609_v9 = vadd.s32 %v608_v8, %v604_v3  ;;  %vm677_vm10 = vcmp.gt.s32.totalorder %v676_v4, 0 }
  0xd6   : > { %v678_v11 = vsel %vm677_vm10, %v676_v4, 0  ;;  %v3450_v24 = vadd.s32 %v600_v53, %v581_v12  ;;  %v3452_v29 = vshll.u32 %v674_v62, 8  ;;  %vm513_vm11 = vcmp.lt.s32.totalorder %v3320_v27, 0 }
  0xd7   : > { %v469_v6 = vor.u32 %v468_v2, %v467_v0  ;;  %v472_v7 = vshll.u32 %v471_v59, 23  ;;  %v610_v16 = vadd.s32 536870912, %v609_v9  ;;  %v680_v18 = vand.u32 31, %v678_v11 }
  0xd8   : > { %v3455_v22 = vshrl.u32 %v678_v11, 5  ;;  %v825_v31 = vshrl.u32 %v824_v15, 23  ;;  %v3472_v57 = vand.u32 65535, %v3452_v29  ;;  %v3475_v49 = vshrl.u32 %v3452_v29, 16 }
  0xd9   : > { %v473_v10 = vor.u32 4788187, %v472_v7  ;;  %v476_v20 = vcvt.s32.f32 %v469_v6  ;;  %v611_v25 = vshrl.u32 %v610_v16, 30  ;;  %v681_v26 = vsub.s32 32, %v680_v18 }
  0xda   : > { %v683_v30 = vshll.u32 %v3200_v34, %v680_v18  ;;  %v686_v35 = vshll.u32 %v3201_v36, %v680_v18  ;;  %v689_v37 = vshll.u32 %v3202_v38, %v680_v18  ;;  %v692_v41 = vshll.u32 %v3203_v40, %v680_v18 }
  0xdb   : > { %v474_v1 = vand.u32 2147483647, %v473_v10  ;;  %v612_v33 = vshll.u32 %v611_v25, 30  ;;  %v684_v44 = vshrl.u32 %v3201_v36, %v681_v26  ;;  %v687_v12 = vshrl.u32 %v3202_v38, %v681_v26 }
  0xdc   : > { %v690_v47 = vshrl.u32 %v3203_v40, %v681_v26  ;;  %v693_v51 = vshrl.u32 %v3204_v43, %v681_v26  ;;  %v695_v50 = vshll.u32 %v3204_v43, %v680_v18  ;;  %v696_v53 = vshrl.u32 %v3205_v52, %v681_v26 }
  0xdd   : > { %v477_v21 = vmul.f32 %v476_v20, %v474_v1  ;;  %v3464_v48 = vsub.s32 %v609_v9, %v612_v33  ;;  %v3004_v61 = vadd.s32 4294967169, %v825_v31  ;;  %v635_v63 = vsub.s32 4, %v611_v25 }
  0xde   : > { %v685_v0 = vor.u32 %v684_v44, %v683_v30  ;;  %v688_v2 = vor.u32 %v687_v12, %v686_v35  ;;  %v691_v59 = vor.u32 %v690_v47, %v689_v37  ;;  %v694_v3 = vor.u32 %v693_v51, %v692_v41 }
  0xdf   : > { %v478_v32 = vxor.u32 2147483648, %v477_v21  ;;  %vm614_vm12 = vcmp.lt.s32.totalorder %v3464_v48, 0  ;;  %v615_v60 = vsub.s32 0, %v3464_v48  ;;  %v697_v4 = vor.u32 %v696_v53, %v695_v50 }
  0xe0   : > { %vm698_vm13 = vcmp.lt.s32.totalorder %v3455_v22, 1  ;;  %vm701_vm14 = vcmp.lt.s32.totalorder %v3455_v22, 4  ;;  %v3491_v55 = vsel %vm513_vm11, %v635_v63, %v611_v25  ;;  %v682_v8 = vshrl.u32 %v3200_v34, %v681_v26 }
  0xe1   : > { %v479_v56 = vsel %vm358_vm1, %v478_v32, %v477_v21  ;;  %v616_v5 = vsel %vm614_vm12, %v615_v60, %v3464_v48  ;;  %v3496_v9 = vand.u32 8388607, %v821_v28  ;;  %v3498_v62 = vadd.s32 1, %v3004_v61 }
  0xe2   : > { %v3480_v13 = vsel %vm3417_vm4, %v3313_v19, %v479_v56  ;;  %v617_v7 = vclz %v616_v5  ;;  %vm3502_vm15 = vcmp.le.f32.partialorder %v511_v46, 0.7853982  ;;  %vm700_vm0 = vcmp.lt.s32.totalorder %v3455_v22, 3 }
  0xe3   : > { %v484_v58 = vmul.f32 %v3480_v13, %v3480_v13  ;;  %vm699_vm1 = vcmp.lt.s32.totalorder %v3455_v22, 2  ;;  %v706_v18 = vsel %vm698_vm13, %v685_v0, %v688_v2  ;;  %v707_v1 = vsel %vm701_vm14, %v694_v3, 920167782 }
  0xe4   : > { %v2999_v16 = vadd.s32 4294967294, %v617_v7  ;;  %v711_v20 = vsel %vm701_vm14, %v697_v4, 1326507024  ;;  %v710_v46 = vsel %vm698_vm13, %v688_v2, %v691_v59  ;;  %v703_v30 = vsel %vm701_vm14, %v691_v59, 2102212464 }
  0xe5   : > { %v485_v14 = vmul.f32 -0.001358992, %v484_v58  ;;  %v492_v6 = vmul.f32 -0.00019511016, %v484_v58  ;;  %v708_v31 = vsel %vm700_vm0, %v691_v59, %v707_v1  ;;  %v712_v33 = vsel %vm700_vm0, %v694_v3, %v711_v20 }
  0xe6   : > { %vm3000_vm2 = vcmp.lt.s32.totalorder %v2999_v16, 0  ;;  %vm506_vm3 = vcmp.eq.s32.totalorder %v3447_v23, 2  ;;  %v702_v32 = vsel %vm698_vm13, %v682_v8, %v685_v0  ;;  %vm503_vm4 = vcmp.eq.s32.totalorder %v3447_v23, 0 }
  0xe7   : > { %v486_v10 = vadd.f32 0.041655596, %v485_v14  ;;  %v493_v11 = vadd.f32 0.008332121, %v492_v6  ;;  %v620_v21 = vsel %vm3000_vm2, 0, %v2999_v16  ;;  %v709_v47 = vsel %vm699_vm1, %v706_v18, %v708_v31 }
  0xe8   : > { %v621_v41 = vsub.s32 32, %v620_v21  ;;  %v622_v44 = vshll.u32 %v3464_v48, %v620_v21  ;;  %v625_v12 = vsub.s32 4294967266, %v620_v21  ;;  %v713_v51 = vsel %vm699_vm1, %v710_v46, %v712_v33 }
  0xe9   : > { %v487_v25 = vmul.f32 %v486_v10, %v484_v58  ;;  %v494_v26 = vmul.f32 %v493_v11, %v484_v58  ;;  %vm502_vm5 = vcmp.lt.s32.totalorder %v3447_v23, 2  ;;  %v717_v61 = vand.u32 65535, %v713_v51 }
  0xea   : > { %v623_v56 = vshrl.u32 %v3450_v24, %v621_v41  ;;  %vm499_vm6 = vweird.f32 %v3313_v19  ;;  %v626_v60 = vadd.s32 127, %v625_v12  ;;  %v704_v48 = vsel %vm700_vm0, %v688_v2, %v703_v30 }
  0xeb   : > { %v488_v35 = vadd.f32 -0.4999988, %v487_v25  ;;  %v495_v37 = vadd.f32 -0.16666654, %v494_v26  ;;  %v718_v63 = vshrl.u32 %v713_v51, 16  ;;  %v739_v0 = vand.u32 65535, %v709_v47 }
  0xec   : > { %v624_v3 = vor.u32 %v623_v56, %v622_v44  ;;  %v740_v4 = vshrl.u32 %v709_v47, 16  ;;  %v638_v24 = vsel %vm3502_vm15, 0, %v3491_v55  ;;  %v721_v6 = vmul.u32 %v717_v61, %v3475_v49 }
  0xed   : > { %v489_v50 = vmul.f32 %v488_v35, %v484_v58  ;;  %v496_v53 = vmul.f32 %v495_v37, %v484_v58  ;;  %v627_v58 = vshll.u32 %v626_v60, 23  ;;  %v720_v14 = vmul.u32 %v718_v63, %v3472_v57 }
  0xee   : > { %v3545_v8 = vsel %vm699_vm1, %v702_v32, %v704_v48  ;;  %v719_v10 = vmul.u32 %v717_v61, %v3472_v57  ;;  %v631_v16 = vcvt.s32.f32 %v624_v3  ;;  %v722_v18 = vmul.u32 %v718_v63, %v3475_v49 }
  0xef   : > { %v490_v59 = vadd.f32 1.0, %v489_v50  ;;  %v497_v5 = vadd.f32 1.0, %v496_v53  ;;  %v628_v11 = vor.u32 4788187, %v627_v58  ;;  %v723_v55 = vshll.u32 %v720_v14, 16 }
  0xf0   : > { %v725_v20 = vshll.u32 %v721_v6, 16  ;;  %v741_v25 = vmul.u32 %v739_v0, %v3472_v57  ;;  %v743_v31 = vmul.u32 %v739_v0, %v3475_v49  ;;  %v724_v32 = vshrl.u32 %v720_v14, 16 }
  0xf1   : > { %v498_v7 = vmul.f32 %v497_v5, %v3480_v13  ;;  %v507_v2 = vxor.u32 2147483648, %v490_v59  ;;  %v742_v13 = vmul.u32 %v740_v4, %v3472_v57  ;;  %v629_v26 = vand.u32 2147483647, %v628_v11 }
  0xf2   : > { %vm727_vm7 = vc.u32 %v719_v10, %v723_v55  ;;  %v729_v46 = vadd.s32 %v723_v55, %v719_v10  ;;  %v726_v44 = vshrl.u32 %v721_v6, 16  ;;  %v744_v50 = vmul.u32 %v740_v4, %v3475_v49 }
  0xf3   : > { %v504_v1 = vxor.u32 2147483648, %v498_v7  ;;  %v508_v22 = vsel %vm506_vm3, %v507_v2, %v498_v7  ;;  %v728_v30 = vsel %vm727_vm7, 1, %v3206_v39  ;;  %v745_v33 = vshll.u32 %v742_v13, 16 }
  0xf4   : > { %v632_v37 = vmul.f32 %v631_v16, %v629_v26  ;;  %v730_v41 = vadd.s32 %v728_v30, %v722_v18  ;;  %vm731_vm8 = vc.u32 %v729_v46, %v725_v20  ;;  %v747_v23 = vshll.u32 %v743_v31, 16 }
  0xf5   : > { %v505_v21 = vsel %vm503_vm4, %v490_v59, %v504_v1  ;;  %v732_v12 = vsel %vm731_vm8, 1, %v3206_v39  ;;  %vm749_vm9 = vc.u32 %v741_v25, %v745_v33  ;;  %v751_v56 = vadd.s32 %v745_v33, %v741_v25 }
  0xf6   : > { %v509_v35 = vsel %vm502_vm5, %v505_v21, %v508_v22  ;;  %v633_v47 = vxor.u32 2147483648, %v632_v37  ;;  %v734_v51 = vadd.s32 %v732_v12, %v730_v41  ;;  %v750_v53 = vsel %vm749_vm9, 1, %v3206_v39 }
  0xf7   : > { %v510_v57 = vsel %vm499_vm6, nan, %v509_v35  ;;  %vm832_vm10 = vcmp.gt.s32.totalorder %v3498_v62, 0  ;;  %v752_v60 = vadd.s32 %v750_v53, %v744_v50  ;;  %v655_v63 = vadd.s32 3, %v638_v24  ;;  %v320_v35 = vpop.f32.mrf.mxu1 }
  0xf8   : > { %2836 = vst [vmem:[%s3565_s10] sm:$0xff] %v510_v57  ;;  %v634_v19 = vsel %vm513_vm11, %v633_v47, %v632_v37  ;;  %v735_v61 = vadd.s32 %v734_v51, %v724_v32  ;;  %v833_v48 = vsel %vm832_vm10, %v3498_v62, 0  ;;  %vm753_vm12 = vc.u32 %v751_v56, %v747_v23 }
  0xf9   : > { %v637_v49 = vsel %vm3502_vm15, %v3320_v27, %v634_v19  ;;  %v829_v0 = vor.u32 8388608, %v3496_v9  ;;  %v754_v3 = vsel %vm753_vm12, 1, %v3206_v39  ;;  %v835_v4 = vand.u32 31, %v833_v48 }
  0xfa   : > { %v639_v59 = vmul.f32 %v637_v49, %v637_v49  ;;  %v3577_v5 = vadd.s32 %v735_v61, %v726_v44  ;;  %v746_v58 = vshrl.u32 %v742_v13, 16  ;;  %v748_v14 = vshrl.u32 %v743_v31, 16 }
  0xfb   : > { %v756_v6 = vadd.s32 %v754_v3, %v752_v60  ;;  %v759_v62 = vmul.u32 %v3452_v29, %v3545_v8  ;;  %v3582_v15 = vadd.s32 %v751_v56, %v747_v23  ;;  %v3584_v24 = vshrl.u32 %v833_v48, 5 }
  0xfc   : > { %v640_v7 = vmul.f32 -0.001358992, %v639_v59  ;;  %v647_v2 = vmul.f32 -0.00019511016, %v639_v59  ;;  %v836_v9 = vsub.s32 32, %v835_v4  ;;  %v838_v11 = vshll.u32 %v3200_v34, %v835_v4 }
  0xfd   : > { %v757_v10 = vadd.s32 %v756_v6, %v746_v58  ;;  %v841_v16 = vshll.u32 %v3201_v36, %v835_v4  ;;  %vm761_vm11 = vc.u32 %v3577_v5, %v3582_v15  ;;  %v847_v1 = vshll.u32 %v3203_v40, %v835_v4 }
  0xfe   : > { %v641_v18 = vadd.f32 0.041655596, %v640_v7  ;;  %v648_v55 = vadd.f32 0.008332121, %v647_v2  ;;  %v839_v8 = vshrl.u32 %v3201_v36, %v836_v9  ;;  %v842_v20 = vshrl.u32 %v3202_v38, %v836_v9 }
  0xff   : > { %v758_v29 = vadd.s32 %v757_v10, %v748_v14  ;;  %v844_v25 = vshll.u32 %v3202_v38, %v835_v4  ;;  %v845_v26 = vshrl.u32 %v3203_v40, %v836_v9  ;;  %v848_v46 = vshrl.u32 %v3204_v43, %v836_v9 }
 0x100   : > { %v642_v13 = vmul.f32 %v641_v18, %v639_v59  ;;  %v649_v22 = vmul.f32 %v648_v55, %v639_v59  ;;  %v3596_v30 = vor.u32 %v839_v8, %v838_v11  ;;  %v3598_v31 = vor.u32 %v842_v20, %v841_v16 }
 0x101   : > { %v762_v21 = vadd.s32 1, %v758_v29  ;;  %v850_v33 = vshll.u32 %v3204_v43, %v835_v4  ;;  %v849_v57 = vor.u32 %v848_v46, %v847_v1  ;;  %vm853_vm13 = vcmp.lt.s32.totalorder %v3584_v24, 1  ;;  %v323_v1 = vpop.f32.mrf.mxu1 }
 0x102   : > { %v643_v37 = vadd.f32 -0.4999988, %v642_v13  ;;  %v650_v41 = vadd.f32 -0.16666654, %v649_v22  ;;  %v846_v44 = vor.u32 %v845_v26, %v844_v25  ;;  %v851_v12 = vshrl.u32 %v3205_v52, %v836_v9 }
 0x103   : > { %v763_v32 = vsel %vm761_vm11, %v762_v21, %v758_v29  ;;  %vm856_vm14 = vcmp.lt.s32.totalorder %v3584_v24, 4  ;;  %vm855_vm15 = vcmp.lt.s32.totalorder %v3584_v24, 3  ;;  %v656_v23 = vand.u32 3, %v655_v63 }
 0x104   : > { %v644_v47 = vmul.f32 %v643_v37, %v639_v59  ;;  %v651_v51 = vmul.f32 %v650_v41, %v639_v59  ;;  %v764_v50 = vadd.s32 %v763_v32, %v759_v62  ;;  %v852_v53 = vor.u32 %v851_v12, %v850_v33 }
 0x105   : > { %v861_v56 = vsel %vm853_vm13, %v3596_v30, %v3598_v31  ;;  %v862_v19 = vsel %vm856_vm14, %v849_v57, 920167782  ;;  %v3614_v3 = vshll.u32 %v829_v0, 8  ;;  %vm854_vm0 = vcmp.lt.s32.totalorder %v3584_v24, 2 }
 0x106   : > { %v645_v61 = vadd.f32 1.0, %v644_v47  ;;  %v652_v60 = vadd.f32 1.0, %v651_v51  ;;  %v765_v48 = vadd.s32 536870912, %v764_v50  ;;  %v863_v59 = vsel %vm855_vm15, %v846_v44, %v862_v19 }
 0x107   : > { %v865_v63 = vsel %vm853_vm13, %v3598_v31, %v846_v44  ;;  %v866_v4 = vsel %vm856_vm14, %v852_v53, 1326507024  ;;  %v864_v0 = vsel %vm854_vm0, %v861_v56, %v863_v59  ;;  %vm657_vm1 = vcmp.lt.s32.totalorder %v656_v23, 2 }
 0x108   : > { %v653_v58 = vmul.f32 %v652_v60, %v637_v49  ;;  %v662_v14 = vxor.u32 2147483648, %v645_v61  ;;  %v3624_v6 = vshrl.u32 %v765_v48, 30  ;;  %vm658_vm2 = vcmp.eq.s32.totalorder %v656_v23, 0 }
 0x109   : > { %v867_v62 = vsel %vm855_vm15, %v849_v57, %v866_v4  ;;  %v895_v7 = vshrl.u32 %v864_v0, 16  ;;  %vm661_vm3 = vcmp.eq.s32.totalorder %v656_v23, 2  ;;  %v870_v11 = vand.u32 65535, %v3614_v3 }
 0x10a   : > { %v659_v2 = vxor.u32 2147483648, %v653_v58  ;;  %v767_v10 = vshll.u32 %v3624_v6, 30  ;;  %v663_v16 = vsel %vm661_vm3, %v662_v14, %v653_v58  ;;  %v837_v49 = vshrl.u32 %v3200_v34, %v836_v9 }
 0x10b   : > { %v868_v18 = vsel %vm854_vm0, %v865_v63, %v867_v62  ;;  %v894_v55 = vand.u32 65535, %v864_v0  ;;  %v3635_v25 = vmul.u32 %v895_v7, %v870_v11  ;;  %vm654_vm4 = vweird.f32 %v3320_v27 }
 0x10c   : > { %v660_v29 = vsel %vm658_vm2, %v645_v61, %v659_v2  ;;  %v768_v8 = vsub.s32 %v764_v50, %v767_v10  ;;  %v872_v20 = vand.u32 65535, %v868_v18  ;;  %v871_v22 = vshrl.u32 %v3614_v3, 16 }
 0x10d   : > { %v664_v13 = vsel %vm657_vm1, %v660_v29, %v663_v16  ;;  %v873_v26 = vshrl.u32 %v868_v18, 16  ;;  %v3641_v9 = vadd.f32 %v3310_v17, %v320_v35  ;;  %v3644_v33 = vadd.f32 %v3310_v17, %v323_v1 }
 0x10e   : > { %v665_v46 = vsel %vm654_vm4, nan, %v664_v13  ;;  %vm769_vm5 = vcmp.lt.s32.totalorder %v768_v8, 0  ;;  %v770_v21 = vsub.s32 0, %v768_v8  ;;  %v760_v37 = vadd.s32 %v3582_v15, %v3577_v5 }
 0x10f   : > { %v875_v41 = vmul.u32 %v873_v26, %v870_v11  ;;  %v876_v57 = vmul.u32 %v872_v20, %v871_v22  ;;  %2837 = vst [vmem:[%s3565_s10 + $0x8] sm:$0xff] %v665_v46  ;;  %v857_v32 = vsel %vm853_vm13, %v837_v49, %v3596_v30  ;;  %v898_v12 = vmul.u32 %v894_v55, %v871_v22 }
 0x110   : > { %v771_v27 = vsel %vm769_vm5, %v770_v21, %v768_v8  ;;  %v900_v35 = vshll.u32 %v3635_v25, 16  ;;  %v858_v51 = vsel %vm856_vm14, %v846_v44, 2102212464  ;;  %v874_v17 = vmul.u32 %v872_v20, %v870_v11 }
 0x111   : > { %v772_v47 = vclz %v771_v27  ;;  %v878_v50 = vshll.u32 %v875_v41, 16  ;;  %v790_v23 = vsub.s32 4, %v3624_v6  ;;  %v877_v5 = vmul.u32 %v873_v26, %v871_v22 }
 0x112   : > { %v896_v15 = vmul.u32 %v894_v55, %v870_v11  ;;  %v899_v53 = vmul.u32 %v895_v7, %v871_v22  ;;  %vm668_vm6 = vcmp.lt.s32.totalorder %v3408_v54, 0  ;;  %v880_v19 = vshll.u32 %v876_v57, 16 }
 0x113   : > { %v3002_v56 = vadd.s32 4294967294, %v772_v47  ;;  %vm882_vm7 = vc.u32 %v874_v17, %v878_v50  ;;  %v884_v30 = vadd.s32 %v878_v50, %v874_v17  ;;  %v902_v60 = vshll.u32 %v898_v12, 16 }
 0x114   : > { %v883_v61 = vsel %vm882_vm7, 1, %v3206_v39  ;;  %vm904_vm8 = vc.u32 %v896_v15, %v900_v35  ;;  %v906_v48 = vadd.s32 %v900_v35, %v896_v15  ;;  %v879_v62 = vshrl.u32 %v875_v41, 16 }
 0x115   : > { %vm3003_vm9 = vcmp.lt.s32.totalorder %v3002_v56, 0  ;;  %v885_v44 = vadd.s32 %v883_v61, %v877_v5  ;;  %vm886_vm10 = vc.u32 %v884_v30, %v880_v19  ;;  %v905_v59 = vsel %vm904_vm8, 1, %v3206_v39 }
 0x116   : > { %v775_v63 = vsel %vm3003_vm9, 0, %v3002_v56  ;;  %v887_v4 = vsel %vm886_vm10, 1, %v3206_v39  ;;  %v907_v58 = vadd.s32 %v905_v59, %v899_v53  ;;  %vm908_vm12 = vc.u32 %v906_v48, %v902_v60 }
 0x117   : > { %v776_v14 = vsub.s32 32, %v775_v63  ;;  %v780_v0 = vsub.s32 4294967266, %v775_v63  ;;  %v889_v7 = vadd.s32 %v887_v4, %v885_v44  ;;  %v777_v2 = vshll.u32 %v768_v8, %v775_v63 }
 0x118   : > { %v881_v10 = vshrl.u32 %v876_v57, 16  ;;  %v901_v11 = vshrl.u32 %v3635_v25, 16  ;;  %v909_v16 = vsel %vm908_vm12, 1, %v3206_v39  ;;  %v859_v29 = vsel %vm855_vm15, %v3598_v31, %v858_v51 }
 0x119   : > { %v778_v49 = vshrl.u32 %v760_v37, %v776_v14  ;;  %v781_v18 = vadd.s32 127, %v780_v0  ;;  %v890_v55 = vadd.s32 %v889_v7, %v879_v62  ;;  %v911_v1 = vadd.s32 %v909_v16, %v907_v58 }
 0x11a   : > { %v903_v20 = vshrl.u32 %v898_v12, 16  ;;  %v976_v13 = vand.u32 2147483647, %v3641_v9  ;;  %v979_v22 = vand.u32 2139095040, %v3641_v9  ;;  %v791_v25 = vsel %vm668_vm6, %v790_v23, %v3624_v6 }
 0x11b   : > { %v779_v26 = vor.u32 %v778_v49, %v777_v2  ;;  %v782_v8 = vshll.u32 %v781_v18, 23  ;;  %v891_v46 = vadd.s32 %v890_v55, %v881_v10  ;;  %v912_v21 = vadd.s32 %v911_v1, %v901_v11 }
 0x11c   : > { %v910_v37 = vadd.s32 %v906_v48, %v902_v60  ;;  %v980_v41 = vshrl.u32 %v979_v22, 23  ;;  %v983_v57 = vand.u32 8388607, %v976_v13  ;;  %v860_v31 = vsel %vm854_vm0, %v857_v32, %v859_v29 }
 0x11d   : > { %v783_v27 = vor.u32 4788187, %v782_v8  ;;  %v913_v12 = vadd.s32 %v912_v21, %v903_v20  ;;  %vm3676_vm11 = vcmp.le.f32.partialorder %v666_v42, 0.7853982  ;;  %v786_v6 = vcvt.s32.f32 %v779_v26 }
 0x11e   : > { %vm916_vm13 = vc.u32 %v891_v46, %v910_v37  ;;  %v3007_v47 = vadd.s32 4294967169, %v980_v41  ;;  %v793_v17 = vsel %vm3676_vm11, 0, %v791_v25  ;;  %v914_v23 = vmul.u32 %v3614_v3, %v860_v31 }
 0x11f   : > { %v784_v51 = vand.u32 2147483647, %v783_v27  ;;  %v917_v50 = vadd.s32 1, %v913_v12  ;;  %v984_v5 = vor.u32 8388608, %v983_v57  ;;  %v1134_v32 = vand.u32 2139095040, %v3644_v33 }
 0x120   : > { %v986_v24 = vadd.s32 1, %v3007_v47  ;;  %v1131_v42 = vand.u32 2147483647, %v3644_v33  ;;  %v810_v30 = vadd.s32 3, %v793_v17  ;;  %v3702_v62 = vadd.s32 %v910_v37, %v891_v46 }
 0x121   : > { %v787_v15 = vmul.f32 %v786_v6, %v784_v51  ;;  %v918_v53 = vsel %vm916_vm13, %v917_v50, %v913_v12  ;;  %v3685_v44 = vshll.u32 %v984_v5, 8  ;;  %v1135_v59 = vshrl.u32 %v1134_v32, 23 }
 0x122   : > { %v919_v56 = vadd.s32 %v918_v53, %v914_v23  ;;  %vm987_vm14 = vcmp.gt.s32.totalorder %v986_v24, 0  ;;  %v3691_v63 = vand.u32 8388607, %v1131_v42  ;;  %v3700_v0 = vand.u32 3, %v810_v30 }
 0x123   : > { %v788_v19 = vxor.u32 2147483648, %v787_v15  ;;  %v988_v61 = vsel %vm987_vm14, %v986_v24, 0  ;;  %v3705_v10 = vand.u32 65535, %v3685_v44  ;;  %v3708_v11 = vshrl.u32 %v3685_v44, 16 }
 0x124   : > { %v920_v60 = vadd.s32 536870912, %v919_v56  ;;  %v990_v48 = vand.u32 31, %v988_v61  ;;  %v3010_v16 = vadd.s32 4294967169, %v1135_v59  ;;  %vm823_vm15 = vcmp.lt.s32.totalorder %v3424_v45, 0 }
 0x125   : > { %v789_v3 = vsel %vm668_vm6, %v788_v19, %v787_v15  ;;  %v1139_v1 = vor.u32 8388608, %v3691_v63  ;;  %v3724_v12 = vshrl.u32 %v988_v61, 5  ;;  %vm813_vm1 = vcmp.eq.s32.totalorder %v3700_v0, 0 }
 0x126   : > { %v3696_v4 = vsel %vm3676_vm11, %v3408_v54, %v789_v3  ;;  %v921_v58 = vshrl.u32 %v920_v60, 30  ;;  %v991_v7 = vsub.s32 32, %v990_v48  ;;  %v993_v55 = vshll.u32 %v3200_v34, %v990_v48 }
 0x127   : > { %v794_v14 = vmul.f32 %v3696_v4, %v3696_v4  ;;  %v996_v20 = vshll.u32 %v3201_v36, %v990_v48  ;;  %v999_v22 = vshll.u32 %v3202_v38, %v990_v48  ;;  %v1002_v26 = vshll.u32 %v3203_v40, %v990_v48 }
 0x128   : > { %v922_v2 = vshll.u32 %v921_v58, 30  ;;  %v994_v21 = vshrl.u32 %v3201_v36, %v991_v7  ;;  %v997_v25 = vshrl.u32 %v3202_v38, %v991_v7  ;;  %v1000_v41 = vshrl.u32 %v3203_v40, %v991_v7 }
 0x129   : > { %v795_v49 = vmul.f32 -0.001358992, %v794_v14  ;;  %v802_v18 = vmul.f32 -0.00019511016, %v794_v14  ;;  %v1003_v57 = vshrl.u32 %v3204_v43, %v991_v7  ;;  %v1005_v35 = vshll.u32 %v3204_v43, %v990_v48 }
 0x12a   : > { %v3713_v29 = vsub.s32 %v919_v56, %v922_v2  ;;  %v945_v51 = vsub.s32 4, %v921_v58  ;;  %v1006_v6 = vshrl.u32 %v3205_v52, %v991_v7  ;;  %v3729_v17 = vadd.s32 1, %v3010_v16 }
 0x12b   : > { %v796_v8 = vadd.f32 0.041655596, %v795_v49  ;;  %v803_v46 = vadd.f32 0.008332121, %v802_v18  ;;  %v995_v24 = vor.u32 %v994_v21, %v993_v55  ;;  %vm816_vm2 = vcmp.eq.s32.totalorder %v3700_v0, 2 }
 0x12c   : > { %vm924_vm0 = vcmp.lt.s32.totalorder %v3713_v29, 0  ;;  %v925_v37 = vsub.s32 0, %v3713_v29  ;;  %v998_v32 = vor.u32 %v997_v25, %v996_v20  ;;  %v1001_v15 = vor.u32 %v1000_v41, %v999_v22 }
 0x12d   : > { %v797_v27 = vmul.f32 %v796_v8, %v794_v14  ;;  %v804_v31 = vmul.f32 %v803_v46, %v794_v14  ;;  %v1004_v53 = vor.u32 %v1003_v57, %v1002_v26  ;;  %v1007_v56 = vor.u32 %v1006_v6, %v1005_v35 }
 0x12e   : > { %v926_v47 = vsel %vm924_vm0, %v925_v37, %v3713_v29  ;;  %vm812_vm3 = vcmp.lt.s32.totalorder %v3700_v0, 2  ;;  %vm1008_vm4 = vcmp.lt.s32.totalorder %v3724_v12, 1  ;;  %vm809_vm5 = vweird.f32 %v3408_v54 }
 0x12f   : > { %v798_v50 = vadd.f32 -0.4999988, %v797_v27  ;;  %v805_v23 = vadd.f32 -0.16666654, %v804_v31  ;;  %v927_v5 = vclz %v926_v47  ;;  %vm3738_vm6 = vcmp.le.f32.partialorder %v821_v28, 0.7853982 }
 0x130   : > { %v3744_v48 = vsel %vm823_vm15, %v945_v51, %v921_v58  ;;  %v992_v59 = vshrl.u32 %v3200_v34, %v991_v7  ;;  %vm1009_vm7 = vcmp.lt.s32.totalorder %v3724_v12, 2  ;;  %vm1011_vm8 = vcmp.lt.s32.totalorder %v3724_v12, 4 }
 0x131   : > { %v799_v19 = vmul.f32 %v798_v50, %v794_v14  ;;  %v806_v30 = vmul.f32 %v805_v23, %v794_v14  ;;  %v3005_v61 = vadd.s32 4294967294, %v927_v5  ;;  %vm1010_vm10 = vcmp.lt.s32.totalorder %v3724_v12, 3 }
 0x132   : > { %v1016_v28 = vsel %vm1008_vm4, %v995_v24, %v998_v32  ;;  %v1017_v16 = vsel %vm1011_vm8, %v1004_v53, 920167782  ;;  %v1021_v49 = vsel %vm1011_vm8, %v1007_v56, 1326507024  ;;  %v1020_v7 = vsel %vm1008_vm4, %v998_v32, %v1001_v15 }
 0x133   : > { %v800_v3 = vadd.f32 1.0, %v799_v19  ;;  %v807_v14 = vadd.f32 1.0, %v806_v30  ;;  %vm3006_vm9 = vcmp.lt.s32.totalorder %v3005_v61, 0  ;;  %v1013_v22 = vsel %vm1011_vm8, %v1001_v15, 2102212464 }
 0x134   : > { %v930_v2 = vsel %vm3006_vm9, 0, %v3005_v61  ;;  %v1018_v26 = vsel %vm1010_vm10, %v1001_v15, %v1017_v16  ;;  %v1022_v8 = vsel %vm1010_vm10, %v1004_v53, %v1021_v49  ;;  %v948_v5 = vsel %vm3738_vm6, 0, %v3744_v48 }
 0x135   : > { %v808_v58 = vmul.f32 %v807_v14, %v3696_v4  ;;  %v817_v18 = vxor.u32 2147483648, %v800_v3  ;;  %v931_v55 = vsub.s32 32, %v930_v2  ;;  %v935_v20 = vsub.s32 4294967266, %v930_v2 }
 0x136   : > { %v932_v21 = vshll.u32 %v3713_v29, %v930_v2  ;;  %v1019_v4 = vsel %vm1009_vm7, %v1016_v28, %v1018_v26  ;;  %v1023_v41 = vsel %vm1009_vm7, %v1020_v7, %v1022_v8  ;;  %v1012_v15 = vsel %vm1008_vm4, %v992_v59, %v995_v24 }
 0x137   : > { %v814_v46 = vxor.u32 2147483648, %v808_v58  ;;  %v933_v25 = vshrl.u32 %v3702_v62, %v931_v55  ;;  %v936_v37 = vadd.s32 127, %v935_v20  ;;  %v1049_v57 = vand.u32 65535, %v1019_v4 }
 0x138   : > { %v1050_v27 = vshrl.u32 %v1019_v4, 16  ;;  %v818_v35 = vsel %vm816_vm2, %v817_v18, %v808_v58  ;;  %v1027_v47 = vand.u32 65535, %v1023_v41  ;;  %v1028_v29 = vshrl.u32 %v1023_v41, 16 }
 0x139   : > { %v815_v31 = vsel %vm813_vm1, %v800_v3, %v814_v46  ;;  %v934_v51 = vor.u32 %v933_v25, %v932_v21  ;;  %v937_v6 = vshll.u32 %v936_v37, 23  ;;  %v1014_v0 = vsel %vm1010_vm10, %v998_v32, %v1013_v22 }
 0x13a   : > { %v819_v62 = vsel %vm812_vm3, %v815_v31, %v818_v35  ;;  %v1052_v50 = vmul.u32 %v1050_v27, %v3705_v10  ;;  %v1030_v53 = vmul.u32 %v1028_v29, %v3705_v10  ;;  %v1031_v19 = vmul.u32 %v1027_v47, %v3708_v11 }
 0x13b   : > { %v820_v23 = vsel %vm809_vm5, nan, %v819_v62  ;;  %v938_v56 = vor.u32 4788187, %v937_v6  ;;  %v1053_v30 = vmul.u32 %v1049_v57, %v3708_v11  ;;  %v1029_v54 = vmul.u32 %v1027_v47, %v3705_v10 }
 0x13c   : > { %2838 = vst [vmem:[%s3565_s10 + $0x10] sm:$0xff] %v820_v23  ;;  %v1033_v61 = vshll.u32 %v1030_v53, 16  ;;  %v1051_v3 = vmul.u32 %v1049_v57, %v3705_v10  ;;  %v1055_v48 = vshll.u32 %v1052_v50, 16  ;;  %v941_v2 = vcvt.s32.f32 %v934_v51 }
 0x13d   : > { %v939_v14 = vand.u32 2147483647, %v938_v56  ;;  %v1032_v24 = vmul.u32 %v1028_v29, %v3708_v11  ;;  %v1054_v59 = vmul.u32 %v1050_v27, %v3708_v11  ;;  %v1035_v28 = vshll.u32 %v1031_v19, 16 }
 0x13e   : > { %vm1037_vm12 = vc.u32 %v1029_v54, %v1033_v61  ;;  %v1039_v32 = vadd.s32 %v1033_v61, %v1029_v54  ;;  %v1057_v16 = vshll.u32 %v1053_v30, 16  ;;  %vm1059_vm11 = vc.u32 %v1051_v3, %v1055_v48 }
 0x13f   : > { %v942_v49 = vmul.f32 %v941_v2, %v939_v14  ;;  %v1038_v58 = vsel %vm1037_vm12, 1, %v3206_v39  ;;  %v1061_v18 = vadd.s32 %v1055_v48, %v1051_v3  ;;  %v1015_v55 = vsel %vm1009_vm7, %v1012_v15, %v1014_v0 }
 0x140   : > { %v1040_v10 = vadd.s32 %v1038_v58, %v1032_v24  ;;  %vm1041_vm13 = vc.u32 %v1039_v32, %v1035_v28  ;;  %v1060_v7 = vsel %vm1059_vm11, 1, %v3206_v39  ;;  %v1034_v26 = vshrl.u32 %v1030_v53, 16 }
 0x141   : > { %v943_v20 = vxor.u32 2147483648, %v942_v49  ;;  %v1042_v22 = vsel %vm1041_vm13, 1, %v3206_v39  ;;  %v1062_v11 = vadd.s32 %v1060_v7, %v1054_v59  ;;  %vm1063_vm14 = vc.u32 %v1061_v18, %v1057_v16 }
 0x142   : > { %v1044_v8 = vadd.s32 %v1042_v22, %v1040_v10  ;;  %v1064_v46 = vsel %vm1063_vm14, 1, %v3206_v39  ;;  %vm1142_vm0 = vcmp.gt.s32.totalorder %v3729_v17, 0  ;;  %v1056_v12 = vshrl.u32 %v1052_v50, 16 }
 0x143   : > { %v944_v21 = vsel %vm823_vm15, %v943_v20, %v942_v49  ;;  %v1066_v25 = vadd.s32 %v1064_v46, %v1062_v11  ;;  %v1143_v4 = vsel %vm1142_vm0, %v3729_v17, 0  ;;  %v1036_v41 = vshrl.u32 %v1031_v19, 16 }
 0x144   : > { %v947_v37 = vsel %vm3738_vm6, %v3424_v45, %v944_v21  ;;  %v1045_v57 = vadd.s32 %v1044_v8, %v1034_v26  ;;  %v1145_v27 = vand.u32 31, %v1143_v4  ;;  %v965_v35 = vadd.s32 3, %v948_v5 }
 0x145   : > { %v949_v31 = vmul.f32 %v947_v37, %v947_v37  ;;  %v1058_v47 = vshrl.u32 %v1053_v30, 16  ;;  %v1067_v29 = vadd.s32 %v1066_v25, %v1056_v12  ;;  %v3804_v51 = vadd.s32 %v1061_v18, %v1057_v16 }
 0x146   : > { %v3802_v62 = vadd.s32 %v1045_v57, %v1036_v41  ;;  %v1069_v6 = vmul.u32 %v3685_v44, %v1015_v55  ;;  %v3807_v50 = vsub.s32 32, %v1145_v27  ;;  %v3809_v60 = vshrl.u32 %v1143_v4, 5 }
 0x147   : > { %v950_v17 = vmul.f32 -0.001358992, %v949_v31  ;;  %v957_v23 = vmul.f32 -0.00019511016, %v949_v31  ;;  %v1068_v15 = vadd.s32 %v1067_v29, %v1058_v47  ;;  %v1148_v5 = vshll.u32 %v3200_v34, %v1145_v27 }
 0x148   : > { %vm1071_vm15 = vc.u32 %v3802_v62, %v3804_v51  ;;  %v1149_v53 = vshrl.u32 %v3201_v36, %v3807_v50  ;;  %v1151_v56 = vshll.u32 %v3201_v36, %v1145_v27  ;;  %v1152_v30 = vshrl.u32 %v3202_v38, %v3807_v50 }
 0x149   : > { %v951_v0 = vadd.f32 0.041655596, %v950_v17  ;;  %v958_v19 = vadd.f32 0.008332121, %v957_v23  ;;  %v1072_v44 = vadd.s32 1, %v1068_v15  ;;  %v1154_v54 = vshll.u32 %v3202_v38, %v1145_v27 }
 0x14a   : > { %v1155_v61 = vshrl.u32 %v3203_v40, %v3807_v50  ;;  %v1157_v3 = vshll.u32 %v3203_v40, %v1145_v27  ;;  %v1158_v48 = vshrl.u32 %v3204_v43, %v3807_v50  ;;  %v966_v24 = vand.u32 3, %v965_v35 }
 0x14b   : > { %v952_v14 = vmul.f32 %v951_v0, %v949_v31  ;;  %v959_v2 = vmul.f32 %v958_v19, %v949_v31  ;;  %v1073_v59 = vsel %vm1071_vm15, %v1072_v44, %v1068_v15  ;;  %v3825_v32 = vor.u32 %v1149_v53, %v1148_v5  ;;  %v326_v5 = vpop.f32.mrf.mxu1 }
 0x14c   : > { %v1074_v28 = vadd.s32 %v1073_v59, %v1069_v6  ;;  %v1159_v16 = vor.u32 %v1158_v48, %v1157_v3  ;;  %v1160_v49 = vshll.u32 %v3204_v43, %v1145_v27  ;;  %v3828_v55 = vor.u32 %v1152_v30, %v1151_v56  ;;  %v3880_v59 = vld [vmem:[%s5174_s2] ss:$0 sm:$0xff] }
 0x14d   : > { %v953_v58 = vadd.f32 -0.4999988, %v952_v14  ;;  %v960_v18 = vadd.f32 -0.16666654, %v959_v2  ;;  %v1161_v10 = vshrl.u32 %v3205_v52, %v3807_v50  ;;  %v3832_v20 = vor.u32 %v1155_v61, %v1154_v54 }
 0x14e   : > { %v1075_v7 = vadd.s32 536870912, %v1074_v28  ;;  %vm1163_vm1 = vcmp.lt.s32.totalorder %v3809_v60, 1  ;;  %vm1166_vm2 = vcmp.lt.s32.totalorder %v3809_v60, 4  ;;  %vm1165_vm3 = vcmp.lt.s32.totalorder %v3809_v60, 3 }
 0x14f   : > { %v954_v22 = vmul.f32 %v953_v58, %v949_v31  ;;  %v961_v11 = vmul.f32 %v960_v18, %v949_v31  ;;  %v1162_v26 = vor.u32 %v1161_v10, %v1160_v49  ;;  %v1172_v46 = vsel %vm1166_vm2, %v1159_v16, 920167782 }
 0x150   : > { %v3837_v8 = vshrl.u32 %v1075_v7, 30  ;;  %vm964_vm4 = vweird.f32 %v3424_v45  ;;  %vm967_vm5 = vcmp.lt.s32.totalorder %v966_v24, 2  ;;  %v1171_v4 = vsel %vm1163_vm1, %v3825_v32, %v3828_v55 }
 0x151   : > { %v955_v21 = vadd.f32 1.0, %v954_v22  ;;  %v962_v12 = vadd.f32 1.0, %v961_v11  ;;  %v1173_v41 = vsel %vm1165_vm3, %v3832_v20, %v1172_v46  ;;  %v3852_v57 = vshll.u32 %v1139_v1, 8 }
 0x152   : > { %v1077_v25 = vshll.u32 %v3837_v8, 30  ;;  %v1175_v35 = vsel %vm1163_vm1, %v3828_v55, %v3832_v20  ;;  %v1176_v47 = vsel %vm1166_vm2, %v1162_v26, 1326507024  ;;  %vm968_vm6 = vcmp.eq.s32.totalorder %v966_v24, 0 }
 0x153   : > { %v963_v27 = vmul.f32 %v962_v12, %v947_v37  ;;  %v972_v31 = vxor.u32 2147483648, %v955_v21  ;;  %vm1164_vm7 = vcmp.lt.s32.totalorder %v3809_v60, 2  ;;  %v1177_v63 = vsel %vm1165_vm3, %v1159_v16, %v1176_v47 }
 0x154   : > { %v3860_v29 = vsub.s32 %v1074_v28, %v1077_v25  ;;  %vm971_vm8 = vcmp.eq.s32.totalorder %v966_v24, 2  ;;  %v1174_v37 = vsel %vm1164_vm7, %v1171_v4, %v1173_v41  ;;  %v1178_v6 = vsel %vm1164_vm7, %v1175_v35, %v1177_v63 }
 0x155   : > { %v969_v1 = vxor.u32 2147483648, %v963_v27  ;;  %v1180_v23 = vand.u32 65535, %v3852_v57  ;;  %v1182_v15 = vand.u32 65535, %v1178_v6  ;;  %v973_v56 = vsel %vm971_vm8, %v972_v31, %v963_v27 }
 0x156   : > { %vm1079_vm9 = vcmp.lt.s32.totalorder %v3860_v29, 0  ;;  %v1080_v17 = vsub.s32 0, %v3860_v29  ;;  %v1181_v0 = vshrl.u32 %v3852_v57, 16  ;;  %v1183_v19 = vshrl.u32 %v1178_v6, 16 }
 0x157   : > { %v970_v53 = vsel %vm968_vm6, %v955_v21, %v969_v1  ;;  %v1204_v54 = vand.u32 65535, %v1174_v37  ;;  %v1205_v61 = vshrl.u32 %v1174_v37, 16  ;;  %v3883_v28 = vadd.f32 %v3880_v59, %v326_v5 }
 0x158   : > { %v974_v44 = vsel %vm967_vm5, %v970_v53, %v973_v56  ;;  %v1081_v30 = vsel %vm1079_vm9, %v1080_v17, %v3860_v29  ;;  %v1185_v14 = vmul.u32 %v1183_v19, %v1180_v23  ;;  %v1186_v2 = vmul.u32 %v1182_v15, %v1181_v0 }
 0x159   : > { %v975_v3 = vsel %vm964_vm4, nan, %v974_v44  ;;  %v1082_v48 = vclz %v1081_v30  ;;  %v1070_v24 = vadd.s32 %v3804_v51, %v3802_v62  ;;  %vm978_vm10 = vcmp.lt.s32.totalorder %v3641_v9, 0 }
 0x15a   : > { %2839 = vst [vmem:[%s3565_s10 + $0x18] sm:$0xff] %v975_v3  ;;  %v1147_v45 = vshrl.u32 %v3200_v34, %v3807_v50  ;;  %v1184_v49 = vmul.u32 %v1182_v15, %v1180_v23  ;;  %v1188_v58 = vshll.u32 %v1185_v14, 16  ;;  %v1100_v18 = vsub.s32 4, %v3837_v8 }
 0x15b   : > { %v3008_v16 = vadd.s32 4294967294, %v1082_v48  ;;  %v1187_v10 = vmul.u32 %v1183_v19, %v1181_v0  ;;  %v1206_v7 = vmul.u32 %v1204_v54, %v1180_v23  ;;  %v1207_v22 = vmul.u32 %v1205_v61, %v1180_v23 }
 0x15c   : > { %v1190_v11 = vshll.u32 %v1186_v2, 16  ;;  %vm1192_vm11 = vc.u32 %v1184_v49, %v1188_v58  ;;  %v1194_v26 = vadd.s32 %v1188_v58, %v1184_v49  ;;  %v1208_v51 = vmul.u32 %v1204_v54, %v1181_v0 }
 0x15d   : > { %vm3009_vm12 = vcmp.lt.s32.totalorder %v3008_v16, 0  ;;  %v1193_v62 = vsel %vm1192_vm11, 1, %v3206_v39  ;;  %v1210_v21 = vshll.u32 %v1207_v22, 16  ;;  %v1189_v4 = vshrl.u32 %v1185_v14, 16 }
 0x15e   : > { %v1085_v46 = vsel %vm3009_vm12, 0, %v3008_v16  ;;  %v1195_v50 = vadd.s32 %v1193_v62, %v1187_v10  ;;  %vm1196_vm13 = vc.u32 %v1194_v26, %v1190_v11  ;;  %v1209_v27 = vmul.u32 %v1205_v61, %v1181_v0  ;;  %v332_v26 = vpop.f32.mrf.mxu2 }
 0x15f   : > { %v1086_v12 = vsub.s32 32, %v1085_v46  ;;  %v1090_v25 = vsub.s32 4294967266, %v1085_v46  ;;  %v1087_v41 = vshll.u32 %v3860_v29, %v1085_v46  ;;  %vm1214_vm14 = vc.u32 %v1206_v7, %v1210_v21 }
 0x160   : > { %v1197_v47 = vsel %vm1196_vm13, 1, %v3206_v39  ;;  %v1215_v63 = vsel %vm1214_vm14, 1, %v3206_v39  ;;  %v1212_v37 = vshll.u32 %v1208_v51, 16  ;;  %v1216_v6 = vadd.s32 %v1210_v21, %v1206_v7 }
 0x161   : > { %v1088_v31 = vshrl.u32 %v1070_v24, %v1086_v12  ;;  %v1091_v35 = vadd.s32 127, %v1090_v25  ;;  %v1199_v1 = vadd.s32 %v1197_v47, %v1195_v50  ;;  %v1217_v17 = vadd.s32 %v1215_v63, %v1209_v27 }
 0x162   : > { %vm3898_vm0 = vcmp.le.f32.partialorder %v976_v13, 0.7853982  ;;  %v1168_v5 = vsel %vm1166_vm2, %v3832_v20, 2102212464  ;;  %v1101_v53 = vsel %vm978_vm10, %v1100_v18, %v3837_v8  ;;  %vm1218_vm15 = vc.u32 %v1216_v6, %v1212_v37  ;;  %v329_v18 = vpop.f32.mrf.mxu1 }
 0x163   : > { %v1089_v29 = vor.u32 %v1088_v31, %v1087_v41  ;;  %v1092_v15 = vshll.u32 %v1091_v35, 23  ;;  %v1200_v56 = vadd.s32 %v1199_v1, %v1189_v4  ;;  %v1289_v0 = vand.u32 2139095040, %v3883_v28 }
 0x164   : > { %v1167_v13 = vsel %vm1163_vm1, %v1147_v45, %v3825_v32  ;;  %v1191_v44 = vshrl.u32 %v1186_v2, 16  ;;  %v1219_v30 = vsel %vm1218_vm15, 1, %v3206_v39  ;;  %v1169_v20 = vsel %vm1165_vm3, %v3828_v55, %v1168_v5 }
 0x165   : > { %v1093_v19 = vor.u32 4788187, %v1092_v15  ;;  %v1211_v54 = vshrl.u32 %v1207_v22, 16  ;;  %v1221_v61 = vadd.s32 %v1219_v30, %v1217_v17  ;;  %v1290_v3 = vshrl.u32 %v1289_v0, 23 }
 0x166   : > { %v1096_v48 = vcvt.s32.f32 %v1089_v29  ;;  %v1103_v14 = vsel %vm3898_vm0, 0, %v1101_v53  ;;  %v1201_v24 = vadd.s32 %v1200_v56, %v1191_v44  ;;  %v1213_v16 = vshrl.u32 %v1208_v51, 16 }
 0x167   : > { %v1094_v8 = vand.u32 2147483647, %v1093_v19  ;;  %v1222_v49 = vadd.s32 %v1221_v61, %v1211_v54  ;;  %v1286_v32 = vand.u32 2147483647, %v3883_v28  ;;  %v3013_v2 = vadd.s32 4294967169, %v1290_v3 }
 0x168   : > { %v1220_v58 = vadd.s32 %v1216_v6, %v1212_v37  ;;  %v1170_v55 = vsel %vm1164_vm7, %v1167_v13, %v1169_v20  ;;  %v1120_v11 = vadd.s32 3, %v1103_v14  ;;  %v3924_v51 = vadd.f32 %v3880_v59, %v329_v18 }
 0x169   : > { %v1097_v45 = vmul.f32 %v1096_v48, %v1094_v8  ;;  %v1223_v10 = vadd.s32 %v1222_v49, %v1213_v16  ;;  %v1296_v7 = vadd.s32 1, %v3013_v2  ;;  %v1293_v62 = vand.u32 8388607, %v1286_v32 }
 0x16a   : > { %vm1226_vm1 = vc.u32 %v1201_v24, %v1220_v58  ;;  %v1224_v60 = vmul.u32 %v3852_v57, %v1170_v55  ;;  %v3935_v41 = vadd.f32 %v3880_v59, %v332_v26  ;;  %v3939_v31 = vand.u32 3, %v1120_v11 }
 0x16b   : > { %v1098_v22 = vxor.u32 2147483648, %v1097_v45  ;;  %v1227_v46 = vadd.s32 1, %v1223_v10  ;;  %vm1297_vm2 = vcmp.gt.s32.totalorder %v1296_v7, 0  ;;  %v3941_v47 = vadd.s32 %v1220_v58, %v1201_v24 }
 0x16c   : > { %v1298_v12 = vsel %vm1297_vm2, %v1296_v7, 0  ;;  %v1294_v57 = vor.u32 8388608, %v1293_v62  ;;  %v1441_v1 = vand.u32 2147483647, %v3924_v51  ;;  %v1444_v23 = vand.u32 2139095040, %v3924_v51 }
 0x16d   : > { %v1099_v21 = vsel %vm978_vm10, %v1098_v22, %v1097_v45  ;;  %v1228_v4 = vsel %vm1226_vm1, %v1227_v46, %v1223_v10  ;;  %v1300_v50 = vand.u32 31, %v1298_v12  ;;  %v3949_v13 = vshrl.u32 %v1298_v12, 5 }
 0x16e   : > { %v3932_v25 = vsel %vm3898_vm0, %v3641_v9, %v1099_v21  ;;  %v1229_v35 = vadd.s32 %v1228_v4, %v1224_v60  ;;  %v3957_v48 = vand.u32 8388607, %v1441_v1  ;;  %vm1133_vm3 = vcmp.lt.s32.totalorder %v3644_v33, 0 }
 0x16f   : > { %v1104_v27 = vmul.f32 %v3932_v25, %v3932_v25  ;;  %v1301_v63 = vsub.s32 32, %v1300_v50  ;;  %v1303_v29 = vshll.u32 %v3200_v34, %v1300_v50  ;;  %v1306_v5 = vshll.u32 %v3201_v36, %v1300_v50 }
 0x170   : > { %v1230_v17 = vadd.s32 536870912, %v1229_v35  ;;  %v1309_v44 = vshll.u32 %v3202_v38, %v1300_v50  ;;  %v1312_v20 = vshll.u32 %v3203_v40, %v1300_v50  ;;  %v1315_v16 = vshll.u32 %v3204_v43, %v1300_v50 }
 0x171   : > { %v1105_v37 = vmul.f32 -0.001358992, %v1104_v27  ;;  %v1112_v6 = vmul.f32 -0.00019511016, %v1104_v27  ;;  %v1304_v15 = vshrl.u32 %v3201_v36, %v1301_v63  ;;  %v1307_v53 = vshrl.u32 %v3202_v38, %v1301_v63 }
 0x172   : > { %v1231_v19 = vshrl.u32 %v1230_v17, 30  ;;  %v1310_v30 = vshrl.u32 %v3203_v40, %v1301_v63  ;;  %v1313_v54 = vshrl.u32 %v3204_v43, %v1301_v63  ;;  %v3965_v49 = vshll.u32 %v1294_v57, 8 }
 0x173   : > { %v1106_v56 = vadd.f32 0.041655596, %v1105_v37  ;;  %v1113_v0 = vadd.f32 0.008332121, %v1112_v6  ;;  %v3960_v14 = vor.u32 %v1304_v15, %v1303_v29  ;;  %v3962_v24 = vor.u32 %v1307_v53, %v1306_v5 }
 0x174   : > { %v1232_v8 = vshll.u32 %v1231_v19, 30  ;;  %vm1126_vm4 = vcmp.eq.s32.totalorder %v3939_v31, 2  ;;  %v1316_v18 = vshrl.u32 %v3205_v52, %v1301_v63  ;;  %vm1123_vm5 = vcmp.eq.s32.totalorder %v3939_v31, 0 }
 0x175   : > { %v1107_v61 = vmul.f32 %v1106_v56, %v1104_v27  ;;  %v1114_v3 = vmul.f32 %v1113_v0, %v1104_v27  ;;  %v1311_v55 = vor.u32 %v1310_v30, %v1309_v44  ;;  %v1314_v10 = vor.u32 %v1313_v54, %v1312_v20 }
 0x176   : > { %v3968_v58 = vsub.s32 %v1229_v35, %v1232_v8  ;;  %vm1318_vm6 = vcmp.lt.s32.totalorder %v3949_v13, 1  ;;  %vm1321_vm7 = vcmp.lt.s32.totalorder %v3949_v13, 4  ;;  %vm1122_vm8 = vcmp.lt.s32.totalorder %v3939_v31, 2 }
 0x177   : > { %v1108_v2 = vadd.f32 -0.4999988, %v1107_v61  ;;  %v1115_v45 = vadd.f32 -0.16666654, %v1114_v3  ;;  %vm1119_vm10 = vweird.f32 %v3641_v9  ;;  %vm3980_vm12 = vcmp.le.f32.partialorder %v1131_v42, 0.7853982 }
 0x178   : > { %vm1234_vm9 = vcmp.lt.s32.totalorder %v3968_v58, 0  ;;  %v1235_v11 = vsub.s32 0, %v3968_v58  ;;  %v1255_v46 = vsub.s32 4, %v1231_v19  ;;  %vm1320_vm11 = vcmp.lt.s32.totalorder %v3949_v13, 3 }
 0x179   : > { %v1109_v7 = vmul.f32 %v1108_v2, %v1104_v27  ;;  %v1116_v22 = vmul.f32 %v1115_v45, %v1104_v27  ;;  %v1445_v62 = vshrl.u32 %v1444_v23, 23  ;;  %v1449_v21 = vor.u32 8388608, %v3957_v48 }
 0x17a   : > { %v1236_v4 = vsel %vm1234_vm9, %v1235_v11, %v3968_v58  ;;  %v1317_v50 = vor.u32 %v1316_v18, %v1315_v16  ;;  %v1326_v42 = vsel %vm1318_vm6, %v3960_v14, %v3962_v24  ;;  %v1327_v35 = vsel %vm1321_vm7, %v1314_v10, 920167782 }
 0x17b   : > { %v1110_v60 = vadd.f32 1.0, %v1109_v7  ;;  %v1117_v12 = vadd.f32 1.0, %v1116_v22  ;;  %v1237_v27 = vclz %v1236_v4  ;;  %v1335_v57 = vand.u32 65535, %v3965_v49 }
 0x17c   : > { %v1328_v17 = vsel %vm1320_vm11, %v1311_v55, %v1327_v35  ;;  %v1336_v23 = vshrl.u32 %v3965_v49, 16  ;;  %v1302_v15 = vshrl.u32 %v3200_v34, %v1301_v63  ;;  %vm1319_vm13 = vcmp.lt.s32.totalorder %v3949_v13, 2 }
 0x17d   : > { %v1118_v37 = vmul.f32 %v1117_v12, %v3932_v25  ;;  %v1127_v6 = vxor.u32 2147483648, %v1110_v60  ;;  %v3011_v29 = vadd.s32 4294967294, %v1237_v27  ;;  %v1330_v5 = vsel %vm1318_vm6, %v3962_v24, %v1311_v55 }
 0x17e   : > { %v4005_v56 = vsel %vm1133_vm3, %v1255_v46, %v1231_v19  ;;  %v1329_v25 = vsel %vm1319_vm13, %v1326_v42, %v1328_v17  ;;  %v1331_v0 = vsel %vm1321_vm7, %v1317_v50, 1326507024  ;;  %v3016_v2 = vadd.s32 4294967169, %v1445_v62 }
 0x17f   : > { %v1124_v53 = vxor.u32 2147483648, %v1118_v37  ;;  %v1128_v63 = vsel %vm1126_vm4, %v1127_v6, %v1118_v37  ;;  %vm3012_vm14 = vcmp.lt.s32.totalorder %v3011_v29, 0  ;;  %v1332_v44 = vsel %vm1320_vm11, %v1314_v10, %v1331_v0 }
 0x180   : > { %v1360_v30 = vshrl.u32 %v1329_v25, 16  ;;  %v1240_v19 = vsel %vm3012_vm14, 0, %v3011_v29  ;;  %v1333_v54 = vsel %vm1319_vm13, %v1330_v5, %v1332_v44  ;;  %v1359_v61 = vand.u32 65535, %v1329_v25 }
 0x181   : > { %v1125_v20 = vsel %vm1123_vm5, %v1110_v60, %v1124_v53  ;;  %v1241_v8 = vsub.s32 32, %v1240_v19  ;;  %v1245_v16 = vsub.s32 4294967266, %v1240_v19  ;;  %v1258_v18 = vsel %vm3980_vm12, 0, %v4005_v56 }
 0x182   : > { %v1129_v3 = vsel %vm1122_vm8, %v1125_v20, %v1128_v63  ;;  %v1337_v10 = vand.u32 65535, %v1333_v54  ;;  %v1338_v7 = vshrl.u32 %v1333_v54, 16  ;;  %v1242_v22 = vshll.u32 %v3968_v58, %v1240_v19 }
 0x183   : > { %v1130_v45 = vsel %vm1119_vm10, nan, %v1129_v3  ;;  %v1243_v11 = vshrl.u32 %v3941_v47, %v1241_v8  ;;  %v1246_v46 = vadd.s32 127, %v1245_v16  ;;  %v1362_v60 = vmul.u32 %v1360_v30, %v1335_v57 }
 0x184   : > { %2840 = vst [vmem:[%s3565_s10 + $0x20] sm:$0xff] %v1130_v45  ;;  %v1322_v31 = vsel %vm1318_vm6, %v1302_v15, %v3960_v14  ;;  %v1340_v62 = vmul.u32 %v1338_v7, %v1335_v57  ;;  %v1341_v9 = vmul.u32 %v1337_v10, %v1336_v23  ;;  %v1363_v12 = vmul.u32 %v1359_v61, %v1336_v23 }
 0x185   : > { %v1244_v4 = vor.u32 %v1243_v11, %v1242_v22  ;;  %v1247_v50 = vshll.u32 %v1246_v46, 23  ;;  %v1323_v27 = vsel %vm1321_vm7, %v1311_v55, 2102212464  ;;  %v1365_v42 = vshll.u32 %v1362_v60, 16 }
 0x186   : > { %v1339_v35 = vmul.u32 %v1337_v10, %v1335_v57  ;;  %v1342_v58 = vmul.u32 %v1338_v7, %v1336_v23  ;;  %v1343_v37 = vshll.u32 %v1340_v62, 16  ;;  %v1361_v47 = vmul.u32 %v1359_v61, %v1335_v57 }
 0x187   : > { %v1248_v6 = vor.u32 4788187, %v1247_v50  ;;  %v1251_v17 = vcvt.s32.f32 %v1244_v4  ;;  %v1345_v29 = vshll.u32 %v1341_v9, 16  ;;  %v1364_v5 = vmul.u32 %v1360_v30, %v1336_v23 }
 0x188   : > { %vm1347_vm0 = vc.u32 %v1339_v35, %v1343_v37  ;;  %v1349_v53 = vadd.s32 %v1343_v37, %v1339_v35  ;;  %v1367_v14 = vshll.u32 %v1363_v12, 16  ;;  %vm1369_vm15 = vc.u32 %v1361_v47, %v1365_v42 }
 0x189   : > { %v1249_v15 = vand.u32 2147483647, %v1248_v6  ;;  %v1348_v56 = vsel %vm1347_vm0, 1, %v3206_v39  ;;  %v1370_v25 = vsel %vm1369_vm15, 1, %v3206_v39  ;;  %v1371_v0 = vadd.s32 %v1365_v42, %v1361_v47 }
 0x18a   : > { %v1350_v55 = vadd.s32 %v1348_v56, %v1342_v58  ;;  %vm1351_vm1 = vc.u32 %v1349_v53, %v1345_v29  ;;  %v1372_v63 = vadd.s32 %v1370_v25, %v1364_v5  ;;  %v1451_v44 = vadd.s32 1, %v3016_v2 }
 0x18b   : > { %v1252_v20 = vmul.f32 %v1251_v17, %v1249_v15  ;;  %v1324_v57 = vsel %vm1320_vm11, %v3962_v24, %v1323_v27  ;;  %v1352_v23 = vsel %vm1351_vm1, 1, %v3206_v39  ;;  %vm1373_vm2 = vc.u32 %v1371_v0, %v1367_v14 }
 0x18c   : > { %v1344_v30 = vshrl.u32 %v1340_v62, 16  ;;  %v1354_v19 = vadd.s32 %v1352_v23, %v1350_v55  ;;  %v1374_v54 = vsel %vm1373_vm2, 1, %v3206_v39  ;;  %vm1452_vm4 = vcmp.gt.s32.totalorder %v1451_v44, 0 }
 0x18d   : > { %v1253_v61 = vxor.u32 2147483648, %v1252_v20  ;;  %v1366_v3 = vshrl.u32 %v1362_v60, 16  ;;  %v1376_v8 = vadd.s32 %v1374_v54, %v1372_v63  ;;  %v1453_v16 = vsel %vm1452_vm4, %v1451_v44, 0 }
 0x18e   : > { %v1325_v2 = vsel %vm1319_vm13, %v1322_v31, %v1324_v57  ;;  %v1346_v45 = vshrl.u32 %v1341_v9, 16  ;;  %v1355_v10 = vadd.s32 %v1354_v19, %v1344_v30  ;;  %v1455_v7 = vand.u32 31, %v1453_v16 }
 0x18f   : > { %v1254_v24 = vsel %vm1133_vm3, %v1253_v61, %v1252_v20  ;;  %v1275_v22 = vadd.s32 3, %v1258_v18  ;;  %v1368_v11 = vshrl.u32 %v1363_v12, 16  ;;  %v1377_v46 = vadd.s32 %v1376_v8, %v1366_v3 }
 0x190   : > { %v1257_v62 = vsel %vm3980_vm12, %v3644_v33, %v1254_v24  ;;  %v4048_v4 = vadd.s32 %v1355_v10, %v1346_v45  ;;  %v4050_v60 = vadd.s32 %v1371_v0, %v1367_v14  ;;  %v4052_v50 = vsub.s32 32, %v1455_v7 }
 0x191   : > { %v1259_v13 = vmul.f32 %v1257_v62, %v1257_v62  ;;  %v1378_v31 = vadd.s32 %v1377_v46, %v1368_v11  ;;  %v1379_v9 = vmul.u32 %v3965_v49, %v1325_v2  ;;  %v4055_v27 = vshrl.u32 %v1453_v16, 5 }
 0x192   : > { %vm1381_vm3 = vc.u32 %v4048_v4, %v4050_v60  ;;  %v1458_v18 = vshll.u32 %v3200_v34, %v1455_v7  ;;  %v1459_v26 = vshrl.u32 %v3201_v36, %v4052_v50  ;;  %v1461_v12 = vshll.u32 %v3201_v36, %v1455_v7 }
 0x193   : > { %v1260_v42 = vmul.f32 -0.001358992, %v1259_v13  ;;  %v1267_v35 = vmul.f32 -0.00019511016, %v1259_v13  ;;  %v1382_v58 = vadd.s32 1, %v1378_v31  ;;  %v1462_v37 = vshrl.u32 %v3202_v38, %v4052_v50 }
 0x194   : > { %v1464_v49 = vshll.u32 %v3202_v38, %v1455_v7  ;;  %v1465_v47 = vshrl.u32 %v3203_v40, %v4052_v50  ;;  %v1467_v6 = vshll.u32 %v3203_v40, %v1455_v7  ;;  %v1468_v17 = vshrl.u32 %v3204_v43, %v4052_v50 }
 0x195   : > { %v1261_v29 = vadd.f32 0.041655596, %v1260_v42  ;;  %v1268_v5 = vadd.f32 0.008332121, %v1267_v35  ;;  %v1276_v53 = vand.u32 3, %v1275_v22  ;;  %v1383_v14 = vsel %vm1381_vm3, %v1382_v58, %v1378_v31 }
 0x196   : > { %v1384_v15 = vadd.s32 %v1383_v14, %v1379_v9  ;;  %v4071_v56 = vor.u32 %v1459_v26, %v1458_v18  ;;  %v1469_v25 = vor.u32 %v1468_v17, %v1467_v6  ;;  %v1470_v0 = vshll.u32 %v3204_v43, %v1455_v7 }
 0x197   : > { %v1262_v55 = vmul.f32 %v1261_v29, %v1259_v13  ;;  %v1269_v63 = vmul.f32 %v1268_v5, %v1259_v13  ;;  %v4074_v44 = vor.u32 %v1462_v37, %v1461_v12  ;;  %v1471_v20 = vshrl.u32 %v3205_v52, %v4052_v50 }
 0x198   : > { %v1385_v57 = vadd.s32 536870912, %v1384_v15  ;;  %v1466_v23 = vor.u32 %v1465_v47, %v1464_v49  ;;  %vm1473_vm5 = vcmp.lt.s32.totalorder %v4055_v27, 1  ;;  %vm1476_vm6 = vcmp.lt.s32.totalorder %v4055_v27, 4 }
 0x199   : > { %v1263_v30 = vadd.f32 -0.4999988, %v1262_v55  ;;  %v1270_v19 = vadd.f32 -0.16666654, %v1269_v63  ;;  %v1472_v54 = vor.u32 %v1471_v20, %v1470_v0  ;;  %vm1475_vm7 = vcmp.lt.s32.totalorder %v4055_v27, 3 }
 0x19a   : > { %v1386_v61 = vshrl.u32 %v1385_v57, 30  ;;  %v1482_v3 = vsel %vm1476_vm6, %v1469_v25, 920167782  ;;  %v1599_v8 = vand.u32 2139095040, %v3935_v41  ;;  %vm1277_vm8 = vcmp.lt.s32.totalorder %v1276_v53, 2 }
 0x19b   : > { %v1264_v16 = vmul.f32 %v1263_v30, %v1259_v13  ;;  %v1271_v2 = vmul.f32 %v1270_v19, %v1259_v13  ;;  %vm1278_vm9 = vcmp.eq.s32.totalorder %v1276_v53, 0  ;;  %vm1274_vm10 = vweird.f32 %v3644_v33 }
 0x19c   : > { %v1387_v45 = vshll.u32 %v1386_v61, 30  ;;  %v1481_v10 = vsel %vm1473_vm5, %v4071_v56, %v4074_v44  ;;  %v1483_v7 = vsel %vm1475_vm7, %v1466_v23, %v1482_v3  ;;  %v4093_v24 = vshll.u32 %v1449_v21, 8 }
 0x19d   : > { %v1265_v22 = vadd.f32 1.0, %v1264_v16  ;;  %v1272_v11 = vadd.f32 1.0, %v1271_v2  ;;  %vm1288_vm12 = vcmp.lt.s32.totalorder %v3883_v28, 0  ;;  %v1485_v46 = vsel %vm1473_vm5, %v4074_v44, %v1466_v23 }
 0x19e   : > { %v1486_v13 = vsel %vm1476_vm6, %v1472_v54, 1326507024  ;;  %vm1281_vm11 = vcmp.eq.s32.totalorder %v1276_v53, 2  ;;  %v1388_v31 = vsub.s32 %v1384_v15, %v1387_v45  ;;  %vm1474_vm13 = vcmp.lt.s32.totalorder %v4055_v27, 2 }
 0x19f   : > { %v1487_v48 = vsel %vm1475_vm7, %v1469_v25, %v1486_v13  ;;  %v1273_v21 = vmul.f32 %v1272_v11, %v1257_v62  ;;  %v1282_v9 = vxor.u32 2147483648, %v1265_v22  ;;  %v1484_v18 = vsel %vm1474_vm13, %v1481_v10, %v1483_v7 }
 0x1a0   : > { %v1488_v26 = vsel %vm1474_vm13, %v1485_v46, %v1487_v48  ;;  %vm1389_vm14 = vcmp.lt.s32.totalorder %v1388_v31, 0  ;;  %v1390_v12 = vsub.s32 0, %v1388_v31  ;;  %v1490_v42 = vand.u32 65535, %v4093_v24 }
 0x1a1   : > { %v1492_v35 = vand.u32 65535, %v1488_v26  ;;  %v1279_v58 = vxor.u32 2147483648, %v1273_v21  ;;  %v1491_v37 = vshrl.u32 %v4093_v24, 16  ;;  %v1493_v49 = vshrl.u32 %v1488_v26, 16 }
 0x1a2   : > { %v1600_v47 = vshrl.u32 %v1599_v8, 23  ;;  %v1283_v6 = vsel %vm1281_vm11, %v1282_v9, %v1273_v21  ;;  %v1391_v62 = vsel %vm1389_vm14, %v1390_v12, %v1388_v31  ;;  %v1410_v17 = vsub.s32 4, %v1386_v61 }
 0x1a3   : > { %v1515_v29 = vshrl.u32 %v1484_v18, 16  ;;  %v1280_v5 = vsel %vm1278_vm9, %v1265_v22, %v1279_v58  ;;  %v1392_v14 = vclz %v1391_v62  ;;  %v1495_v15 = vmul.u32 %v1493_v49, %v1490_v42 }
 0x1a4   : > { %v1496_v25 = vmul.u32 %v1492_v35, %v1491_v37  ;;  %v1284_v0 = vsel %vm1277_vm8, %v1280_v5, %v1283_v6  ;;  %v1380_v55 = vadd.s32 %v4050_v60, %v4048_v4  ;;  %v1457_v63 = vshrl.u32 %v3200_v34, %v4052_v50 }
 0x1a5   : > { %v1514_v20 = vand.u32 65535, %v1484_v18  ;;  %v1285_v57 = vsel %vm1274_vm10, nan, %v1284_v0  ;;  %v3014_v30 = vadd.s32 4294967294, %v1392_v14  ;;  %v1494_v19 = vmul.u32 %v1492_v35, %v1490_v42 }
 0x1a6   : > { %v1498_v54 = vshll.u32 %v1495_v15, 16  ;;  %v1411_v3 = vsel %vm1288_vm12, %v1410_v17, %v1386_v61  ;;  %v1478_v53 = vsel %vm1476_vm6, %v1466_v23, 2102212464  ;;  %v1497_v8 = vmul.u32 %v1493_v49, %v1491_v37  ;;  %2841 = vst [vmem:[%s3565_s10 + $0x28] sm:$0xff] %v1285_v57 }
 0x1a7   : > { %v1517_v16 = vmul.u32 %v1515_v29, %v1490_v42  ;;  %vm4126_vm0 = vcmp.le.f32.partialorder %v1286_v32, 0.7853982  ;;  %vm3015_vm15 = vcmp.lt.s32.totalorder %v3014_v30, 0  ;;  %v1500_v33 = vshll.u32 %v1496_v25, 16 }
 0x1a8   : > { %vm1502_vm1 = vc.u32 %v1494_v19, %v1498_v54  ;;  %v1504_v60 = vadd.s32 %v1498_v54, %v1494_v19  ;;  %v1395_v50 = vsel %vm3015_vm15, 0, %v3014_v30  ;;  %v1518_v61 = vmul.u32 %v1514_v20, %v1491_v37 }
 0x1a9   : > { %v1503_v2 = vsel %vm1502_vm1, 1, %v3206_v39  ;;  %v1520_v45 = vshll.u32 %v1517_v16, 16  ;;  %v1396_v10 = vsub.s32 32, %v1395_v50  ;;  %v1400_v23 = vsub.s32 4294967266, %v1395_v50 }
 0x1aa   : > { %v1505_v7 = vadd.s32 %v1503_v2, %v1497_v8  ;;  %v1516_v22 = vmul.u32 %v1514_v20, %v1490_v42  ;;  %v1397_v11 = vshll.u32 %v1388_v31, %v1395_v50  ;;  %v1499_v46 = vshrl.u32 %v1495_v15, 16 }
 0x1ab   : > { %vm1506_vm2 = vc.u32 %v1504_v60, %v1500_v33  ;;  %v1519_v32 = vmul.u32 %v1515_v29, %v1491_v37  ;;  %v1398_v13 = vshrl.u32 %v1380_v55, %v1396_v10  ;;  %v1401_v48 = vadd.s32 127, %v1400_v23 }
 0x1ac   : > { %v1507_v21 = vsel %vm1506_vm2, 1, %v3206_v39  ;;  %vm1524_vm4 = vc.u32 %v1516_v22, %v1520_v45  ;;  %v1522_v18 = vshll.u32 %v1518_v61, 16  ;;  %v1526_v12 = vadd.s32 %v1520_v45, %v1516_v22 }
 0x1ad   : > { %v1509_v9 = vadd.s32 %v1507_v21, %v1505_v7  ;;  %v1525_v26 = vsel %vm1524_vm4, 1, %v3206_v39  ;;  %v1399_v35 = vor.u32 %v1398_v13, %v1397_v11  ;;  %v1402_v58 = vshll.u32 %v1401_v48, 23 }
 0x1ae   : > { %v1527_v49 = vadd.s32 %v1525_v26, %v1519_v32  ;;  %v3019_v6 = vadd.s32 4294967169, %v1600_v47  ;;  %v1477_v31 = vsel %vm1473_vm5, %v1457_v63, %v4071_v56  ;;  %v1479_v42 = vsel %vm1475_vm7, %v4074_v44, %v1478_v53 }
 0x1af   : > { %v1510_v37 = vadd.s32 %v1509_v9, %v1499_v46  ;;  %vm1528_vm3 = vc.u32 %v1526_v12, %v1522_v18  ;;  %v1403_v62 = vor.u32 4788187, %v1402_v58  ;;  %v1501_v17 = vshrl.u32 %v1496_v25, 16 }
 0x1b0   : > { %v1529_v29 = vsel %vm1528_vm3, 1, %v3206_v39  ;;  %v1606_v5 = vadd.s32 1, %v3019_v6  ;;  %v1413_v14 = vsel %vm4126_vm0, 0, %v1411_v3  ;;  %v1521_v15 = vshrl.u32 %v1517_v16, 16 }
 0x1b1   : > { %v1531_v47 = vadd.s32 %v1529_v29, %v1527_v49  ;;  %v1596_v0 = vand.u32 2147483647, %v3935_v41  ;;  %v1404_v55 = vand.u32 2147483647, %v1403_v62  ;;  %v1406_v56 = vcvt.s32.f32 %v1399_v35 }
 0x1b2   : > { %v4143_v63 = vadd.s32 %v1510_v37, %v1501_v17  ;;  %vm1607_vm5 = vcmp.gt.s32.totalorder %v1606_v5, 0  ;;  %v1480_v44 = vsel %vm1474_vm13, %v1477_v31, %v1479_v42  ;;  %v1523_v20 = vshrl.u32 %v1518_v61, 16  ;;  %v335_v37 = vpop.f32.mrf.mxu2 }
 0x1b3   : > { %v1532_v25 = vadd.s32 %v1531_v47, %v1521_v15  ;;  %v1608_v57 = vsel %vm1607_vm5, %v1606_v5, 0  ;;  %v1407_v30 = vmul.f32 %v1406_v56, %v1404_v55  ;;  %v4147_v19 = vadd.s32 %v1526_v12, %v1522_v18 }
 0x1b4   : > { %v1610_v54 = vand.u32 31, %v1608_v57  ;;  %v1430_v3 = vadd.s32 3, %v1413_v14  ;;  %v1534_v16 = vmul.u32 %v4093_v24, %v1480_v44  ;;  %v1603_v27 = vand.u32 8388607, %v1596_v0 }
 0x1b5   : > { %v1533_v53 = vadd.s32 %v1532_v25, %v1523_v20  ;;  %v1408_v8 = vxor.u32 2147483648, %v1407_v30  ;;  %vm1536_vm6 = vc.u32 %v4143_v63, %v4147_v19  ;;  %v4156_v50 = vshrl.u32 %v1608_v57, 5 }
 0x1b6   : > { %v4152_v33 = vsub.s32 32, %v1610_v54  ;;  %v1616_v2 = vshll.u32 %v3201_v36, %v1610_v54  ;;  %v1622_v10 = vshll.u32 %v3203_v40, %v1610_v54  ;;  %v1613_v13 = vshll.u32 %v3200_v34, %v1610_v54 }
 0x1b7   : > { %v1537_v60 = vadd.s32 1, %v1533_v53  ;;  %v1409_v61 = vsel %vm1288_vm12, %v1408_v8, %v1407_v30  ;;  %v1619_v48 = vshll.u32 %v3202_v38, %v1610_v54  ;;  %v1625_v18 = vshll.u32 %v3204_v43, %v1610_v54 }
 0x1b8   : > { %v1614_v45 = vshrl.u32 %v3201_v36, %v4152_v33  ;;  %v1617_v24 = vshrl.u32 %v3202_v38, %v4152_v33  ;;  %v1412_v23 = vsel %vm4126_vm0, %v3883_v28, %v1409_v61  ;;  %v1620_v22 = vshrl.u32 %v3203_v40, %v4152_v33 }
 0x1b9   : > { %v1538_v7 = vsel %vm1536_vm6, %v1537_v60, %v1533_v53  ;;  %v1623_v11 = vshrl.u32 %v3204_v43, %v4152_v33  ;;  %v1414_v46 = vmul.f32 %v1412_v23, %v1412_v23  ;;  %v1626_v4 = vshrl.u32 %v3205_v52, %v4152_v33 }
 0x1ba   : > { %v1539_v32 = vadd.s32 %v1538_v7, %v1534_v16  ;;  %v4175_v21 = vor.u32 %v1617_v24, %v1616_v2  ;;  %v1621_v58 = vor.u32 %v1620_v22, %v1619_v48  ;;  %v4180_v49 = vand.u32 3, %v1430_v3 }
 0x1bb   : > { %v1624_v9 = vor.u32 %v1623_v11, %v1622_v10  ;;  %v1415_v26 = vmul.f32 -0.001358992, %v1414_v46  ;;  %v1422_v12 = vmul.f32 -0.00019511016, %v1414_v46  ;;  %v1604_v6 = vor.u32 8388608, %v1603_v27 }
 0x1bc   : > { %v1540_v35 = vadd.s32 536870912, %v1539_v32  ;;  %v4182_v31 = vor.u32 %v1614_v45, %v1613_v13  ;;  %v1627_v42 = vor.u32 %v1626_v4, %v1625_v18  ;;  %vm1631_vm7 = vcmp.lt.s32.totalorder %v4156_v50, 4 }
 0x1bd   : > { %v1416_v62 = vadd.f32 0.041655596, %v1415_v26  ;;  %v1423_v17 = vadd.f32 0.008332121, %v1422_v12  ;;  %vm1628_vm8 = vcmp.lt.s32.totalorder %v4156_v50, 1  ;;  %vm1630_vm9 = vcmp.lt.s32.totalorder %v4156_v50, 3 }
 0x1be   : > { %v4184_v29 = vshrl.u32 %v1540_v35, 30  ;;  %v1637_v5 = vsel %vm1631_vm7, %v1624_v9, 920167782  ;;  %v1641_v14 = vsel %vm1631_vm7, %v1627_v42, 1326507024  ;;  %v1640_v56 = vsel %vm1628_vm8, %v4175_v21, %v1621_v58 }
 0x1bf   : > { %v1417_v15 = vmul.f32 %v1416_v62, %v1414_v46  ;;  %v1424_v47 = vmul.f32 %v1423_v17, %v1414_v46  ;;  %v4198_v44 = vadd.f32 %v3880_v59, %v335_v37  ;;  %v1642_v20 = vsel %vm1630_vm9, %v1624_v9, %v1641_v14 }
 0x1c0   : > { %v1542_v55 = vshll.u32 %v4184_v29, 30  ;;  %v4202_v25 = vshll.u32 %v1604_v6, 8  ;;  %vm1629_vm10 = vcmp.lt.s32.totalorder %v4156_v50, 2  ;;  %vm1433_vm12 = vcmp.eq.s32.totalorder %v4180_v49, 0 }
 0x1c1   : > { %v1418_v57 = vadd.f32 -0.4999988, %v1417_v15  ;;  %v1425_v30 = vadd.f32 -0.16666654, %v1424_v47  ;;  %v1636_v3 = vsel %vm1628_vm8, %v4182_v31, %v4175_v21  ;;  %v1638_v59 = vsel %vm1630_vm9, %v1621_v58, %v1637_v5 }
 0x1c2   : > { %v4204_v54 = vsub.s32 %v1539_v32, %v1542_v55  ;;  %v1643_v53 = vsel %vm1629_vm10, %v1640_v56, %v1642_v20  ;;  %vm1432_vm11 = vcmp.lt.s32.totalorder %v4180_v49, 2  ;;  %vm1429_vm14 = vweird.f32 %v3883_v28 }
 0x1c3   : > { %v1419_v8 = vmul.f32 %v1418_v57, %v1414_v46  ;;  %v1426_v16 = vmul.f32 %v1425_v30, %v1414_v46  ;;  %vm1436_vm0 = vcmp.eq.s32.totalorder %v4180_v49, 2  ;;  %v1645_v27 = vand.u32 65535, %v4202_v25 }
 0x1c4   : > { %vm1544_vm13 = vcmp.lt.s32.totalorder %v4204_v54, 0  ;;  %v1545_v60 = vsub.s32 0, %v4204_v54  ;;  %v1647_v2 = vand.u32 65535, %v1643_v53  ;;  %v1648_v61 = vshrl.u32 %v1643_v53, 16 }
 0x1c5   : > { %v1420_v45 = vadd.f32 1.0, %v1419_v8  ;;  %v1427_v24 = vadd.f32 1.0, %v1426_v16  ;;  %v1646_v7 = vshrl.u32 %v4202_v25, 16  ;;  %v1535_v22 = vadd.s32 %v4147_v19, %v4143_v63 }
 0x1c6   : > { %v1546_v10 = vsel %vm1544_vm13, %v1545_v60, %v4204_v54  ;;  %v1639_v46 = vsel %vm1629_vm10, %v1636_v3, %v1638_v59  ;;  %v1650_v32 = vmul.u32 %v1648_v61, %v1645_v27  ;;  %v1754_v18 = vand.u32 2139095040, %v4198_v44 }
 0x1c7   : > { %v1547_v11 = vclz %v1546_v10  ;;  %v1428_v13 = vmul.f32 %v1427_v24, %v1412_v23  ;;  %v1437_v48 = vxor.u32 2147483648, %v1420_v45  ;;  %v4228_v9 = vmul.u32 %v1647_v2, %v1646_v7 }
 0x1c8   : > { %vm1443_vm15 = vcmp.lt.s32.totalorder %v3924_v51, 0  ;;  %v1565_v26 = vsub.s32 4, %v4184_v29  ;;  %v1612_v12 = vshrl.u32 %v3200_v34, %v4152_v33  ;;  %v1633_v63 = vsel %vm1631_vm7, %v1621_v58, 2102212464 }
 0x1c9   : > { %v3017_v4 = vadd.s32 4294967294, %v1547_v11  ;;  %v1434_v19 = vxor.u32 2147483648, %v1428_v13  ;;  %v1649_v35 = vmul.u32 %v1647_v2, %v1645_v27  ;;  %v1653_v6 = vshll.u32 %v1650_v32, 16 }
 0x1ca   : > { %v1669_v23 = vand.u32 65535, %v1639_v46  ;;  %v1438_v42 = vsel %vm1436_vm0, %v1437_v48, %v1428_v13  ;;  %v1655_v37 = vshll.u32 %v4228_v9, 16  ;;  %v1670_v62 = vshrl.u32 %v1639_v46, 16 }
 0x1cb   : > { %vm3018_vm1 = vcmp.lt.s32.totalorder %v3017_v4, 0  ;;  %v1435_v17 = vsel %vm1433_vm12, %v1420_v45, %v1434_v19  ;;  %vm1657_vm2 = vc.u32 %v1649_v35, %v1653_v6  ;;  %v1659_v33 = vadd.s32 %v1653_v6, %v1649_v35 }
 0x1cc   : > { %v1550_v5 = vsel %vm3018_vm1, 0, %v3017_v4  ;;  %v1439_v58 = vsel %vm1432_vm11, %v1435_v17, %v1438_v42  ;;  %vm4246_vm4 = vcmp.le.f32.partialorder %v1441_v1, 0.7853982  ;;  %v1652_v55 = vmul.u32 %v1648_v61, %v1646_v7 }
 0x1cd   : > { %v1551_v15 = vsub.s32 32, %v1550_v5  ;;  %v1555_v47 = vsub.s32 4294967266, %v1550_v5  ;;  %v1440_v56 = vsel %vm1429_vm14, nan, %v1439_v58  ;;  %v1552_v20 = vshll.u32 %v4204_v54, %v1550_v5 }
 0x1ce   : > { %v1658_v57 = vsel %vm1657_vm2, 1, %v3206_v39  ;;  %vm1661_vm3 = vc.u32 %v1659_v33, %v1655_v37  ;;  %2842 = vst [vmem:[%s3565_s10 + $0x30] sm:$0xff] %v1440_v56  ;;  %v1632_v1 = vsel %vm1628_vm8, %v1612_v12, %v4182_v31  ;;  %v1654_v53 = vshrl.u32 %v1650_v32, 16 }
 0x1cf   : > { %v1553_v30 = vshrl.u32 %v1535_v22, %v1551_v15  ;;  %v1556_v49 = vadd.s32 127, %v1555_v47  ;;  %v1660_v3 = vadd.s32 %v1658_v57, %v1652_v55  ;;  %v1662_v59 = vsel %vm1661_vm3, 1, %v3206_v39 }
 0x1d0   : > { %v1672_v8 = vmul.u32 %v1670_v62, %v1645_v27  ;;  %v1673_v16 = vmul.u32 %v1669_v23, %v1646_v7  ;;  %v1755_v54 = vshrl.u32 %v1754_v18, 23  ;;  %v1566_v61 = vsel %vm1443_vm15, %v1565_v26, %v4184_v29 }
 0x1d1   : > { %v1554_v28 = vor.u32 %v1553_v30, %v1552_v20  ;;  %v1557_v60 = vshll.u32 %v1556_v49, 23  ;;  %v1664_v2 = vadd.s32 %v1662_v59, %v1660_v3  ;;  %v1634_v45 = vsel %vm1630_vm9, %v4175_v21, %v1633_v63 }
 0x1d2   : > { %v1671_v24 = vmul.u32 %v1669_v23, %v1645_v27  ;;  %v1675_v10 = vshll.u32 %v1672_v8, 16  ;;  %v1656_v31 = vshrl.u32 %v4228_v9, 16  ;;  %v3022_v46 = vadd.s32 4294967169, %v1755_v54 }
 0x1d3   : > { %v1558_v22 = vor.u32 4788187, %v1557_v60  ;;  %v1665_v11 = vadd.s32 %v1664_v2, %v1654_v53  ;;  %v1674_v32 = vmul.u32 %v1670_v62, %v1646_v7  ;;  %v1677_v13 = vshll.u32 %v1673_v16, 16 }
 0x1d4   : > { %vm1679_vm5 = vc.u32 %v1671_v24, %v1675_v10  ;;  %v1681_v48 = vadd.s32 %v1675_v10, %v1671_v24  ;;  %v1561_v4 = vcvt.s32.f32 %v1554_v28  ;;  %v1761_v29 = vadd.s32 1, %v3022_v46 }
 0x1d5   : > { %v1559_v18 = vand.u32 2147483647, %v1558_v22  ;;  %v1680_v12 = vsel %vm1679_vm5, 1, %v3206_v39  ;;  %v1568_v26 = vsel %vm4246_vm4, 0, %v1566_v61  ;;  %v1751_v27 = vand.u32 2147483647, %v4198_v44 }
 0x1d6   : > { %v1682_v21 = vadd.s32 %v1680_v12, %v1674_v32  ;;  %vm1683_vm6 = vc.u32 %v1681_v48, %v1677_v13  ;;  %v4270_v9 = vadd.s32 %v1665_v11, %v1656_v31  ;;  %vm1762_vm7 = vcmp.gt.s32.totalorder %v1761_v29, 0 }
 0x1d7   : > { %v1562_v63 = vmul.f32 %v1561_v4, %v1559_v18  ;;  %v1684_v7 = vsel %vm1683_vm6, 1, %v3206_v39  ;;  %v1635_v19 = vsel %vm1629_vm10, %v1632_v1, %v1634_v45  ;;  %v1676_v35 = vshrl.u32 %v1672_v8, 16 }
 0x1d8   : > { %v1686_v6 = vadd.s32 %v1684_v7, %v1682_v21  ;;  %v1763_v23 = vsel %vm1762_vm7, %v1761_v29, 0  ;;  %v4275_v37 = vadd.s32 %v1681_v48, %v1677_v13  ;;  %v1585_v17 = vadd.s32 3, %v1568_v26  ;;  %v338_v13 = vpop.f32.mrf.mxu2 }
 0x1d9   : > { %v1563_v42 = vxor.u32 2147483648, %v1562_v63  ;;  %v1765_v62 = vand.u32 31, %v1763_v23  ;;  %v1678_v5 = vshrl.u32 %v1673_v16, 16  ;;  %v1758_v58 = vand.u32 8388607, %v1751_v27 }
 0x1da   : > { %v1687_v33 = vadd.s32 %v1686_v6, %v1676_v35  ;;  %v1689_v47 = vmul.u32 %v4202_v25, %v1635_v19  ;;  %vm1691_vm8 = vc.u32 %v4270_v9, %v4275_v37  ;;  %v4289_v20 = vshrl.u32 %v1763_v23, 5  ;;  %v4327_v19 = vld [vmem:[%s5174_s2] ss:$0 sm:$0xff] }
 0x1db   : > { %v1564_v15 = vsel %vm1443_vm15, %v1563_v42, %v1562_v63  ;;  %v4284_v50 = vsub.s32 32, %v1765_v62  ;;  %v1768_v57 = vshll.u32 %v3200_v34, %v1765_v62  ;;  %v1771_v25 = vshll.u32 %v3201_v36, %v1765_v62 }
 0x1dc   : > { %v1567_v55 = vsel %vm4246_vm4, %v3924_v51, %v1564_v15  ;;  %v1688_v56 = vadd.s32 %v1687_v33, %v1678_v5  ;;  %v1777_v14 = vshll.u32 %v3203_v40, %v1765_v62  ;;  %v1774_v28 = vshll.u32 %v3202_v38, %v1765_v62 }
 0x1dd   : > { %v1569_v30 = vmul.f32 %v1567_v55, %v1567_v55  ;;  %v1769_v49 = vshrl.u32 %v3201_v36, %v4284_v50  ;;  %v1772_v3 = vshrl.u32 %v3202_v38, %v4284_v50  ;;  %v1775_v1 = vshrl.u32 %v3203_v40, %v4284_v50 }
 0x1de   : > { %v1692_v59 = vadd.s32 1, %v1688_v56  ;;  %v1778_v53 = vshrl.u32 %v3204_v43, %v4284_v50  ;;  %v1780_v60 = vshll.u32 %v3204_v43, %v1765_v62  ;;  %v1781_v45 = vshrl.u32 %v3205_v52, %v4284_v50 }
 0x1df   : > { %v1570_v8 = vmul.f32 -0.001358992, %v1569_v30  ;;  %v1577_v16 = vmul.f32 -0.00019511016, %v1569_v30  ;;  %v4307_v54 = vor.u32 %v1769_v49, %v1768_v57  ;;  %v4311_v31 = vor.u32 %v1772_v3, %v1771_v25 }
 0x1e0   : > { %v1693_v2 = vsel %vm1691_vm8, %v1692_v59, %v1688_v56  ;;  %v1779_v61 = vor.u32 %v1778_v53, %v1777_v14  ;;  %v1586_v11 = vand.u32 3, %v1585_v17  ;;  %v1776_v46 = vor.u32 %v1775_v1, %v1774_v28 }
 0x1e1   : > { %v1571_v24 = vadd.f32 0.041655596, %v1570_v8  ;;  %v1578_v10 = vadd.f32 0.008332121, %v1577_v16  ;;  %v1694_v22 = vadd.s32 %v1693_v2, %v1689_v47  ;;  %v1782_v32 = vor.u32 %v1781_v45, %v1780_v60 }
 0x1e2   : > { %vm1786_vm9 = vcmp.lt.s32.totalorder %v4289_v20, 4  ;;  %v1759_v12 = vor.u32 8388608, %v1758_v58  ;;  %vm1783_vm10 = vcmp.lt.s32.totalorder %v4289_v20, 1  ;;  %vm1785_vm12 = vcmp.lt.s32.totalorder %v4289_v20, 3 }
 0x1e3   : > { %v1572_v48 = vmul.f32 %v1571_v24, %v1569_v30  ;;  %v1579_v18 = vmul.f32 %v1578_v10, %v1569_v30  ;;  %v1695_v4 = vadd.s32 536870912, %v1694_v22  ;;  %v1792_v29 = vsel %vm1786_vm9, %v1779_v61, 920167782 }
 0x1e4   : > { %v1791_v7 = vsel %vm1783_vm10, %v4307_v54, %v4311_v31  ;;  %v4330_v35 = vadd.f32 %v4327_v19, %v338_v13  ;;  %vm1784_vm11 = vcmp.lt.s32.totalorder %v4289_v20, 2  ;;  %v1793_v6 = vsel %vm1785_vm12, %v1776_v46, %v1792_v29 }
 0x1e5   : > { %v1573_v26 = vadd.f32 -0.4999988, %v1572_v48  ;;  %v1580_v21 = vadd.f32 -0.16666654, %v1579_v18  ;;  %v4318_v63 = vshrl.u32 %v1695_v4, 30  ;;  %v1795_v5 = vsel %vm1783_vm10, %v4311_v31, %v1776_v46 }
 0x1e6   : > { %v1796_v23 = vsel %vm1786_vm9, %v1782_v32, 1326507024  ;;  %vm1584_vm13 = vweird.f32 %v3924_v51  ;;  %vm1587_vm14 = vcmp.lt.s32.totalorder %v1586_v11, 2  ;;  %v1794_v33 = vsel %vm1784_vm11, %v1791_v7, %v1793_v6 }
 0x1e7   : > { %v1574_v42 = vmul.f32 %v1573_v26, %v1569_v30  ;;  %v1581_v62 = vmul.f32 %v1580_v21, %v1569_v30  ;;  %v1697_v17 = vshll.u32 %v4318_v63, 30  ;;  %v1797_v58 = vsel %vm1785_vm12, %v1779_v61, %v1796_v23 }
 0x1e8   : > { %v4346_v15 = vshll.u32 %v1759_v12, 8  ;;  %vm1588_vm0 = vcmp.eq.s32.totalorder %v1586_v11, 0  ;;  %vm1591_vm15 = vcmp.eq.s32.totalorder %v1586_v11, 2  ;;  %v1798_v30 = vsel %vm1784_vm11, %v1795_v5, %v1797_v58 }
 0x1e9   : > { %v1575_v47 = vadd.f32 1.0, %v1574_v42  ;;  %v1582_v56 = vadd.f32 1.0, %v1581_v62  ;;  %v1698_v57 = vsub.s32 %v1694_v22, %v1697_v17  ;;  %v1825_v49 = vshrl.u32 %v1794_v33, 16 }
 0x1ea   : > { %v1906_v25 = vand.u32 2147483647, %v4330_v35  ;;  %v1800_v14 = vand.u32 65535, %v4346_v15  ;;  %v1802_v53 = vand.u32 65535, %v1798_v30  ;;  %v1803_v8 = vshrl.u32 %v1798_v30, 16 }
 0x1eb   : > { %v1583_v3 = vmul.f32 %v1582_v56, %v1567_v55  ;;  %v1592_v59 = vxor.u32 2147483648, %v1575_v47  ;;  %vm1699_vm1 = vcmp.lt.s32.totalorder %v1698_v57, 0  ;;  %v1700_v1 = vsub.s32 0, %v1698_v57 }
 0x1ec   : > { %v1909_v16 = vand.u32 2139095040, %v4330_v35  ;;  %v1801_v2 = vshrl.u32 %v4346_v15, 16  ;;  %v1824_v61 = vand.u32 65535, %v1794_v33  ;;  %v1690_v45 = vadd.s32 %v4275_v37, %v4270_v9 }
 0x1ed   : > { %v1589_v28 = vxor.u32 2147483648, %v1583_v3  ;;  %v1701_v60 = vsel %vm1699_vm1, %v1700_v1, %v1698_v57  ;;  %v1767_v55 = vshrl.u32 %v3200_v34, %v4284_v50  ;;  %v1805_v10 = vmul.u32 %v1803_v8, %v1800_v14 }
 0x1ee   : > { %v1702_v24 = vclz %v1701_v60  ;;  %v1593_v32 = vsel %vm1591_vm15, %v1592_v59, %v1583_v3  ;;  %v1806_v13 = vmul.u32 %v1802_v53, %v1801_v2  ;;  %v1827_v48 = vmul.u32 %v1825_v49, %v1800_v14 }
 0x1ef   : > { %v1590_v22 = vsel %vm1588_vm0, %v1575_v47, %v1589_v28  ;;  %v1788_v12 = vsel %vm1786_vm9, %v1776_v46, 2102212464  ;;  %v1910_v29 = vshrl.u32 %v1909_v16, 23  ;;  %v1804_v37 = vmul.u32 %v1802_v53, %v1800_v14 }
 0x1f0   : > { %v1594_v18 = vsel %vm1587_vm14, %v1590_v22, %v1593_v32  ;;  %v3020_v4 = vadd.s32 4294967294, %v1702_v24  ;;  %v1808_v50 = vshll.u32 %v1805_v10, 16  ;;  %v1826_v26 = vmul.u32 %v1824_v61, %v1800_v14 }
 0x1f1   : > { %v1595_v9 = vsel %vm1584_vm13, nan, %v1594_v18  ;;  %v1807_v21 = vmul.u32 %v1803_v8, %v1801_v2  ;;  %v1810_v7 = vshll.u32 %v1806_v13, 16  ;;  %v1828_v6 = vmul.u32 %v1824_v61, %v1801_v2 }
 0x1f2   : > { %vm3021_vm2 = vcmp.lt.s32.totalorder %v3020_v4, 0  ;;  %2843 = vst [vmem:[%s3565_s10 + $0x38] sm:$0xff] %v1595_v9  ;;  %vm1598_vm4 = vcmp.lt.s32.totalorder %v3935_v41, 0  ;;  %vm1812_vm3 = vc.u32 %v1804_v37, %v1808_v50  ;;  %v1814_v23 = vadd.s32 %v1808_v50, %v1804_v37 }
 0x1f3   : > { %v1705_v11 = vsel %vm3021_vm2, 0, %v3020_v4  ;;  %v1830_v42 = vshll.u32 %v1827_v48, 16  ;;  %v1809_v17 = vshrl.u32 %v1805_v10, 16  ;;  %v1813_v51 = vsel %vm1812_vm3, 1, %v3206_v39 }
 0x1f4   : > { %v1706_v62 = vsub.s32 32, %v1705_v11  ;;  %v1710_v46 = vsub.s32 4294967266, %v1705_v11  ;;  %v1707_v5 = vshll.u32 %v1698_v57, %v1705_v11  ;;  %v1815_v33 = vadd.s32 %v1813_v51, %v1807_v21 }
 0x1f5   : > { %vm1816_vm5 = vc.u32 %v1814_v23, %v1810_v7  ;;  %v1829_v58 = vmul.u32 %v1825_v49, %v1801_v2  ;;  %v1832_v3 = vshll.u32 %v1828_v6, 16  ;;  %vm1834_vm6 = vc.u32 %v1826_v26, %v1830_v42 }
 0x1f6   : > { %v1708_v47 = vshrl.u32 %v1690_v45, %v1706_v62  ;;  %v1711_v56 = vadd.s32 127, %v1710_v46  ;;  %v1817_v30 = vsel %vm1816_vm5, 1, %v3206_v39  ;;  %v1836_v1 = vadd.s32 %v1830_v42, %v1826_v26 }
 0x1f7   : > { %v1819_v59 = vadd.s32 %v1817_v30, %v1815_v33  ;;  %v3025_v14 = vadd.s32 4294967169, %v1910_v29  ;;  %v1720_v16 = vsub.s32 4, %v4318_v63  ;;  %v1835_v28 = vsel %vm1834_vm6, 1, %v3206_v39 }
 0x1f8   : > { %v1709_v53 = vor.u32 %v1708_v47, %v1707_v5  ;;  %v1712_v8 = vshll.u32 %v1711_v56, 23  ;;  %v1787_v57 = vsel %vm1783_vm10, %v1767_v55, %v4307_v54  ;;  %v1837_v60 = vadd.s32 %v1835_v28, %v1829_v58 }
 0x1f9   : > { %v1820_v49 = vadd.s32 %v1819_v59, %v1809_v17  ;;  %vm1838_vm7 = vc.u32 %v1836_v1, %v1832_v3  ;;  %v1789_v61 = vsel %vm1785_vm12, %v4311_v31, %v1788_v12  ;;  %v1811_v45 = vshrl.u32 %v1806_v13, 16 }
 0x1fa   : > { %v1713_v2 = vor.u32 4788187, %v1712_v8  ;;  %v1839_v24 = vsel %vm1838_vm7, 1, %v3206_v39  ;;  %vm4380_vm8 = vcmp.le.f32.partialorder %v1596_v0, 0.7853982  ;;  %v1831_v22 = vshrl.u32 %v1827_v48, 16 }
 0x1fb   : > { %v1841_v32 = vadd.s32 %v1839_v24, %v1837_v60  ;;  %v1916_v54 = vadd.s32 1, %v3025_v14  ;;  %v1716_v18 = vcvt.s32.f32 %v1709_v53  ;;  %v1721_v4 = vsel %vm1598_vm4, %v1720_v16, %v4318_v63 }
 0x1fc   : > { %v1714_v55 = vand.u32 2147483647, %v1713_v2  ;;  %v4387_v29 = vadd.s32 %v1820_v49, %v1811_v45  ;;  %v1790_v31 = vsel %vm1784_vm11, %v1787_v57, %v1789_v61  ;;  %v1833_v13 = vshrl.u32 %v1828_v6, 16 }
 0x1fd   : > { %v1842_v12 = vadd.s32 %v1841_v32, %v1831_v22  ;;  %vm1917_vm9 = vcmp.gt.s32.totalorder %v1916_v54, 0  ;;  %v4391_v9 = vadd.s32 %v1836_v1, %v1832_v3  ;;  %v1913_v48 = vand.u32 8388607, %v1906_v25  ;;  %v341_v1 = vpop.f32.mrf.mxu2 }
 0x1fe   : > { %v1717_v0 = vmul.f32 %v1716_v18, %v1714_v55  ;;  %v1918_v37 = vsel %vm1917_vm9, %v1916_v54, 0  ;;  %v1723_v50 = vsel %vm4380_vm8, 0, %v1721_v4  ;;  %v1844_v20 = vmul.u32 %v4346_v15, %v1790_v31 }
 0x1ff   : > { %v1843_v26 = vadd.s32 %v1842_v12, %v1833_v13  ;;  %v1920_v63 = vand.u32 31, %v1918_v37  ;;  %vm1846_vm10 = vc.u32 %v4387_v29, %v4391_v9  ;;  %v1740_v23 = vadd.s32 3, %v1723_v50 }
 0x200   : > { %v1718_v21 = vxor.u32 2147483648, %v1717_v0  ;;  %v1914_v42 = vor.u32 8388608, %v1913_v48  ;;  %v4404_v62 = vshrl.u32 %v1918_v37, 5  ;;  %v4431_v10 = vadd.f32 %v4327_v19, %v341_v1 }
 0x201   : > { %v1847_v7 = vadd.s32 1, %v1843_v26  ;;  %v4400_v6 = vsub.s32 32, %v1920_v63  ;;  %v1926_v51 = vshll.u32 %v3201_v36, %v1920_v63  ;;  %v1932_v5 = vshll.u32 %v3203_v40, %v1920_v63 }
 0x202   : > { %v1719_v11 = vsel %vm1598_vm4, %v1718_v21, %v1717_v0  ;;  %v1935_v3 = vshll.u32 %v3204_v43, %v1920_v63  ;;  %v1929_v16 = vshll.u32 %v3202_v38, %v1920_v63  ;;  %v1923_v28 = vshll.u32 %v3200_v34, %v1920_v63 }
 0x203   : > { %v1722_v46 = vsel %vm4380_vm8, %v3935_v41, %v1719_v11  ;;  %v1848_v17 = vsel %vm1846_vm10, %v1847_v7, %v1843_v26  ;;  %v1927_v58 = vshrl.u32 %v3202_v38, %v4400_v6  ;;  %v1930_v47 = vshrl.u32 %v3203_v40, %v4400_v6 }
 0x204   : > { %v1724_v15 = vmul.f32 %v1722_v46, %v1722_v46  ;;  %v1849_v33 = vadd.s32 %v1848_v17, %v1844_v20  ;;  %v1924_v56 = vshrl.u32 %v3201_v36, %v4400_v6  ;;  %v1933_v30 = vshrl.u32 %v3204_v43, %v4400_v6 }
 0x205   : > { %v1936_v59 = vshrl.u32 %v3205_v52, %v4400_v6  ;;  %v4424_v57 = vor.u32 %v1927_v58, %v1926_v51  ;;  %v4428_v24 = vor.u32 %v1930_v47, %v1929_v16  ;;  %v1741_v22 = vand.u32 3, %v1740_v23 }
 0x206   : > { %v1725_v14 = vmul.f32 -0.001358992, %v1724_v15  ;;  %v1732_v53 = vmul.f32 -0.00019511016, %v1724_v15  ;;  %v1850_v8 = vadd.s32 536870912, %v1849_v33  ;;  %v1934_v49 = vor.u32 %v1933_v30, %v1932_v5 }
 0x207   : > { %v1937_v60 = vor.u32 %v1936_v59, %v1935_v3  ;;  %v4433_v32 = vor.u32 %v1924_v56, %v1923_v28  ;;  %v4435_v54 = vshll.u32 %v1914_v42, 8  ;;  %vm1941_vm12 = vcmp.lt.s32.totalorder %v4404_v62, 4 }
 0x208   : > { %v1726_v2 = vadd.f32 0.041655596, %v1725_v14  ;;  %v1733_v61 = vadd.f32 0.008332121, %v1732_v53  ;;  %v4426_v45 = vshrl.u32 %v1850_v8, 30  ;;  %vm1938_vm11 = vcmp.lt.s32.totalorder %v4404_v62, 1 }
 0x209   : > { %vm1940_vm13 = vcmp.lt.s32.totalorder %v4404_v62, 3  ;;  %v1947_v31 = vsel %vm1941_vm12, %v1934_v49, 920167782  ;;  %v1951_v13 = vsel %vm1941_vm12, %v1937_v60, 1326507024  ;;  %v1950_v37 = vsel %vm1938_vm11, %v4424_v57, %v4428_v24 }
 0x20a   : > { %v1727_v55 = vmul.f32 %v1726_v2, %v1724_v15  ;;  %v1734_v18 = vmul.f32 %v1733_v61, %v1724_v15  ;;  %v1852_v4 = vshll.u32 %v4426_v45, 30  ;;  %vm1939_vm14 = vcmp.lt.s32.totalorder %v4404_v62, 2 }
 0x20b   : > { %v1946_v50 = vsel %vm1938_vm11, %v4433_v32, %v4424_v57  ;;  %v1948_v26 = vsel %vm1940_vm13, %v4428_v24, %v1947_v31  ;;  %v1952_v63 = vsel %vm1940_vm13, %v1934_v49, %v1951_v13  ;;  %vm1739_vm15 = vweird.f32 %v3935_v41 }
 0x20c   : > { %v1728_v12 = vadd.f32 -0.4999988, %v1727_v55  ;;  %v1735_v0 = vadd.f32 -0.16666654, %v1734_v18  ;;  %v4445_v48 = vsub.s32 %v1849_v33, %v1852_v4  ;;  %vm1742_vm1 = vcmp.lt.s32.totalorder %v1741_v22, 2 }
 0x20d   : > { %vm1743_vm2 = vcmp.eq.s32.totalorder %v1741_v22, 0  ;;  %vm1746_vm4 = vcmp.eq.s32.totalorder %v1741_v22, 2  ;;  %v1953_v11 = vsel %vm1939_vm14, %v1950_v37, %v1952_v63  ;;  %v1956_v33 = vshrl.u32 %v4435_v54, 16 }
 0x20e   : > { %v1729_v21 = vmul.f32 %v1728_v12, %v1724_v15  ;;  %v1736_v20 = vmul.f32 %v1735_v0, %v1724_v15  ;;  %vm1854_vm0 = vcmp.lt.s32.totalorder %v4445_v48, 0  ;;  %v1855_v7 = vsub.s32 0, %v4445_v48 }
 0x20f   : > { %v1957_v51 = vand.u32 65535, %v1953_v11  ;;  %v1949_v15 = vsel %vm1939_vm14, %v1946_v50, %v1948_v26  ;;  %v1958_v58 = vshrl.u32 %v1953_v11, 16  ;;  %v1955_v30 = vand.u32 65535, %v4435_v54 }
 0x210   : > { %v1730_v23 = vadd.f32 1.0, %v1729_v21  ;;  %v1737_v42 = vadd.f32 1.0, %v1736_v20  ;;  %v1856_v17 = vsel %vm1854_vm0, %v1855_v7, %v4445_v48  ;;  %v2061_v3 = vand.u32 2147483647, %v4431_v10 }
 0x211   : > { %v1857_v5 = vclz %v1856_v17  ;;  %v1845_v59 = vadd.s32 %v4391_v9, %v4387_v29  ;;  %v4474_v14 = vmul.u32 %v1957_v51, %v1956_v33  ;;  %v2064_v53 = vand.u32 2139095040, %v4431_v10 }
 0x212   : > { %v1738_v47 = vmul.f32 %v1737_v42, %v1722_v46  ;;  %v1747_v56 = vxor.u32 2147483648, %v1730_v23  ;;  %v1875_v16 = vsub.s32 4, %v4426_v45  ;;  %v1960_v28 = vmul.u32 %v1958_v58, %v1955_v30 }
 0x213   : > { %v3023_v1 = vadd.s32 4294967294, %v1857_v5  ;;  %v1979_v49 = vand.u32 65535, %v1949_v15  ;;  %vm1753_vm3 = vcmp.lt.s32.totalorder %v4198_v44, 0  ;;  %v1959_v60 = vmul.u32 %v1957_v51, %v1955_v30 }
 0x214   : > { %v1744_v8 = vxor.u32 2147483648, %v1738_v47  ;;  %v1748_v46 = vsel %vm1746_vm4, %v1747_v56, %v1738_v47  ;;  %v1980_v2 = vshrl.u32 %v1949_v15, 16  ;;  %v1962_v9 = vmul.u32 %v1958_v58, %v1956_v33 }
 0x215   : > { %vm3024_vm5 = vcmp.lt.s32.totalorder %v3023_v1, 0  ;;  %v1963_v55 = vshll.u32 %v1960_v28, 16  ;;  %v1965_v13 = vshll.u32 %v4474_v14, 16  ;;  %vm4487_vm6 = vcmp.le.f32.partialorder %v1751_v27, 0.7853982 }
 0x216   : > { %v1745_v61 = vsel %vm1743_vm2, %v1730_v23, %v1744_v8  ;;  %v1860_v29 = vsel %vm3024_vm5, 0, %v3023_v1  ;;  %v1982_v21 = vmul.u32 %v1980_v2, %v1955_v30  ;;  %v1981_v41 = vmul.u32 %v1979_v49, %v1955_v30 }
 0x217   : > { %v1749_v18 = vsel %vm1742_vm1, %v1745_v61, %v1748_v46  ;;  %v1861_v4 = vsub.s32 32, %v1860_v29  ;;  %v1865_v31 = vsub.s32 4294967266, %v1860_v29  ;;  %v1862_v37 = vshll.u32 %v4445_v48, %v1860_v29 }
 0x218   : > { %v1750_v12 = vsel %vm1739_vm15, nan, %v1749_v18  ;;  %vm1967_vm7 = vc.u32 %v1959_v60, %v1963_v55  ;;  %v1969_v50 = vadd.s32 %v1963_v55, %v1959_v60  ;;  %v1983_v7 = vmul.u32 %v1979_v49, %v1956_v33 }
 0x219   : > { %v1863_v26 = vshrl.u32 %v1845_v59, %v1861_v4  ;;  %v1866_v22 = vadd.s32 127, %v1865_v31  ;;  %v1968_v63 = vsel %vm1967_vm7, 1, %v3206_v39  ;;  %2844 = vst [vmem:[%s3565_s10 + $0x40] sm:$0xff] %v1750_v12  ;;  %v1985_v42 = vshll.u32 %v1982_v21, 16 }
 0x21a   : > { %v1970_v20 = vadd.s32 %v1968_v63, %v1962_v9  ;;  %vm1971_vm8 = vc.u32 %v1969_v50, %v1965_v13  ;;  %v1943_v48 = vsel %vm1941_vm12, %v4428_v24, 2102212464  ;;  %v1964_v17 = vshrl.u32 %v1960_v28, 16  ;;  %v344_v24 = vpop.f32.mrf.mxu3 }
 0x21b   : > { %v1864_v11 = vor.u32 %v1863_v26, %v1862_v37  ;;  %v1867_v23 = vshll.u32 %v1866_v22, 23  ;;  %v1972_v27 = vsel %vm1971_vm8, 1, %v3206_v39  ;;  %v1984_v5 = vmul.u32 %v1980_v2, %v1956_v33 }
 0x21c   : > { %v1974_v51 = vadd.s32 %v1972_v27, %v1970_v20  ;;  %v1987_v58 = vshll.u32 %v1983_v7, 16  ;;  %vm1989_vm9 = vc.u32 %v1981_v41, %v1985_v42  ;;  %v1991_v47 = vadd.s32 %v1985_v42, %v1981_v41 }
 0x21d   : > { %v1868_v15 = vor.u32 4788187, %v1867_v23  ;;  %v1876_v56 = vsel %vm1753_vm3, %v1875_v16, %v4426_v45  ;;  %v1990_v59 = vsel %vm1989_vm9, 1, %v3206_v39  ;;  %v2065_v1 = vshrl.u32 %v2064_v53, 23 }
 0x21e   : > { %v1975_v30 = vadd.s32 %v1974_v51, %v1964_v17  ;;  %v1871_v49 = vcvt.s32.f32 %v1864_v11  ;;  %v1992_v46 = vadd.s32 %v1990_v59, %v1984_v5  ;;  %vm1993_vm10 = vc.u32 %v1991_v47, %v1987_v58 }
 0x21f   : > { %v1869_v8 = vand.u32 2147483647, %v1868_v15  ;;  %v1922_v33 = vshrl.u32 %v3200_v34, %v4400_v6  ;;  %v1966_v28 = vshrl.u32 %v4474_v14, 16  ;;  %v1994_v60 = vsel %vm1993_vm10, 1, %v3206_v39 }
 0x220   : > { %v3028_v2 = vadd.s32 4294967169, %v2065_v1  ;;  %v1878_v45 = vsel %vm4487_vm6, 0, %v1876_v56  ;;  %v1986_v16 = vshrl.u32 %v1982_v21, 16  ;;  %v1996_v29 = vadd.s32 %v1994_v60, %v1992_v46 }
 0x221   : > { %v1872_v61 = vmul.f32 %v1871_v49, %v1869_v8  ;;  %v1942_v53 = vsel %vm1938_vm11, %v1922_v33, %v4433_v32  ;;  %v1944_v9 = vsel %vm1940_vm13, %v4424_v57, %v1943_v48  ;;  %v1976_v6 = vadd.s32 %v1975_v30, %v1966_v28 }
 0x222   : > { %v2071_v55 = vadd.s32 1, %v3028_v2  ;;  %v4515_v14 = vadd.f32 %v4327_v19, %v344_v24  ;;  %v1988_v4 = vshrl.u32 %v1983_v7, 16  ;;  %v1997_v31 = vadd.s32 %v1996_v29, %v1986_v16 }
 0x223   : > { %v1873_v18 = vxor.u32 2147483648, %v1872_v61  ;;  %v1895_v13 = vadd.s32 3, %v1878_v45  ;;  %v1995_v12 = vadd.s32 %v1991_v47, %v1987_v58  ;;  %v2068_v37 = vand.u32 8388607, %v2061_v3 }
 0x224   : > { %vm2072_vm12 = vcmp.gt.s32.totalorder %v2071_v55, 0  ;;  %v1945_v57 = vsel %vm1939_vm14, %v1942_v53, %v1944_v9  ;;  %v1998_v50 = vadd.s32 %v1997_v31, %v1988_v4  ;;  %v2216_v62 = vand.u32 2147483647, %v4515_v14 }
 0x225   : > { %v1874_v32 = vsel %vm1753_vm3, %v1873_v18, %v1872_v61  ;;  %v2073_v26 = vsel %vm2072_vm12, %v2071_v55, 0  ;;  %vm2001_vm11 = vc.u32 %v1976_v6, %v1995_v12  ;;  %v4530_v41 = vand.u32 3, %v1895_v13 }
 0x226   : > { %v4526_v22 = vsel %vm4487_vm6, %v4198_v44, %v1874_v32  ;;  %v2075_v63 = vand.u32 31, %v2073_v26  ;;  %v2002_v20 = vadd.s32 1, %v1998_v50  ;;  %v1999_v7 = vmul.u32 %v4435_v54, %v1945_v57 }
 0x227   : > { %v1879_v21 = vmul.f32 %v4526_v22, %v4526_v22  ;;  %v2069_v0 = vor.u32 8388608, %v2068_v37  ;;  %v4536_v48 = vadd.s32 %v1995_v12, %v1976_v6  ;;  %v4538_v51 = vshrl.u32 %v2073_v26, 5 }
 0x228   : > { %v4533_v11 = vsub.s32 32, %v2075_v63  ;;  %v2003_v42 = vsel %vm2001_vm11, %v2002_v20, %v1998_v50  ;;  %v2219_v5 = vand.u32 2139095040, %v4515_v14  ;;  %v2087_v1 = vshll.u32 %v3203_v40, %v2075_v63 }
 0x229   : > { %v1880_v23 = vmul.f32 -0.001358992, %v1879_v21  ;;  %v1887_v27 = vmul.f32 -0.00019511016, %v1879_v21  ;;  %v2004_v17 = vadd.s32 %v2003_v42, %v1999_v7  ;;  %v2078_v46 = vshll.u32 %v3200_v34, %v2075_v63 }
 0x22a   : > { %v2079_v54 = vshrl.u32 %v3201_v36, %v4533_v11  ;;  %v2088_v47 = vshrl.u32 %v3204_v43, %v4533_v11  ;;  %v2082_v30 = vshrl.u32 %v3202_v38, %v4533_v11  ;;  %v2085_v59 = vshrl.u32 %v3203_v40, %v4533_v11 }
 0x22b   : > { %v1881_v15 = vadd.f32 0.041655596, %v1880_v23  ;;  %v1888_v58 = vadd.f32 0.008332121, %v1887_v27  ;;  %v2005_v56 = vadd.s32 536870912, %v2004_v17  ;;  %v2081_v24 = vshll.u32 %v3201_v36, %v2075_v63 }
 0x22c   : > { %v2084_v28 = vshll.u32 %v3202_v38, %v2075_v63  ;;  %v2089_v60 = vor.u32 %v2088_v47, %v2087_v1  ;;  %v2091_v2 = vshrl.u32 %v3205_v52, %v4533_v11  ;;  %vm1901_vm13 = vcmp.eq.s32.totalorder %v4530_v41, 2 }
 0x22d   : > { %v1882_v8 = vmul.f32 %v1881_v15, %v1879_v21  ;;  %v1889_v49 = vmul.f32 %v1888_v58, %v1879_v21  ;;  %v2006_v33 = vshrl.u32 %v2005_v56, 30  ;;  %vm1908_vm14 = vcmp.lt.s32.totalorder %v4330_v35, 0 }
 0x22e   : > { %v4557_v16 = vor.u32 %v2079_v54, %v2078_v46  ;;  %v4559_v29 = vshll.u32 %v2069_v0, 8  ;;  %vm1898_vm0 = vcmp.eq.s32.totalorder %v4530_v41, 0  ;;  %v4562_v9 = vor.u32 %v2082_v30, %v2081_v24 }
 0x22f   : > { %v1883_v61 = vadd.f32 -0.4999988, %v1882_v8  ;;  %v1890_v45 = vadd.f32 -0.16666654, %v1889_v49  ;;  %v2007_v53 = vshll.u32 %v2006_v33, 30  ;;  %v2086_v6 = vor.u32 %v2085_v59, %v2084_v28 }
 0x230   : > { %v2090_v55 = vshll.u32 %v3204_v43, %v2075_v63  ;;  %vm1897_vm15 = vcmp.lt.s32.totalorder %v4530_v41, 2  ;;  %vm2096_vm1 = vcmp.lt.s32.totalorder %v4538_v51, 4  ;;  %v2220_v31 = vshrl.u32 %v2219_v5, 23 }
 0x231   : > { %v1884_v18 = vmul.f32 %v1883_v61, %v1879_v21  ;;  %v1891_v4 = vmul.f32 %v1890_v45, %v1879_v21  ;;  %vm1894_vm2 = vweird.f32 %v4198_v44  ;;  %v4568_v13 = vsub.s32 %v2004_v17, %v2007_v53 }
 0x232   : > { %v2092_v12 = vor.u32 %v2091_v2, %v2090_v55  ;;  %vm2093_vm4 = vcmp.lt.s32.totalorder %v4538_v51, 1  ;;  %v2102_v37 = vsel %vm2096_vm1, %v2089_v60, 920167782  ;;  %vm4575_vm3 = vcmp.le.f32.partialorder %v1906_v25, 0.7853982 }
 0x233   : > { %v1885_v32 = vadd.f32 1.0, %v1884_v18  ;;  %v1892_v57 = vadd.f32 1.0, %v1891_v4  ;;  %v2030_v26 = vsub.s32 4, %v2006_v33  ;;  %vm2095_vm5 = vcmp.lt.s32.totalorder %v4538_v51, 3 }
 0x234   : > { %vm2009_vm6 = vcmp.lt.s32.totalorder %v4568_v13, 0  ;;  %v2010_v63 = vsub.s32 0, %v4568_v13  ;;  %v2101_v21 = vsel %vm2093_vm4, %v4557_v16, %v4562_v9  ;;  %v2103_v20 = vsel %vm2095_vm5, %v2086_v6, %v2102_v37 }
 0x235   : > { %v1893_v25 = vmul.f32 %v1892_v57, %v4526_v22  ;;  %v1902_v7 = vxor.u32 2147483648, %v1885_v32  ;;  %v2105_v23 = vsel %vm2093_vm4, %v4562_v9, %v2086_v6  ;;  %v2110_v27 = vand.u32 65535, %v4559_v29 }
 0x236   : > { %v2011_v42 = vsel %vm2009_vm6, %v2010_v63, %v4568_v13  ;;  %vm2094_vm7 = vcmp.lt.s32.totalorder %v4538_v51, 2  ;;  %v2106_v0 = vsel %vm2096_vm1, %v2092_v12, 1326507024  ;;  %v2111_v17 = vshrl.u32 %v4559_v29, 16 }
 0x237   : > { %v1899_v5 = vxor.u32 2147483648, %v1893_v25  ;;  %v2012_v15 = vclz %v2011_v42  ;;  %v2104_v22 = vsel %vm2094_vm7, %v2101_v21, %v2103_v20  ;;  %v2107_v58 = vsel %vm2095_vm5, %v2089_v60, %v2106_v0 }
 0x238   : > { %v1903_v54 = vsel %vm1901_vm13, %v1902_v7, %v1893_v25  ;;  %v4606_v47 = vsel %vm1908_vm14, %v2030_v26, %v2006_v33  ;;  %v2108_v56 = vsel %vm2094_vm7, %v2105_v23, %v2107_v58  ;;  %v3031_v30 = vadd.s32 4294967169, %v2220_v31 }
 0x239   : > { %v1900_v59 = vsel %vm1898_vm0, %v1885_v32, %v1899_v5  ;;  %v3026_v1 = vadd.s32 4294967294, %v2012_v15  ;;  %v2112_v8 = vand.u32 65535, %v2108_v56  ;;  %v2113_v49 = vshrl.u32 %v2108_v56, 16 }
 0x23a   : > { %v1904_v46 = vsel %vm1897_vm15, %v1900_v59, %v1903_v54  ;;  %v2077_v24 = vshrl.u32 %v3200_v34, %v4533_v11  ;;  %v2134_v28 = vand.u32 65535, %v2104_v22  ;;  %v2135_v33 = vshrl.u32 %v2104_v22, 16 }
 0x23b   : > { %v1905_v60 = vsel %vm1894_vm2, nan, %v1904_v46  ;;  %vm3027_vm8 = vcmp.lt.s32.totalorder %v3026_v1, 0  ;;  %v2098_v2 = vsel %vm2096_vm1, %v2086_v6, 2102212464  ;;  %v2115_v61 = vmul.u32 %v2113_v49, %v2110_v27 }
 0x23c   : > { %v2015_v45 = vsel %vm3027_vm8, 0, %v3026_v1  ;;  %v2033_v53 = vsel %vm4575_vm3, 0, %v4606_v47  ;;  %v2116_v41 = vmul.u32 %v2112_v8, %v2111_v17  ;;  %v2137_v55 = vmul.u32 %v2135_v33, %v2110_v27  ;;  %2845 = vst [vmem:[%s3565_s10 + $0x48] sm:$0xff] %v1905_v60 }
 0x23d   : > { %v2016_v18 = vsub.s32 32, %v2015_v45  ;;  %v2020_v11 = vsub.s32 4294967266, %v2015_v45  ;;  %v2114_v4 = vmul.u32 %v2112_v8, %v2110_v27  ;;  %v2118_v31 = vshll.u32 %v2115_v61, 16 }
 0x23e   : > { %v2017_v44 = vshll.u32 %v4568_v13, %v2015_v45  ;;  %v2117_v12 = vmul.u32 %v2113_v49, %v2111_v17  ;;  %v2120_v37 = vshll.u32 %v2116_v41, 16  ;;  %v2138_v32 = vmul.u32 %v2134_v28, %v2111_v17  ;;  %v347_v45 = vpop.f32.mrf.mxu3 }
 0x23f   : > { %v2018_v6 = vshrl.u32 %v4536_v48, %v2016_v18  ;;  %v2021_v57 = vadd.s32 127, %v2020_v11  ;;  %vm2122_vm9 = vc.u32 %v2114_v4, %v2118_v31  ;;  %v2124_v26 = vadd.s32 %v2118_v31, %v2114_v4 }
 0x240   : > { %v2123_v63 = vsel %vm2122_vm9, 1, %v3206_v39  ;;  %v2136_v21 = vmul.u32 %v2134_v28, %v2110_v27  ;;  %v2139_v20 = vmul.u32 %v2135_v33, %v2111_v17  ;;  %v2140_v25 = vshll.u32 %v2137_v55, 16 }
 0x241   : > { %v2019_v7 = vor.u32 %v2018_v6, %v2017_v44  ;;  %v2022_v23 = vshll.u32 %v2021_v57, 23  ;;  %v2125_v42 = vadd.s32 %v2123_v63, %v2117_v12  ;;  %vm2126_vm10 = vc.u32 %v2124_v26, %v2120_v37 }
 0x242   : > { %v2127_v0 = vsel %vm2126_vm10, 1, %v3206_v39  ;;  %v2142_v13 = vshll.u32 %v2138_v32, 16  ;;  %vm2144_vm12 = vc.u32 %v2136_v21, %v2140_v25  ;;  %v2146_v5 = vadd.s32 %v2140_v25, %v2136_v21 }
 0x243   : > { %v2023_v15 = vor.u32 4788187, %v2022_v23  ;;  %v2119_v22 = vshrl.u32 %v2115_v61, 16  ;;  %v2129_v48 = vadd.s32 %v2127_v0, %v2125_v42  ;;  %v2145_v58 = vsel %vm2144_vm12, 1, %v3206_v39 }
 0x244   : > { %v2026_v54 = vcvt.s32.f32 %v2019_v7  ;;  %v2121_v47 = vshrl.u32 %v2116_v41, 16  ;;  %v2147_v56 = vadd.s32 %v2145_v58, %v2139_v20  ;;  %vm2148_vm11 = vc.u32 %v2146_v5, %v2142_v13 }
 0x245   : > { %v2024_v27 = vand.u32 2147483647, %v2023_v15  ;;  %v2130_v17 = vadd.s32 %v2129_v48, %v2119_v22  ;;  %v2149_v59 = vsel %vm2148_vm11, 1, %v3206_v39  ;;  %v2226_v1 = vadd.s32 1, %v3031_v30 }
 0x246   : > { %v2097_v8 = vsel %vm2093_vm4, %v2077_v24, %v4557_v16  ;;  %v2141_v49 = vshrl.u32 %v2137_v55, 16  ;;  %v2151_v46 = vadd.s32 %v2149_v59, %v2147_v56  ;;  %v4635_v28 = vand.u32 8388607, %v2216_v62 }
 0x247   : > { %v2027_v33 = vmul.f32 %v2026_v54, %v2024_v27  ;;  %v2099_v60 = vsel %vm2095_vm5, %v4562_v9, %v2098_v2  ;;  %v4640_v61 = vadd.s32 %v2130_v17, %v2121_v47  ;;  %vm2227_vm13 = vcmp.gt.s32.totalorder %v2226_v1, 0 }
 0x248   : > { %v2050_v30 = vadd.s32 3, %v2033_v53  ;;  %v2143_v41 = vshrl.u32 %v2138_v32, 16  ;;  %v2152_v18 = vadd.s32 %v2151_v46, %v2141_v49  ;;  %v2228_v11 = vsel %vm2227_vm13, %v2226_v1, 0 }
 0x249   : > { %v2028_v16 = vxor.u32 2147483648, %v2027_v33  ;;  %v4642_v24 = vadd.s32 %v2146_v5, %v2142_v13  ;;  %v2100_v55 = vsel %vm2094_vm7, %v2097_v8, %v2099_v60  ;;  %v2230_v31 = vand.u32 31, %v2228_v11 }
 0x24a   : > { %v2153_v4 = vadd.s32 %v2152_v18, %v2143_v41  ;;  %v4647_v44 = vadd.f32 %v4327_v19, %v347_v45  ;;  %v2224_v2 = vor.u32 8388608, %v4635_v28  ;;  %v4657_v12 = vand.u32 3, %v2050_v30 }
 0x24b   : > { %v2029_v9 = vsel %vm1908_vm14, %v2028_v16, %v2027_v33  ;;  %vm2156_vm0 = vc.u32 %v4640_v61, %v4642_v24  ;;  %v4659_v37 = vsub.s32 32, %v2230_v31  ;;  %v2154_v19 = vmul.u32 %v4559_v29, %v2100_v55 }
 0x24c   : > { %v2032_v53 = vsel %vm4575_vm3, %v4330_v35, %v2029_v9  ;;  %v2157_v51 = vadd.s32 1, %v2153_v4  ;;  %v4662_v6 = vshrl.u32 %v2228_v11, 5  ;;  %v2233_v57 = vshll.u32 %v3200_v34, %v2230_v31 }
 0x24d   : > { %v2034_v32 = vmul.f32 %v2032_v53, %v2032_v53  ;;  %v2234_v63 = vshrl.u32 %v3201_v36, %v4659_v37  ;;  %v2236_v21 = vshll.u32 %v3201_v36, %v2230_v31  ;;  %v2237_v50 = vshrl.u32 %v3202_v38, %v4659_v37 }
 0x24e   : > { %v2158_v26 = vsel %vm2156_vm0, %v2157_v51, %v2153_v4  ;;  %v2240_v23 = vshrl.u32 %v3203_v40, %v4659_v37  ;;  %v2239_v42 = vshll.u32 %v3202_v38, %v2230_v31  ;;  %v2242_v0 = vshll.u32 %v3203_v40, %v2230_v31 }
 0x24f   : > { %v2035_v20 = vmul.f32 -0.001358992, %v2034_v32  ;;  %v2042_v25 = vmul.f32 -0.00019511016, %v2034_v32  ;;  %v2159_v7 = vadd.s32 %v2158_v26, %v2154_v19  ;;  %v4672_v29 = vor.u32 %v2234_v63, %v2233_v57 }
 0x250   : > { %v2243_v13 = vshrl.u32 %v3204_v43, %v4659_v37  ;;  %v4678_v48 = vor.u32 %v2237_v50, %v2236_v21  ;;  %v4680_v58 = vor.u32 %v2240_v23, %v2239_v42  ;;  %v2245_v47 = vshll.u32 %v3204_v43, %v2230_v31 }
 0x251   : > { %v2036_v5 = vadd.f32 0.041655596, %v2035_v20  ;;  %v2043_v15 = vadd.f32 0.008332121, %v2042_v25  ;;  %v2160_v22 = vadd.s32 536870912, %v2159_v7  ;;  %v2246_v56 = vshrl.u32 %v3205_v52, %v4659_v37 }
 0x252   : > { %v2244_v54 = vor.u32 %v2243_v13, %v2242_v0  ;;  %vm2251_vm14 = vcmp.lt.s32.totalorder %v4662_v6, 4  ;;  %vm2248_vm15 = vcmp.lt.s32.totalorder %v4662_v6, 1  ;;  %vm2250_vm1 = vcmp.lt.s32.totalorder %v4662_v6, 3 }
 0x253   : > { %v2037_v27 = vmul.f32 %v2036_v5, %v2034_v32  ;;  %v2044_v17 = vmul.f32 %v2043_v15, %v2034_v32  ;;  %v2161_v59 = vshrl.u32 %v2160_v22, 30  ;;  %v2247_v1 = vor.u32 %v2246_v56, %v2245_v47 }
 0x254   : > { %v2257_v8 = vsel %vm2251_vm14, %v2244_v54, 920167782  ;;  %v2256_v33 = vsel %vm2248_vm15, %v4672_v29, %v4678_v48  ;;  %vm2063_vm2 = vcmp.lt.s32.totalorder %v4431_v10, 0  ;;  %vm2249_vm4 = vcmp.lt.s32.totalorder %v4662_v6, 2 }
 0x255   : > { %v2038_v49 = vadd.f32 -0.4999988, %v2037_v27  ;;  %v2045_v46 = vadd.f32 -0.16666654, %v2044_v17  ;;  %v2162_v28 = vshll.u32 %v2161_v59, 30  ;;  %v2258_v60 = vsel %vm2250_vm1, %v4680_v58, %v2257_v8 }
 0x256   : > { %v2261_v45 = vsel %vm2251_vm14, %v2247_v1, 1326507024  ;;  %vm2052_vm3 = vcmp.lt.s32.totalorder %v4657_v12, 2  ;;  %v2260_v11 = vsel %vm2248_vm15, %v4678_v48, %v4680_v58  ;;  %vm2049_vm5 = vweird.f32 %v4330_v35 }
 0x257   : > { %v2039_v30 = vmul.f32 %v2038_v49, %v2034_v32  ;;  %v2046_v41 = vmul.f32 %v2045_v46, %v2034_v32  ;;  %v2163_v18 = vsub.s32 %v2159_v7, %v2162_v28  ;;  %vm2053_vm6 = vcmp.eq.s32.totalorder %v4657_v12, 0 }
 0x258   : > { %v2259_v16 = vsel %vm2249_vm4, %v2256_v33, %v2258_v60  ;;  %v2262_v55 = vsel %vm2250_vm1, %v2244_v54, %v2261_v45  ;;  %v4712_v4 = vshll.u32 %v2224_v2, 8  ;;  %vm2056_vm8 = vcmp.eq.s32.totalorder %v4657_v12, 2 }
 0x259   : > { %v2040_v31 = vadd.f32 1.0, %v2039_v30  ;;  %v2047_v9 = vadd.f32 1.0, %v2046_v41  ;;  %vm2164_vm7 = vcmp.lt.s32.totalorder %v2163_v18, 0  ;;  %v2165_v51 = vsub.s32 0, %v2163_v18 }
 0x25a   : > { %v2185_v32 = vsub.s32 4, %v2161_v59  ;;  %v2263_v19 = vsel %vm2249_vm4, %v2260_v11, %v2262_v55  ;;  %v2289_v57 = vand.u32 65535, %v2259_v16  ;;  %v2266_v25 = vshrl.u32 %v4712_v4, 16 }
 0x25b   : > { %v2048_v26 = vmul.f32 %v2047_v9, %v2032_v53  ;;  %v2057_v63 = vxor.u32 2147483648, %v2040_v31  ;;  %v2166_v21 = vsel %vm2164_vm7, %v2165_v51, %v2163_v18  ;;  %v2267_v50 = vand.u32 65535, %v2263_v19 }
 0x25c   : > { %v2167_v20 = vclz %v2166_v21  ;;  %v2268_v2 = vshrl.u32 %v2263_v19, 16  ;;  %v2290_v7 = vshrl.u32 %v2259_v16, 16  ;;  %v2155_v42 = vadd.s32 %v4642_v24, %v4640_v61 }
 0x25d   : > { %v2054_v23 = vxor.u32 2147483648, %v2048_v26  ;;  %v2265_v0 = vand.u32 65535, %v4712_v4  ;;  %v2371_v13 = vand.u32 2147483647, %v4647_v44  ;;  %v2186_v53 = vsel %vm2063_vm2, %v2185_v32, %v2161_v59 }
 0x25e   : > { %v3029_v5 = vadd.s32 4294967294, %v2167_v20  ;;  %v2271_v15 = vmul.u32 %v2267_v50, %v2266_v25  ;;  %v2374_v22 = vand.u32 2139095040, %v4647_v44  ;;  %v2058_v47 = vsel %vm2056_vm8, %v2057_v63, %v2048_v26 }
 0x25f   : > { %v2055_v54 = vsel %vm2053_vm6, %v2040_v31, %v2054_v23  ;;  %v2270_v56 = vmul.u32 %v2268_v2, %v2265_v0  ;;  %v2291_v61 = vmul.u32 %v2289_v57, %v2265_v0  ;;  %vm4733_vm9 = vcmp.le.f32.partialorder %v2061_v3, 0.7853982 }
 0x260   : > { %v2059_v24 = vsel %vm2052_vm3, %v2055_v54, %v2058_v47  ;;  %vm3030_vm10 = vcmp.lt.s32.totalorder %v3029_v5, 0  ;;  %v2269_v17 = vmul.u32 %v2267_v50, %v2265_v0  ;;  %v2292_v59 = vmul.u32 %v2290_v7, %v2265_v0 }
 0x261   : > { %v2060_v1 = vsel %vm2049_vm5, nan, %v2059_v24  ;;  %v2170_v8 = vsel %vm3030_vm10, 0, %v3029_v5  ;;  %v2272_v49 = vmul.u32 %v2268_v2, %v2266_v25  ;;  %v2273_v46 = vshll.u32 %v2270_v56, 16 }
 0x262   : > { %v2171_v28 = vsub.s32 32, %v2170_v8  ;;  %v2175_v33 = vsub.s32 4294967266, %v2170_v8  ;;  %v2275_v60 = vshll.u32 %v2271_v15, 16  ;;  %v2293_v12 = vmul.u32 %v2289_v57, %v2266_v25  ;;  %2846 = vst [vmem:[%s3565_s10 + $0x50] sm:$0xff] %v2060_v1 }
 0x263   : > { %v2274_v45 = vshrl.u32 %v2270_v56, 16  ;;  %vm2277_vm12 = vc.u32 %v2269_v17, %v2273_v46  ;;  %v2279_v3 = vadd.s32 %v2273_v46, %v2269_v17  ;;  %v2295_v30 = vshll.u32 %v2292_v59, 16 }
 0x264   : > { %v2172_v41 = vshll.u32 %v2163_v18, %v2170_v8  ;;  %v2173_v11 = vshrl.u32 %v2155_v42, %v2171_v28  ;;  %v2176_v16 = vadd.s32 127, %v2175_v33  ;;  %v2278_v55 = vsel %vm2277_vm12, 1, %v3206_v39 }
 0x265   : > { %v2280_v31 = vadd.s32 %v2278_v55, %v2272_v49  ;;  %vm2281_vm11 = vc.u32 %v2279_v3, %v2275_v60  ;;  %v2294_v35 = vmul.u32 %v2290_v7, %v2266_v25  ;;  %v2297_v9 = vshll.u32 %v2293_v12, 16  ;;  %v4772_v60 = vld [vmem:[%s5174_s2] ss:$0 sm:$0xff] }
 0x266   : > { %v2174_v51 = vor.u32 %v2173_v11, %v2172_v41  ;;  %v2177_v32 = vshll.u32 %v2176_v16, 23  ;;  %v2282_v19 = vsel %vm2281_vm11, 1, %v3206_v39  ;;  %vm2299_vm13 = vc.u32 %v2291_v61, %v2295_v30 }
 0x267   : > { %v2284_v57 = vadd.s32 %v2282_v19, %v2280_v31  ;;  %v2300_v26 = vsel %vm2299_vm13, 1, %v3206_v39  ;;  %v2301_v63 = vadd.s32 %v2295_v30, %v2291_v61  ;;  %v2375_v21 = vshrl.u32 %v2374_v22, 23 }
 0x268   : > { %v2178_v50 = vor.u32 4788187, %v2177_v32  ;;  %v2232_v18 = vshrl.u32 %v3200_v34, %v4659_v37  ;;  %v2253_v20 = vsel %vm2251_vm14, %v4680_v58, 2102212464  ;;  %v2302_v25 = vadd.s32 %v2300_v26, %v2294_v35 }
 0x269   : > { %v2188_v2 = vsel %vm4733_vm9, 0, %v2186_v53  ;;  %v2285_v7 = vadd.s32 %v2284_v57, %v2274_v45  ;;  %vm2303_vm0 = vc.u32 %v2301_v63, %v2297_v9  ;;  %v3034_v23 = vadd.s32 4294967169, %v2375_v21 }
 0x26a   : > { %v2179_v42 = vand.u32 2147483647, %v2178_v50  ;;  %v2181_v0 = vcvt.s32.f32 %v2174_v51  ;;  %v2276_v5 = vshrl.u32 %v2271_v15, 16  ;;  %v2304_v22 = vsel %vm2303_vm0, 1, %v3206_v39  ;;  %v350_v15 = vpop.f32.mrf.mxu3 }
 0x26b   : > { %v2296_v54 = vshrl.u32 %v2292_v59, 16  ;;  %v2306_v47 = vadd.s32 %v2304_v22, %v2302_v25  ;;  %v2381_v56 = vadd.s32 1, %v3034_v23  ;;  %v2252_v58 = vsel %vm2248_vm15, %v2232_v18, %v4672_v29 }
 0x26c   : > { %v2182_v37 = vmul.f32 %v2181_v0, %v2179_v42  ;;  %v2254_v53 = vsel %vm2250_vm1, %v4678_v48, %v2253_v20  ;;  %v4757_v61 = vadd.s32 %v2285_v7, %v2276_v5  ;;  %v2205_v24 = vadd.s32 3, %v2188_v2 }
 0x26d   : > { %v2298_v17 = vshrl.u32 %v2293_v12, 16  ;;  %v2307_v1 = vadd.s32 %v2306_v47, %v2296_v54  ;;  %vm2382_vm14 = vcmp.gt.s32.totalorder %v2381_v56, 0  ;;  %v4759_v59 = vadd.s32 %v2301_v63, %v2297_v9 }
 0x26e   : > { %v2183_v8 = vxor.u32 2147483648, %v2182_v37  ;;  %v2378_v49 = vand.u32 8388607, %v2371_v13  ;;  %v2383_v46 = vsel %vm2382_vm14, %v2381_v56, 0  ;;  %v2255_v29 = vsel %vm2249_vm4, %v2252_v58, %v2254_v53 }
 0x26f   : > { %v2308_v28 = vadd.s32 %v2307_v1, %v2298_v17  ;;  %v2385_v33 = vand.u32 31, %v2383_v46  ;;  %vm2311_vm15 = vc.u32 %v4757_v61, %v4759_v59  ;;  %v4775_v12 = vadd.f32 %v4772_v60, %v350_v15 }
 0x270   : > { %v2184_v48 = vsel %vm2063_vm2, %v2183_v8, %v2182_v37  ;;  %v4782_v41 = vand.u32 3, %v2205_v24  ;;  %v2309_v11 = vmul.u32 %v4712_v4, %v2255_v29  ;;  %v2379_v16 = vor.u32 8388608, %v2378_v49 }
 0x271   : > { %v2187_v6 = vsel %vm4733_vm9, %v4431_v10, %v2184_v48  ;;  %v2312_v45 = vadd.s32 1, %v2308_v28  ;;  %v4780_v3 = vsub.s32 32, %v2385_v33  ;;  %v4785_v31 = vshrl.u32 %v2383_v46, 5 }
 0x272   : > { %v2189_v30 = vmul.f32 %v2187_v6, %v2187_v6  ;;  %v2388_v35 = vshll.u32 %v3200_v34, %v2385_v33  ;;  %v2391_v4 = vshll.u32 %v3201_v36, %v2385_v33  ;;  %v2397_v26 = vshll.u32 %v3203_v40, %v2385_v33 }
 0x273   : > { %v2313_v55 = vsel %vm2311_vm15, %v2312_v45, %v2308_v28  ;;  %v2392_v9 = vshrl.u32 %v3202_v38, %v4780_v3  ;;  %v2395_v19 = vshrl.u32 %v3203_v40, %v4780_v3  ;;  %v2389_v57 = vshrl.u32 %v3201_v36, %v4780_v3 }
 0x274   : > { %v2190_v51 = vmul.f32 -0.001358992, %v2189_v30  ;;  %v2197_v27 = vmul.f32 -0.00019511016, %v2189_v30  ;;  %v2314_v32 = vadd.s32 %v2313_v55, %v2309_v11  ;;  %v2398_v63 = vshrl.u32 %v3204_v43, %v4780_v3 }
 0x275   : > { %v2394_v20 = vshll.u32 %v3202_v38, %v2385_v33  ;;  %v4799_v25 = vor.u32 %v2392_v9, %v2391_v4  ;;  %v2400_v7 = vshll.u32 %v3204_v43, %v2385_v33  ;;  %v2401_v23 = vshrl.u32 %v3205_v52, %v4780_v3 }
 0x276   : > { %v2191_v21 = vadd.f32 0.041655596, %v2190_v51  ;;  %v2198_v50 = vadd.f32 0.008332121, %v2197_v27  ;;  %v2315_v18 = vadd.s32 536870912, %v2314_v32  ;;  %v2399_v2 = vor.u32 %v2398_v63, %v2397_v26 }
 0x277   : > { %v4806_v22 = vor.u32 %v2395_v19, %v2394_v20  ;;  %v4808_v54 = vor.u32 %v2389_v57, %v2388_v35  ;;  %v2402_v47 = vor.u32 %v2401_v23, %v2400_v7  ;;  %v4810_v56 = vshll.u32 %v2379_v16, 8 }
 0x278   : > { %v2192_v42 = vmul.f32 %v2191_v21, %v2189_v30  ;;  %v2199_v0 = vmul.f32 %v2198_v50, %v2189_v30  ;;  %v4804_v5 = vshrl.u32 %v2315_v18, 30  ;;  %v2529_v37 = vand.u32 2139095040, %v4775_v12 }
 0x279   : > { %vm2406_vm1 = vcmp.lt.s32.totalorder %v4785_v31, 4  ;;  %vm2403_vm2 = vcmp.lt.s32.totalorder %v4785_v31, 1  ;;  %vm2405_vm4 = vcmp.lt.s32.totalorder %v4785_v31, 3  ;;  %vm2207_vm3 = vcmp.lt.s32.totalorder %v4782_v41, 2 }
 0x27a   : > { %v2193_v58 = vadd.f32 -0.4999988, %v2192_v42  ;;  %v2200_v53 = vadd.f32 -0.16666654, %v2199_v0  ;;  %v2317_v24 = vshll.u32 %v4804_v5, 30  ;;  %v2415_v46 = vsel %vm2403_vm2, %v4799_v25, %v4806_v22 }
 0x27b   : > { %v2412_v17 = vsel %vm2406_vm1, %v2399_v2, 920167782  ;;  %v2416_v1 = vsel %vm2406_vm1, %v2402_v47, 1326507024  ;;  %vm2204_vm5 = vweird.f32 %v4431_v10  ;;  %vm2404_vm6 = vcmp.lt.s32.totalorder %v4785_v31, 2 }
 0x27c   : > { %v2194_v15 = vmul.f32 %v2193_v58, %v2189_v30  ;;  %v2201_v8 = vmul.f32 %v2200_v53, %v2189_v30  ;;  %v4822_v49 = vsub.s32 %v2314_v32, %v2317_v24  ;;  %v2411_v29 = vsel %vm2403_vm2, %v4808_v54, %v4799_v25 }
 0x27d   : > { %v2413_v28 = vsel %vm2405_vm4, %v4806_v22, %v2412_v17  ;;  %v2417_v33 = vsel %vm2405_vm4, %v2399_v2, %v2416_v1  ;;  %vm2208_vm8 = vcmp.eq.s32.totalorder %v4782_v41, 0  ;;  %vm2211_vm9 = vcmp.eq.s32.totalorder %v4782_v41, 2 }
 0x27e   : > { %v2195_v48 = vadd.f32 1.0, %v2194_v15  ;;  %v2202_v45 = vadd.f32 1.0, %v2201_v8  ;;  %vm2319_vm7 = vcmp.lt.s32.totalorder %v4822_v49, 0  ;;  %v2320_v30 = vsub.s32 0, %v4822_v49 }
 0x27f   : > { %v2418_v11 = vsel %vm2404_vm6, %v2415_v46, %v2417_v33  ;;  %v2526_v16 = vand.u32 2147483647, %v4775_v12  ;;  %v2414_v32 = vsel %vm2404_vm6, %v2411_v29, %v2413_v28  ;;  %v2421_v19 = vshrl.u32 %v4810_v56, 16 }
 0x280   : > { %v2203_v55 = vmul.f32 %v2202_v45, %v2187_v6  ;;  %v2212_v35 = vxor.u32 2147483648, %v2195_v48  ;;  %v2321_v9 = vsel %vm2319_vm7, %v2320_v30, %v4822_v49  ;;  %v2422_v51 = vand.u32 65535, %v2418_v11 }
 0x281   : > { %v2322_v27 = vclz %v2321_v9  ;;  %v2423_v57 = vshrl.u32 %v2418_v11, 16  ;;  %v2310_v26 = vadd.s32 %v4759_v59, %v4757_v61  ;;  %v2420_v63 = vand.u32 65535, %v4810_v56 }
 0x282   : > { %v2209_v4 = vxor.u32 2147483648, %v2203_v55  ;;  %v2530_v21 = vshrl.u32 %v2529_v37, 23  ;;  %v2340_v6 = vsub.s32 4, %v4804_v5  ;;  %v2387_v18 = vshrl.u32 %v3200_v34, %v4780_v3 }
 0x283   : > { %v3032_v50 = vadd.s32 4294967294, %v2322_v27  ;;  %v2426_v20 = vmul.u32 %v2422_v51, %v2421_v19  ;;  %v2213_v7 = vsel %vm2211_vm9, %v2212_v35, %v2203_v55  ;;  %vm2218_vm10 = vcmp.lt.s32.totalorder %v4515_v14, 0 }
 0x284   : > { %v2210_v2 = vsel %vm2208_vm8, %v2195_v48, %v2209_v4  ;;  %v2425_v61 = vmul.u32 %v2423_v57, %v2420_v63  ;;  %v2444_v59 = vand.u32 65535, %v2414_v32  ;;  %v2424_v42 = vmul.u32 %v2422_v51, %v2420_v63 }
 0x285   : > { %v2214_v23 = vsel %vm2207_vm3, %v2210_v2, %v2213_v7  ;;  %vm3033_vm12 = vcmp.lt.s32.totalorder %v3032_v50, 0  ;;  %v2445_v0 = vshrl.u32 %v2414_v32, 16  ;;  %v2427_v37 = vmul.u32 %v2423_v57, %v2421_v19 }
 0x286   : > { %v2215_v3 = vsel %vm2204_vm5, nan, %v2214_v23  ;;  %v2325_v47 = vsel %vm3033_vm12, 0, %v3032_v50  ;;  %v2428_v58 = vshll.u32 %v2425_v61, 16  ;;  %vm4867_vm11 = vcmp.le.f32.partialorder %v2216_v62, 0.7853982 }
 0x287   : > { %v2326_v24 = vsub.s32 32, %v2325_v47  ;;  %v2330_v17 = vsub.s32 4294967266, %v2325_v47  ;;  %v2429_v1 = vshrl.u32 %v2425_v61, 16  ;;  %v2430_v41 = vshll.u32 %v2426_v20, 16  ;;  %2847 = vst [vmem:[%s3565_s10 + $0x58] sm:$0xff] %v2215_v3 }
 0x288   : > { %vm2432_vm13 = vc.u32 %v2424_v42, %v2428_v58  ;;  %v2434_v15 = vadd.s32 %v2428_v58, %v2424_v42  ;;  %v2447_v8 = vmul.u32 %v2445_v0, %v2420_v63  ;;  %v2448_v46 = vmul.u32 %v2444_v59, %v2421_v19 }
 0x289   : > { %v2327_v10 = vshll.u32 %v4822_v49, %v2325_v47  ;;  %v2328_v29 = vshrl.u32 %v2310_v26, %v2326_v24  ;;  %v2331_v28 = vadd.s32 127, %v2330_v17  ;;  %v2433_v33 = vsel %vm2432_vm13, 1, %v3206_v39  ;;  %v353_v17 = vpop.f32.mrf.mxu3 }
 0x28a   : > { %v2435_v48 = vadd.s32 %v2433_v33, %v2427_v37  ;;  %vm2436_vm0 = vc.u32 %v2434_v15, %v2430_v41  ;;  %v2446_v62 = vmul.u32 %v2444_v59, %v2420_v63  ;;  %v2450_v45 = vshll.u32 %v2447_v8, 16 }
 0x28b   : > { %v2329_v30 = vor.u32 %v2328_v29, %v2327_v10  ;;  %v2332_v11 = vshll.u32 %v2331_v28, 23  ;;  %v2437_v55 = vsel %vm2436_vm0, 1, %v3206_v39  ;;  %v2449_v35 = vmul.u32 %v2445_v0, %v2421_v19 }
 0x28c   : > { %v2439_v9 = vadd.s32 %v2437_v55, %v2435_v48  ;;  %v2452_v51 = vshll.u32 %v2448_v46, 16  ;;  %vm2454_vm14 = vc.u32 %v2446_v62, %v2450_v45  ;;  %v2456_v27 = vadd.s32 %v2450_v45, %v2446_v62 }
 0x28d   : > { %v2333_v32 = vor.u32 4788187, %v2332_v11  ;;  %v2341_v49 = vsel %vm2218_vm10, %v2340_v6, %v4804_v5  ;;  %v2408_v57 = vsel %vm2406_vm1, %v4806_v22, 2102212464  ;;  %v2455_v4 = vsel %vm2454_vm14, 1, %v3206_v39 }
 0x28e   : > { %v2431_v26 = vshrl.u32 %v2426_v20, 16  ;;  %v2440_v63 = vadd.s32 %v2439_v9, %v2429_v1  ;;  %v2457_v50 = vadd.s32 %v2455_v4, %v2449_v35  ;;  %vm2458_vm15 = vc.u32 %v2456_v27, %v2452_v51 }
 0x28f   : > { %v2334_v19 = vand.u32 2147483647, %v2333_v32  ;;  %v2336_v2 = vcvt.s32.f32 %v2329_v30  ;;  %v2459_v7 = vsel %vm2458_vm15, 1, %v3206_v39  ;;  %v3037_v61 = vadd.s32 4294967169, %v2530_v21 }
 0x290   : > { %v2343_v59 = vsel %vm4867_vm11, 0, %v2341_v49  ;;  %v2407_v5 = vsel %vm2403_vm2, %v2387_v18, %v4808_v54  ;;  %v2451_v6 = vshrl.u32 %v2447_v8, 16  ;;  %v2461_v22 = vadd.s32 %v2459_v7, %v2457_v50 }
 0x291   : > { %v2337_v23 = vmul.f32 %v2336_v2, %v2334_v19  ;;  %v2409_v20 = vsel %vm2405_vm4, %v4799_v25, %v2408_v57  ;;  %v4891_v42 = vadd.s32 %v2440_v63, %v2431_v26  ;;  %v2536_v0 = vadd.s32 1, %v3037_v61 }
 0x292   : > { %v2453_v3 = vshrl.u32 %v2448_v46, 16  ;;  %v2462_v47 = vadd.s32 %v2461_v22, %v2451_v6  ;;  %v4893_v37 = vadd.s32 %v2456_v27, %v2452_v51  ;;  %v2360_v58 = vadd.s32 3, %v2343_v59 }
 0x293   : > { %v2338_v21 = vxor.u32 2147483648, %v2337_v23  ;;  %vm2537_vm1 = vcmp.gt.s32.totalorder %v2536_v0, 0  ;;  %v2410_v54 = vsel %vm2404_vm6, %v2407_v5, %v2409_v20  ;;  %v2533_v25 = vand.u32 8388607, %v2526_v16 }
 0x294   : > { %v2463_v18 = vadd.s32 %v2462_v47, %v2453_v3  ;;  %v2538_v24 = vsel %vm2537_vm1, %v2536_v0, 0  ;;  %vm2466_vm2 = vc.u32 %v4891_v42, %v4893_v37  ;;  %v2464_v46 = vmul.u32 %v4810_v56, %v2410_v54 }
 0x295   : > { %v2339_v1 = vsel %vm2218_vm10, %v2338_v21, %v2337_v23  ;;  %v2540_v41 = vand.u32 31, %v2538_v24  ;;  %v4910_v29 = vadd.f32 %v4772_v60, %v353_v17  ;;  %v4912_v28 = vand.u32 3, %v2360_v58 }
 0x296   : > { %v2342_v15 = vsel %vm4867_vm11, %v4515_v14, %v2339_v1  ;;  %v2467_v8 = vadd.s32 1, %v2463_v18  ;;  %v2534_v30 = vor.u32 8388608, %v2533_v25  ;;  %v4914_v11 = vshrl.u32 %v2538_v24, 5 }
 0x297   : > { %v2344_v31 = vmul.f32 %v2342_v15, %v2342_v15  ;;  %v4907_v10 = vsub.s32 32, %v2540_v41  ;;  %v2552_v51 = vshll.u32 %v3203_v40, %v2540_v41  ;;  %v2546_v32 = vshll.u32 %v3201_v36, %v2540_v41 }
 0x298   : > { %v2468_v33 = vsel %vm2466_vm2, %v2467_v8, %v2463_v18  ;;  %v2549_v49 = vshll.u32 %v3202_v38, %v2540_v41  ;;  %v2543_v19 = vshll.u32 %v3200_v34, %v2540_v41  ;;  %v2555_v61 = vshll.u32 %v3204_v43, %v2540_v41 }
 0x299   : > { %v2345_v48 = vmul.f32 -0.001358992, %v2344_v31  ;;  %v2352_v62 = vmul.f32 -0.00019511016, %v2344_v31  ;;  %v2469_v45 = vadd.s32 %v2468_v33, %v2464_v46  ;;  %v2547_v53 = vshrl.u32 %v3202_v38, %v4907_v10 }
 0x29a   : > { %v2550_v56 = vshrl.u32 %v3203_v40, %v4907_v10  ;;  %v2553_v55 = vshrl.u32 %v3204_v43, %v4907_v10  ;;  %v2544_v27 = vshrl.u32 %v3201_v36, %v4907_v10  ;;  %v2556_v57 = vshrl.u32 %v3205_v52, %v4907_v10 }
 0x29b   : > { %v2346_v60 = vadd.f32 0.041655596, %v2345_v48  ;;  %v2353_v35 = vadd.f32 0.008332121, %v2352_v62  ;;  %v2470_v9 = vadd.s32 536870912, %v2469_v45  ;;  %v4932_v2 = vor.u32 %v2547_v53, %v2546_v32 }
 0x29c   : > { %v2554_v50 = vor.u32 %v2553_v55, %v2552_v51  ;;  %v4934_v7 = vor.u32 %v2550_v56, %v2549_v49  ;;  %vm2363_vm4 = vcmp.eq.s32.totalorder %v4912_v28, 0  ;;  %vm2366_vm3 = vcmp.eq.s32.totalorder %v4912_v28, 2 }
 0x29d   : > { %v2347_v4 = vmul.f32 %v2346_v60, %v2344_v31  ;;  %v2354_v26 = vmul.f32 %v2353_v35, %v2344_v31  ;;  %v4929_v63 = vshrl.u32 %v2470_v9, 30  ;;  %v4940_v22 = vor.u32 %v2544_v27, %v2543_v19 }
 0x29e   : > { %v2557_v23 = vor.u32 %v2556_v57, %v2555_v61  ;;  %vm2558_vm5 = vcmp.lt.s32.totalorder %v4914_v11, 1  ;;  %vm2561_vm6 = vcmp.lt.s32.totalorder %v4914_v11, 4  ;;  %vm2362_vm7 = vcmp.lt.s32.totalorder %v4912_v28, 2 }
 0x29f   : > { %v2348_v59 = vadd.f32 -0.4999988, %v2347_v4  ;;  %v2355_v5 = vadd.f32 -0.16666654, %v2354_v26  ;;  %v2472_v6 = vshll.u32 %v4929_v63, 30  ;;  %vm2359_vm8 = vweird.f32 %v4515_v14 }
 0x2a0   : > { %v2567_v47 = vsel %vm2561_vm6, %v2554_v50, 920167782  ;;  %vm2560_vm9 = vcmp.lt.s32.totalorder %v4914_v11, 3  ;;  %v2570_v21 = vsel %vm2558_vm5, %v4932_v2, %v4934_v7  ;;  %v4953_v58 = vshll.u32 %v2534_v30, 8 }
 0x2a1   : > { %v2349_v20 = vmul.f32 %v2348_v59, %v2344_v31  ;;  %v2356_v0 = vmul.f32 %v2355_v5, %v2344_v31  ;;  %v2473_v3 = vsub.s32 %v2469_v45, %v2472_v6  ;;  %v2684_v54 = vand.u32 2139095040, %v4910_v29 }
 0x2a2   : > { %vm2559_vm12 = vcmp.lt.s32.totalorder %v4914_v11, 2  ;;  %v2566_v1 = vsel %vm2558_vm5, %v4940_v22, %v4932_v2  ;;  %v2568_v25 = vsel %vm2560_vm9, %v4934_v7, %v2567_v47  ;;  %v2571_v41 = vsel %vm2561_vm6, %v2557_v23, 1326507024 }
 0x2a3   : > { %v2350_v18 = vadd.f32 1.0, %v2349_v20  ;;  %v2357_v24 = vadd.f32 1.0, %v2356_v0  ;;  %vm2474_vm10 = vcmp.lt.s32.totalorder %v2473_v3, 0  ;;  %v2475_v17 = vsub.s32 0, %v2473_v3 }
 0x2a4   : > { %v2572_v33 = vsel %vm2560_vm9, %v2554_v50, %v2571_v41  ;;  %v2575_v45 = vand.u32 65535, %v4953_v58  ;;  %v2576_v30 = vshrl.u32 %v4953_v58, 16  ;;  %v2569_v56 = vsel %vm2559_vm12, %v2566_v1, %v2568_v25 }
 0x2a5   : > { %v2358_v8 = vmul.f32 %v2357_v24, %v2342_v15  ;;  %v2367_v31 = vxor.u32 2147483648, %v2350_v18  ;;  %v2476_v46 = vsel %vm2474_vm10, %v2475_v17, %v2473_v3  ;;  %v2573_v62 = vsel %vm2559_vm12, %v2570_v21, %v2572_v33 }
 0x2a6   : > { %v2477_v48 = vclz %v2476_v46  ;;  %v2577_v55 = vand.u32 65535, %v2573_v62  ;;  %v2578_v60 = vshrl.u32 %v2573_v62, 16  ;;  %v2465_v15 = vadd.s32 %v4893_v37, %v4891_v42 }
 0x2a7   : > { %v2364_v53 = vxor.u32 2147483648, %v2358_v8  ;;  %v2681_v9 = vand.u32 2147483647, %v4910_v29  ;;  %v2685_v51 = vshrl.u32 %v2684_v54, 23  ;;  %v2368_v32 = vsel %vm2366_vm3, %v2367_v31, %v2358_v8 }
 0x2a8   : > { %v3035_v35 = vadd.s32 4294967294, %v2477_v48  ;;  %v2580_v49 = vmul.u32 %v2578_v60, %v2575_v45  ;;  %v2581_v57 = vmul.u32 %v2577_v55, %v2576_v30  ;;  %v2599_v26 = vand.u32 65535, %v2569_v56 }
 0x2a9   : > { %v2365_v27 = vsel %vm2363_vm4, %v2350_v18, %v2364_v53  ;;  %v2600_v50 = vshrl.u32 %v2569_v56, 16  ;;  %v2579_v19 = vmul.u32 %v2577_v55, %v2575_v45  ;;  %v2542_v6 = vshrl.u32 %v3200_v34, %v4907_v10 }
 0x2aa   : > { %v2369_v4 = vsel %vm2362_vm7, %v2365_v27, %v2368_v32  ;;  %vm3036_vm11 = vcmp.lt.s32.totalorder %v3035_v35, 0  ;;  %v2583_v61 = vshll.u32 %v2580_v49, 16  ;;  %v2582_v23 = vmul.u32 %v2578_v60, %v2576_v30 }
 0x2ab   : > { %v2370_v42 = vsel %vm2359_vm8, nan, %v2369_v4  ;;  %v2480_v37 = vsel %vm3036_vm11, 0, %v3035_v35  ;;  %v2585_v0 = vshll.u32 %v2581_v57, 16  ;;  %vm2373_vm0 = vcmp.lt.s32.totalorder %v4647_v44, 0 }
 0x2ac   : > { %v2481_v59 = vsub.s32 32, %v2480_v37  ;;  %v2485_v5 = vsub.s32 4294967266, %v2480_v37  ;;  %2848 = vst [vmem:[%s3565_s10 + $0x60] sm:$0xff] %v2370_v42  ;;  %v2482_v20 = vshll.u32 %v2473_v3, %v2480_v37  ;;  %vm2587_vm13 = vc.u32 %v2579_v19, %v2583_v61 }
 0x2ad   : > { %v2589_v28 = vadd.s32 %v2583_v61, %v2579_v19  ;;  %v2588_v14 = vsel %vm2587_vm13, 1, %v3206_v39  ;;  %v2602_v54 = vmul.u32 %v2600_v50, %v2575_v45  ;;  %v2601_v24 = vmul.u32 %v2599_v26, %v2575_v45 }
 0x2ae   : > { %v2483_v47 = vshrl.u32 %v2465_v15, %v2481_v59  ;;  %v2486_v21 = vadd.s32 127, %v2485_v5  ;;  %v2590_v18 = vadd.s32 %v2588_v14, %v2582_v23  ;;  %v2603_v17 = vmul.u32 %v2599_v26, %v2576_v30 }
 0x2af   : > { %vm2591_vm14 = vc.u32 %v2589_v28, %v2585_v0  ;;  %v2605_v41 = vshll.u32 %v2602_v54, 16  ;;  %v2495_v3 = vsub.s32 4, %v4929_v63  ;;  %v2584_v8 = vshrl.u32 %v2580_v49, 16 }
 0x2b0   : > { %v2484_v1 = vor.u32 %v2483_v47, %v2482_v20  ;;  %v2487_v25 = vshll.u32 %v2486_v21, 23  ;;  %v2592_v10 = vsel %vm2591_vm14, 1, %v3206_v39  ;;  %v2604_v46 = vmul.u32 %v2600_v50, %v2576_v30 }
 0x2b1   : > { %v2594_v31 = vadd.s32 %v2592_v10, %v2590_v18  ;;  %v2607_v48 = vshll.u32 %v2603_v17, 16  ;;  %vm2609_vm15 = vc.u32 %v2601_v24, %v2605_v41  ;;  %v2611_v62 = vadd.s32 %v2605_v41, %v2601_v24 }
 0x2b2   : > { %v2488_v33 = vor.u32 4788187, %v2487_v25  ;;  %v2563_v53 = vsel %vm2561_vm6, %v4934_v7, 2102212464  ;;  %v2610_v56 = vsel %vm2609_vm15, 1, %v3206_v39  ;;  %v3040_v55 = vadd.s32 4294967169, %v2685_v51 }
 0x2b3   : > { %v2595_v45 = vadd.s32 %v2594_v31, %v2584_v8  ;;  %v2491_v15 = vcvt.s32.f32 %v2484_v1  ;;  %v2612_v35 = vadd.s32 %v2610_v56, %v2604_v46  ;;  %vm2613_vm1 = vc.u32 %v2611_v62, %v2607_v48 }
 0x2b4   : > { %v2489_v60 = vand.u32 2147483647, %v2488_v33  ;;  %v2562_v30 = vsel %vm2558_vm5, %v2542_v6, %v4940_v22  ;;  %v2586_v27 = vshrl.u32 %v2581_v57, 16  ;;  %v2614_v32 = vsel %vm2613_vm1, 1, %v3206_v39 }
 0x2b5   : > { %v2691_v49 = vadd.s32 1, %v3040_v55  ;;  %v2564_v7 = vsel %vm2560_vm9, %v4932_v2, %v2563_v53  ;;  %v2606_v26 = vshrl.u32 %v2602_v54, 16  ;;  %v2616_v50 = vadd.s32 %v2614_v32, %v2612_v35 }
 0x2b6   : > { %v2492_v4 = vmul.f32 %v2491_v15, %v2489_v60  ;;  %v2496_v51 = vsel %vm2373_vm0, %v2495_v3, %v4929_v63  ;;  %v5006_v42 = vadd.s32 %v2595_v45, %v2586_v27  ;;  %v2608_v22 = vshrl.u32 %v2603_v17, 16 }
 0x2b7   : > { %vm2692_vm2 = vcmp.gt.s32.totalorder %v2691_v49, 0  ;;  %v2617_v57 = vadd.s32 %v2616_v50, %v2606_v26  ;;  %v2565_v61 = vsel %vm2559_vm12, %v2562_v30, %v2564_v7  ;;  %v5010_v59 = vadd.s32 %v2611_v62, %v2607_v48 }
 0x2b8   : > { %v2493_v37 = vxor.u32 2147483648, %v2492_v4  ;;  %v2693_v19 = vsel %vm2692_vm2, %v2691_v49, 0  ;;  %vm5014_vm4 = vcmp.le.f32.partialorder %v2371_v13, 0.7853982  ;;  %v2688_v23 = vand.u32 8388607, %v2681_v9 }
 0x2b9   : > { %v2695_v5 = vand.u32 31, %v2693_v19  ;;  %v2618_v6 = vadd.s32 %v2617_v57, %v2608_v22  ;;  %v2498_v20 = vsel %vm5014_vm4, 0, %v2496_v51  ;;  %vm2621_vm3 = vc.u32 %v5006_v42, %v5010_v59 }
 0x2ba   : > { %v2494_v63 = vsel %vm2373_vm0, %v2493_v37, %v2492_v4  ;;  %v2619_v28 = vmul.u32 %v4953_v58, %v2565_v61  ;;  %v5042_v41 = vshrl.u32 %v2693_v19, 5  ;;  %vm2514_vm10 = vweird.f32 %v4647_v44 }
 0x2bb   : > { %v2497_v11 = vsel %vm5014_vm4, %v4647_v44, %v2494_v63  ;;  %v5029_v13 = vsub.s32 32, %v2695_v5  ;;  %v2622_v47 = vadd.s32 1, %v2618_v6  ;;  %v2698_v21 = vshll.u32 %v3200_v34, %v2695_v5 }
 0x2bc   : > { %v2499_v0 = vmul.f32 %v2497_v11, %v2497_v11  ;;  %v2701_v54 = vshll.u32 %v3201_v36, %v2695_v5  ;;  %v2704_v3 = vshll.u32 %v3202_v38, %v2695_v5  ;;  %v2707_v8 = vshll.u32 %v3203_v40, %v2695_v5 }
 0x2bd   : > { %v2699_v14 = vshrl.u32 %v3201_v36, %v5029_v13  ;;  %v2702_v18 = vshrl.u32 %v3202_v38, %v5029_v13  ;;  %v2705_v24 = vshrl.u32 %v3203_v40, %v5029_v13  ;;  %v2623_v25 = vsel %vm2621_vm3, %v2622_v47, %v2618_v6 }
 0x2be   : > { %v2500_v17 = vmul.f32 -0.001358992, %v2499_v0  ;;  %v2507_v1 = vmul.f32 -0.00019511016, %v2499_v0  ;;  %v2708_v58 = vshrl.u32 %v3204_v43, %v5029_v13  ;;  %v2624_v10 = vadd.s32 %v2623_v25, %v2619_v28 }
 0x2bf   : > { %v5046_v46 = vor.u32 %v2699_v14, %v2698_v21  ;;  %v5048_v33 = vor.u32 %v2702_v18, %v2701_v54  ;;  %v2710_v53 = vshll.u32 %v3204_v43, %v2695_v5  ;;  %v2711_v45 = vshrl.u32 %v3205_v52, %v5029_v13 }
 0x2c0   : > { %v2501_v36 = vadd.f32 0.041655596, %v2500_v17  ;;  %v2508_v31 = vadd.f32 0.008332121, %v2507_v1  ;;  %v2625_v48 = vadd.s32 536870912, %v2624_v10  ;;  %v2709_v62 = vor.u32 %v2708_v58, %v2707_v8 }
 0x2c1   : > { %v5053_v60 = vor.u32 %v2705_v24, %v2704_v3  ;;  %v2515_v38 = vadd.s32 3, %v2498_v20  ;;  %v2689_v40 = vor.u32 8388608, %v2688_v23  ;;  %v2712_v35 = vor.u32 %v2711_v45, %v2710_v53 }
 0x2c2   : > { %v2502_v56 = vmul.f32 %v2501_v36, %v2499_v0  ;;  %v2509_v55 = vmul.f32 %v2508_v31, %v2499_v0  ;;  %v5055_v15 = vshrl.u32 %v2625_v48, 30  ;;  %vm2713_vm5 = vcmp.lt.s32.totalorder %v5042_v41, 1 }
 0x2c3   : > { %vm2716_vm6 = vcmp.lt.s32.totalorder %v5042_v41, 4  ;;  %vm2715_vm7 = vcmp.lt.s32.totalorder %v5042_v41, 3  ;;  %v2721_v52 = vsel %vm2713_vm5, %v5046_v46, %v5048_v33  ;;  %v2725_v26 = vsel %vm2713_vm5, %v5048_v33, %v5053_v60 }
 0x2c4   : > { %v2503_v30 = vadd.f32 -0.4999988, %v2502_v56  ;;  %v2510_v27 = vadd.f32 -0.16666654, %v2509_v55  ;;  %v2627_v43 = vshll.u32 %v5055_v15, 30  ;;  %v2516_v50 = vand.u32 3, %v2515_v38 }
 0x2c5   : > { %v2722_v32 = vsel %vm2716_vm6, %v2709_v62, 920167782  ;;  %v2726_v37 = vsel %vm2716_vm6, %v2712_v35, 1326507024  ;;  %v5076_v22 = vshll.u32 %v2689_v40, 8  ;;  %vm2714_vm8 = vcmp.lt.s32.totalorder %v5042_v41, 2 }
 0x2c6   : > { %v2504_v49 = vmul.f32 %v2503_v30, %v2499_v0  ;;  %v2511_v4 = vmul.f32 %v2510_v27, %v2499_v0  ;;  %v2723_v7 = vsel %vm2715_vm7, %v5053_v60, %v2722_v32  ;;  %v2628_v51 = vsub.s32 %v2624_v10, %v2627_v43 }
 0x2c7   : > { %v2727_v61 = vsel %vm2715_vm7, %v2709_v62, %v2726_v37  ;;  %v2724_v2 = vsel %vm2714_vm8, %v2721_v52, %v2723_v7  ;;  %vm2517_vm12 = vcmp.lt.s32.totalorder %v2516_v50, 2  ;;  %v2730_v47 = vand.u32 65535, %v5076_v22 }
 0x2c8   : > { %v2505_v57 = vadd.f32 1.0, %v2504_v49  ;;  %v2512_v19 = vadd.f32 1.0, %v2511_v4  ;;  %vm2629_vm9 = vcmp.lt.s32.totalorder %v2628_v51, 0  ;;  %v2630_v5 = vsub.s32 0, %v2628_v51 }
 0x2c9   : > { %v2728_v63 = vsel %vm2714_vm8, %v2725_v26, %v2727_v61  ;;  %vm2518_vm11 = vcmp.eq.s32.totalorder %v2516_v50, 0  ;;  %v2731_v54 = vshrl.u32 %v5076_v22, 16  ;;  %vm2521_vm13 = vcmp.eq.s32.totalorder %v2516_v50, 2 }
 0x2ca   : > { %v2513_v6 = vmul.f32 %v2512_v19, %v2497_v11  ;;  %v2522_v23 = vxor.u32 2147483648, %v2505_v57  ;;  %v2732_v20 = vand.u32 65535, %v2728_v63  ;;  %v2733_v0 = vshrl.u32 %v2728_v63, 16 }
 0x2cb   : > { %v2631_v28 = vsel %vm2629_vm9, %v2630_v5, %v2628_v51  ;;  %v2754_v24 = vand.u32 65535, %v2724_v2  ;;  %v2755_v17 = vshrl.u32 %v2724_v2, 16  ;;  %v2620_v3 = vadd.s32 %v5010_v59, %v5006_v42 }
 0x2cc   : > { %v2519_v21 = vxor.u32 2147483648, %v2513_v6  ;;  %v2632_v14 = vclz %v2631_v28  ;;  %v2735_v18 = vmul.u32 %v2733_v0, %v2730_v47  ;;  %v2523_v11 = vsel %vm2521_vm13, %v2522_v23, %v2513_v6 }
 0x2cd   : > { %v2736_v58 = vmul.u32 %v2732_v20, %v2731_v54  ;;  %v2734_v8 = vmul.u32 %v2732_v20, %v2730_v47  ;;  %v2737_v48 = vmul.u32 %v2733_v0, %v2731_v54  ;;  %v2757_v56 = vmul.u32 %v2755_v17, %v2730_v47 }
 0x2ce   : > { %v2520_v1 = vsel %vm2518_vm11, %v2505_v57, %v2519_v21  ;;  %v3038_v25 = vadd.s32 4294967294, %v2632_v14  ;;  %v2738_v36 = vshll.u32 %v2735_v18, 16  ;;  %v2756_v35 = vmul.u32 %v2754_v24, %v2730_v47 }
 0x2cf   : > { %v2524_v10 = vsel %vm2517_vm12, %v2520_v1, %v2523_v11  ;;  %v2740_v62 = vshll.u32 %v2736_v58, 16  ;;  %v2758_v59 = vmul.u32 %v2754_v24, %v2731_v54  ;;  %v2760_v52 = vshll.u32 %v2757_v56, 16 }
 0x2d0   : > { %v2525_v31 = vsel %vm2514_vm10, nan, %v2524_v10  ;;  %vm3039_vm0 = vcmp.lt.s32.totalorder %v3038_v25, 0  ;;  %vm2742_vm14 = vc.u32 %v2734_v8, %v2738_v36  ;;  %v2744_v45 = vadd.s32 %v2738_v36, %v2734_v8 }
 0x2d1   : > { %v2635_v53 = vsel %vm3039_vm0, 0, %v3038_v25  ;;  %2849 = vst [vmem:[%s3565_s10 + $0x68] sm:$0xff] %v2525_v31  ;;  %v2743_v40 = vsel %vm2742_vm14, 1, %v3206_v39  ;;  %v2739_v32 = vshrl.u32 %v2735_v18, 16  ;;  %v2759_v4 = vmul.u32 %v2755_v17, %v2731_v54 }
 0x2d2   : > { %v2636_v55 = vsub.s32 32, %v2635_v53  ;;  %v2640_v38 = vsub.s32 4294967266, %v2635_v53  ;;  %v2637_v30 = vshll.u32 %v2628_v51, %v2635_v53  ;;  %v2745_v42 = vadd.s32 %v2743_v40, %v2737_v48 }
 0x2d3   : > { %vm2746_vm15 = vc.u32 %v2744_v45, %v2740_v62  ;;  %v2762_v7 = vshll.u32 %v2758_v59, 16  ;;  %vm2764_vm1 = vc.u32 %v2756_v35, %v2760_v52  ;;  %v2766_v37 = vadd.s32 %v2760_v52, %v2756_v35 }
 0x2d4   : > { %v2638_v27 = vshrl.u32 %v2620_v3, %v2636_v55  ;;  %v2641_v44 = vadd.s32 127, %v2640_v38  ;;  %v2747_v43 = vsel %vm2746_vm15, 1, %v3206_v39  ;;  %v2765_v19 = vsel %vm2764_vm1, 1, %v3206_v39 }
 0x2d5   : > { %v2749_v49 = vadd.s32 %v2747_v43, %v2745_v42  ;;  %v2718_v61 = vsel %vm2716_vm6, %v5053_v60, 2102212464  ;;  %v2767_v5 = vadd.s32 %v2765_v19, %v2759_v4  ;;  %vm2768_vm2 = vc.u32 %v2766_v37, %v2762_v7 }
 0x2d6   : > { %v2639_v26 = vor.u32 %v2638_v27, %v2637_v30  ;;  %v2642_v50 = vshll.u32 %v2641_v44, 23  ;;  %v2697_v2 = vshrl.u32 %v3200_v34, %v5029_v13  ;;  %v2741_v63 = vshrl.u32 %v2736_v58, 16 }
 0x2d7   : > { %v2750_v57 = vadd.s32 %v2749_v49, %v2739_v32  ;;  %v2769_v6 = vsel %vm2768_vm2, 1, %v3206_v39  ;;  %v2761_v0 = vshrl.u32 %v2757_v56, 16  ;;  %v2719_v60 = vsel %vm2715_vm7, %v5048_v33, %v2718_v61 }
 0x2d8   : > { %v2643_v51 = vor.u32 4788187, %v2642_v50  ;;  %v2646_v20 = vcvt.s32.f32 %v2639_v26  ;;  %v2771_v28 = vadd.s32 %v2769_v6, %v2767_v5  ;;  %v2717_v47 = vsel %vm2713_vm5, %v2697_v2, %v5046_v46 }
 0x2d9   : > { %v2751_v21 = vadd.s32 %v2750_v57, %v2741_v63  ;;  %v2763_v54 = vshrl.u32 %v2758_v59, 16  ;;  %v2770_v34 = vadd.s32 %v2766_v37, %v2762_v7  ;;  %v2720_v39 = vsel %vm2714_vm8, %v2717_v47, %v2719_v60 }
 0x2da   : > { %v2644_v23 = vand.u32 2147483647, %v2643_v51  ;;  %v2772_v18 = vadd.s32 %v2771_v28, %v2761_v0  ;;  %vm2528_vm4 = vcmp.lt.s32.totalorder %v4775_v12, 0  ;;  %vm5113_vm5 = vcmp.le.f32.partialorder %v2526_v16, 0.7853982 }
 0x2db   : > { %vm2776_vm3 = vc.u32 %v2751_v21, %v2770_v34  ;;  %v2650_v1 = vsub.s32 4, %v5055_v15  ;;  %v2774_v41 = vmul.u32 %v5076_v22, %v2720_v39  ;;  %vm2669_vm12 = vweird.f32 %v4775_v12 }
 0x2dc   : > { %v2647_v14 = vmul.f32 %v2646_v20, %v2644_v23  ;;  %v2773_v24 = vadd.s32 %v2772_v18, %v2763_v54  ;;  %v2775_v51 = vadd.s32 %v2770_v34, %v2751_v21  ;;  %vm2683_vm11 = vcmp.lt.s32.totalorder %v4910_v29, 0 }
 0x2dd   : > { %v2651_v16 = vsel %vm2528_vm4, %v2650_v1, %v5055_v15  ;;  %vm2682_vm13 = vcmp.le.f32.partialorder %v2681_v9, 0.7853982  ;;  %vm2824_vm1 = vweird.f32 %v4910_v29 }
 0x2de   : > { %v2648_v13 = vxor.u32 2147483648, %v2647_v14  ;;  %v2777_v17 = vadd.s32 1, %v2773_v24  ;;  %v2653_v53 = vsel %vm5113_vm5, 0, %v2651_v16 }
 0x2df   : > { %v2670_v22 = vadd.s32 3, %v2653_v53 }
 0x2e0   : > { %v2649_v33 = vsel %vm2528_vm4, %v2648_v13, %v2647_v14  ;;  %v2778_v58 = vsel %vm2776_vm3, %v2777_v17, %v2773_v24 }
 0x2e1   : > { %v2652_v11 = vsel %vm5113_vm5, %v4775_v12, %v2649_v33  ;;  %v2779_v10 = vadd.s32 %v2778_v58, %v2774_v41  ;;  %v2671_v44 = vand.u32 3, %v2670_v22 }
 0x2e2   : > { %v2654_v25 = vmul.f32 %v2652_v11, %v2652_v11 }
 0x2e3   : > { %v2780_v36 = vadd.s32 536870912, %v2779_v10  ;;  %vm2673_vm7 = vcmp.eq.s32.totalorder %v2671_v44, 0  ;;  %vm2676_vm8 = vcmp.eq.s32.totalorder %v2671_v44, 2  ;;  %vm2672_vm9 = vcmp.lt.s32.totalorder %v2671_v44, 2 }
 0x2e4   : > { %v2655_v3 = vmul.f32 -0.001358992, %v2654_v25  ;;  %v2662_v8 = vmul.f32 -0.00019511016, %v2654_v25 }
 0x2e5   : > { %v2781_v62 = vshrl.u32 %v2780_v36, 30 }
 0x2e6   : > { %v2656_v31 = vadd.f32 0.041655596, %v2655_v3  ;;  %v2663_v48 = vadd.f32 0.008332121, %v2662_v8 }
 0x2e7   : > { %v2782_v55 = vshll.u32 %v2781_v62, 30  ;;  %v2805_v21 = vsub.s32 4, %v2781_v62 }
 0x2e8   : > { %v2657_v45 = vmul.f32 %v2656_v31, %v2654_v25  ;;  %v2664_v56 = vmul.f32 %v2663_v48, %v2654_v25 }
 0x2e9   : > { %v2783_v35 = vsub.s32 %v2779_v10, %v2782_v55  ;;  %v2806_v39 = vsel %vm2683_vm11, %v2805_v21, %v2781_v62 }
 0x2ea   : > { %v2658_v38 = vadd.f32 -0.4999988, %v2657_v45  ;;  %v2665_v40 = vadd.f32 -0.16666654, %v2664_v56  ;;  %v2808_v33 = vsel %vm2682_vm13, 0, %v2806_v39 }
 0x2eb   : > { %vm2784_vm6 = vcmp.lt.s32.totalorder %v2783_v35, 0  ;;  %v2785_v59 = vsub.s32 0, %v2783_v35 }
 0x2ec   : > { %v2659_v30 = vmul.f32 %v2658_v38, %v2654_v25  ;;  %v2666_v42 = vmul.f32 %v2665_v40, %v2654_v25  ;;  %v2825_v25 = vadd.s32 3, %v2808_v33 }
 0x2ed   : > { %v2786_v43 = vsel %vm2784_vm6, %v2785_v59, %v2783_v35 }
 0x2ee   : > { %v2660_v27 = vadd.f32 1.0, %v2659_v30  ;;  %v2667_v15 = vadd.f32 1.0, %v2666_v42  ;;  %v2787_v49 = vclz %v2786_v43  ;;  %v2826_v8 = vand.u32 3, %v2825_v25 }
 0x2f0   : > { %v2668_v52 = vmul.f32 %v2667_v15, %v2652_v11  ;;  %v2677_v32 = vxor.u32 2147483648, %v2660_v27  ;;  %v3041_v7 = vadd.s32 4294967294, %v2787_v49  ;;  %vm2828_vm0 = vcmp.eq.s32.totalorder %v2826_v8, 0 }
 0x2f1   : > { %vm2831_vm14 = vcmp.eq.s32.totalorder %v2826_v8, 2  ;;  %vm2827_vm15 = vcmp.lt.s32.totalorder %v2826_v8, 2 }
 0x2f2   : > { %v2674_v4 = vxor.u32 2147483648, %v2668_v52  ;;  %v2678_v50 = vsel %vm2676_vm8, %v2677_v32, %v2668_v52  ;;  %vm3042_vm10 = vcmp.lt.s32.totalorder %v3041_v7, 0 }
 0x2f3   : > { %v2790_v57 = vsel %vm3042_vm10, 0, %v3041_v7 }
 0x2f4   : > { %v2675_v26 = vsel %vm2673_vm7, %v2660_v27, %v2674_v4  ;;  %v2791_v61 = vsub.s32 32, %v2790_v57  ;;  %v2795_v5 = vsub.s32 4294967266, %v2790_v57  ;;  %v2792_v2 = vshll.u32 %v2783_v35, %v2790_v57 }
 0x2f5   : > { %v2679_v37 = vsel %vm2672_vm9, %v2675_v26, %v2678_v50 }
 0x2f6   : > { %v2680_v19 = vsel %vm2669_vm12, nan, %v2679_v37  ;;  %v2793_v63 = vshrl.u32 %v2775_v51, %v2791_v61  ;;  %v2796_v6 = vadd.s32 127, %v2795_v5 }
 0x2f7   : > { %2850 = vst [vmem:[%s3565_s10 + $0x70] sm:$0xff] %v2680_v19 }
 0x2f8   : > { %v2794_v23 = vor.u32 %v2793_v63, %v2792_v2  ;;  %v2797_v20 = vshll.u32 %v2796_v6, 23 }
 0x2fa   : > { %v2798_v0 = vor.u32 4788187, %v2797_v20  ;;  %v2801_v47 = vcvt.s32.f32 %v2794_v23 }
 0x2fc   : > { %v2799_v28 = vand.u32 2147483647, %v2798_v0 }
 0x2fe   : > { %v2802_v60 = vmul.f32 %v2801_v47, %v2799_v28 }
 0x300   : > { %v2803_v14 = vxor.u32 2147483648, %v2802_v60 }
 0x302   : > { %v2804_v12 = vsel %vm2683_vm11, %v2803_v14, %v2802_v60 }
 0x303   : > { %v2807_v54 = vsel %vm2682_vm13, %v4910_v29, %v2804_v12 }
 0x304   : > { %v2809_v18 = vmul.f32 %v2807_v54, %v2807_v54 }
 0x306   : > { %v2810_v34 = vmul.f32 -0.001358992, %v2809_v18  ;;  %v2817_v13 = vmul.f32 -0.00019511016, %v2809_v18 }
 0x308   : > { %v2811_v24 = vadd.f32 0.041655596, %v2810_v34  ;;  %v2818_v46 = vadd.f32 0.008332121, %v2817_v13 }
 0x30a   : > { %v2812_v17 = vmul.f32 %v2811_v24, %v2809_v18  ;;  %v2819_v1 = vmul.f32 %v2818_v46, %v2809_v18 }
 0x30c   : > { %v2813_v11 = vadd.f32 -0.4999988, %v2812_v17  ;;  %v2820_v41 = vadd.f32 -0.16666654, %v2819_v1 }
 0x30e   : > { %v2814_v58 = vmul.f32 %v2813_v11, %v2809_v18  ;;  %v2821_v9 = vmul.f32 %v2820_v41, %v2809_v18 }
 0x310   : > { %v2815_v10 = vadd.f32 1.0, %v2814_v58  ;;  %v2822_v3 = vadd.f32 1.0, %v2821_v9 }
 0x312   : > { %v2823_v16 = vmul.f32 %v2822_v3, %v2807_v54  ;;  %v2832_v36 = vxor.u32 2147483648, %v2815_v10 }
 0x314   : > { %v2829_v31 = vxor.u32 2147483648, %v2823_v16  ;;  %v2833_v62 = vsel %vm2831_vm14, %v2832_v36, %v2823_v16 }
 0x316   : > { %v2830_v48 = vsel %vm2828_vm0, %v2815_v10, %v2829_v31 }
 0x317   : > { %v2834_v53 = vsel %vm2827_vm15, %v2830_v48, %v2833_v62 }
 0x318   : > { %v2835_v45 = vsel %vm2824_vm1, nan, %v2834_v53 }
 0x319   : > { %2851 = vst [vmem:[%s3565_s10 + $0x78] sm:$0xff] %v2835_v45 }
 0x31a   : > { %3147 = shalt.err (!%p3144_p5)
}
 0x31b   : > { %s3207_s8 = smov 128   ;;  %s3208_s10 = smov 8  }
 0x31c   : > { %3052 = dma.vmem_to_hbm [thread:$0]  (%p3269_p4), %s2867_s4, 2048, %s2869_s5, %s2853_s15, %s3207_s8, %s3207_s8, %s3208_s10  }
 0x31d PF: > { %p3058_p6 = scmp.ge.s32.totalorder %s3198_s17, 2  ;;  %s2883_s23 = sand.u32 1, %s3178_s12  }
 0x31e   : > { %s2884_s26 = scalar_lea.sflag [#allocation3], %s2883_s23 }
 0x31f   : > { %p3055_p7 = pnand %p3058_p6, %p3276_p8 }
 0x321   : > { %p3056_p9 = pneg %p3055_p7 }
 0x323   : > { %3173 = dma.done.wait (%p3056_p9), %s2884_s26, 2048  }
 0x324   : > { %3175 = vsyncadd (%p3056_p9), %s2884_s26, 4294965248  ;;  %s16_s17 = sadd.s32 1, %s3198_s17   ;;  %s5208_s12 = smov %s3182_s13 }
 0x325   : > { %p13_p10 = scmp.ge.s32.totalorder %s16_s17, 10   ;;  %s5209_s13 = smov %s3186_s14 }
 0x326   : > { %s5210_s14 = smov %s3282_s25  ;;  %s5211_s15 = smov %s3194_s16 }
 0x327   : > { %s5212_s16 = smov %s5214_s20  ;;  %15 = sbr.rel (!%p13_p10) target bundleno = 4 (0x4), region = 73 }
 0x32c   :  { %2890 = vsyncpa [#allocation3], 1 }
 0x32d   :  { %2892 = vsyncpa [#allocation3 + $0x1], 1 }

</bundles_post_ra>
